<compile_context>
chip_gen: v7x
topology: tpu7x:2x2x1
jax: 0.10.0
libtpu: 0.0.40
codegen_flags: <defaults>
</compile_context>

<pallas_src>
import functools

import jax
import jax.numpy as jnp
import numpy as np
from jax import lax
from jax.experimental import pallas as pl
from jax.experimental.pallas import tpu as pltpu


# ---------------------------------------------------------------------------
# Small helpers
# ---------------------------------------------------------------------------
def _round_up(x, m):
    return ((x + m - 1) // m) * m


def _round_down(x, m):
    return (x // m) * m


def _sublane_granule(dtype):
    """Channel-tile granularity matching sublane packing: f32->8, bf16->16, int8->32."""
    itemsize = jnp.dtype(dtype).itemsize
    return 8 * max(1, 4 // itemsize)


def _chip_budgets():
    """(vmem_limit_bytes, per-block byte budget) tuned per TPU generation."""
    vmem_cap = 128 * 1024 * 1024
    try:
        info = pltpu.get_tpu_info()
        vmem_cap = int(getattr(info, "vmem_capacity_bytes", vmem_cap))
    except Exception:
        pass
    if vmem_cap <= 80 * 1024 * 1024:            # v7x-class: 64 MiB per TensorCore
        return 40 * 1024 * 1024, 3 * 1024 * 1024
    return 80 * 1024 * 1024, 6 * 1024 * 1024    # v5e/v6e: 128 MiB physical VMEM


def _pick_reduce_tile(C, HW, itemsize, budget, sub):
    """Channel tile for Pass A: multiple of `sub` (or full C) fitting the budget."""
    per_ch = max(1, HW * itemsize)
    cap = max(1, budget // per_ch)
    if C <= cap:
        return C
    tc = _round_down(min(cap, C), sub)
    if tc == 0:
        tc = min(C, sub)          # minimum aligned tile (may slightly exceed budget)
    return tc


def _pick_gate_tiles(C, HW, itemsize, budget, sub):
    """(channel tile, HW tile) for Pass B; HW tile is a multiple of 128 or full HW."""
    per_ch = max(1, HW * itemsize)
    if per_ch <= budget:
        thw = HW
        cap = max(1, budget // per_ch)
        if C <= cap:
            tc = C
        else:
            tc = _round_down(cap, sub)
            if tc == 0:
                tc = min(C, sub)
    else:                          # huge images: tile HW as well
        tc = min(C, sub)
        lane_cap = max(128, budget // max(1, tc * itemsize))
        thw = min(HW, max(128, _round_down(lane_cap, 128)))
    return tc, thw


def _row_loop(n, body):
    """Statically unroll small row loops; use an scf.for for large ones."""
    if n <= 128:
        for r in range(n):
            body(r)
    else:
        pl.loop(0, n)(body)


# ---------------------------------------------------------------------------
# Shared finalize: padded maps -> KxK conv -> sigmoid, result left flat in sflat
# ---------------------------------------------------------------------------
def _conv_sigmoid_flat(w_ref, sflat_ref, mflat_ref, spad_ref, mpad_ref, *, H, W, K):
    """Consumes flat (1, HW) f32 channel-sum / channel-max maps, leaves the flat
    (1, HW) f32 sigmoid(conv(...)) attention map in sflat_ref.  Runs once per image."""
    P = K // 2

    # 1) Zero-padded conv inputs (written once per image, not per channel step).
    spad_ref[...] = jnp.zeros_like(spad_ref)
    mpad_ref[...] = jnp.zeros_like(mpad_ref)

    def copy_in(r):
        spad_ref[pl.ds(P + r, 1), pl.ds(P, W)] = sflat_ref[pl.ds(0, 1), pl.ds(r * W, W)]
        mpad_ref[pl.ds(P + r, 1), pl.ds(P, W)] = mflat_ref[pl.ds(0, 1), pl.ds(r * W, W)]

    _row_loop(H, copy_in)

    # 2) KxK conv: scalar weights hoisted out of the tap loops (no re-broadcast),
    #    one lane shift per kx, sublane-only slices per ky.
    w_s = [w_ref[t] for t in range(K * K)]          # mean branch (1/C folded in)
    w_m = [w_ref[K * K + t] for t in range(K * K)]  # max branch
    sum_p = spad_ref[...]
    max_p = mpad_ref[...]
    acc = jnp.zeros((H, W), jnp.float32)
    for kx in range(K):
        s_kx = sum_p[:, kx:kx + W]
        m_kx = max_p[:, kx:kx + W]
        for ky in range(K):
            t = ky * K + kx
            acc = acc + w_s[t] * s_kx[ky:ky + H, :] + w_m[t] * m_kx[ky:ky + H, :]

    sig = jax.nn.sigmoid(acc)                        # (H, W) f32

    # 3) Flatten (H, W) -> (1, HW) via the padded scratch (sum map no longer needed).
    spad_ref[pl.ds(P, H), pl.ds(P, W)] = sig

    def copy_out(r):
        sflat_ref[pl.ds(0, 1), pl.ds(r * W, W)] = spad_ref[pl.ds(P + r, 1), pl.ds(P, W)]

    _row_loop(H, copy_out)


# ---------------------------------------------------------------------------
# Fused single-pass kernel: reduce + conv + sigmoid + gate for one image
# ---------------------------------------------------------------------------
def _fused_kernel(x_ref, w_ref, o_ref, sflat_ref, mflat_ref, spad_ref, mpad_ref,
                  *, H, W, K):
    xt = x_ref[0]                                                     # (C, HW), x.dtype
    sflat_ref[...] = jnp.sum(xt, axis=0, keepdims=True, dtype=jnp.float32)
    mflat_ref[...] = jnp.max(xt, axis=0, keepdims=True).astype(jnp.float32)

    _conv_sigmoid_flat(w_ref, sflat_ref, mflat_ref, spad_ref, mpad_ref, H=H, W=W, K=K)

    gate = sflat_ref[...].astype(o_ref.dtype)                         # (1, HW)
    o_ref[...] = (xt * gate).astype(o_ref.dtype)[None]


# ---------------------------------------------------------------------------
# Pass A (two-pass path): channel-tiled reduction + conv + sigmoid -> (N,1,HW)
# ---------------------------------------------------------------------------
def _attn_pass_kernel(x_ref, w_ref, attn_ref, sflat_ref, mflat_ref, spad_ref, mpad_ref,
                      *, C, H, W, K, tc, masked):
    c = pl.program_id(1)
    nc = pl.num_programs(1)

    xt = x_ref[0]                                                     # (tc, HW), x.dtype
    if masked:
        ch = c * tc + lax.broadcasted_iota(jnp.int32, (tc, 1), 0)
        valid = ch < C
        xs = jnp.where(valid, xt, jnp.array(0, xt.dtype))
        xm = jnp.where(valid, xt, jnp.array(-jnp.inf, xt.dtype))
    else:
        xs = xm = xt
    psum = jnp.sum(xs, axis=0, keepdims=True, dtype=jnp.float32)      # (1, HW)
    pmax = jnp.max(xm, axis=0, keepdims=True).astype(jnp.float32)     # (1, HW)

    @pl.when(c == 0)
    def _init():
        sflat_ref[...] = psum
        mflat_ref[...] = pmax

    @pl.when(c > 0)
    def _accum():
        sflat_ref[...] = sflat_ref[...] + psum
        mflat_ref[...] = jnp.maximum(mflat_ref[...], pmax)

    @pl.when(c == nc - 1)
    def _finalize():
        _conv_sigmoid_flat(w_ref, sflat_ref, mflat_ref, spad_ref, mpad_ref,
                           H=H, W=W, K=K)
        attn_ref[...] = sflat_ref[...][None].astype(attn_ref.dtype)


# ---------------------------------------------------------------------------
# Pass B (two-pass path): lane-dense elementwise gate, tiled over C and HW
# ---------------------------------------------------------------------------
def _gate_kernel(x_ref, a_ref, o_ref):
    # x_ref: (1, tc, thw); a_ref: (1, 1, thw); o_ref: (1, tc, thw)
    o_ref[...] = x_ref[...] * a_ref[...].astype(o_ref.dtype)


# ---------------------------------------------------------------------------
# Wrapper
# ---------------------------------------------------------------------------
def spatial_attention(x, conv_weight, kernel_size=7, *,
                      fuse=None, reduce_tile=None, gate_tile=None,
                      gate_hw_tile=None, block_budget=None):
    """x: (N, C, H, W); conv_weight: (1, 2, K, K) as in nn.Conv2d(2, 1, K, bias=False)."""
    assert kernel_size in (3, 7), "kernel size must be 3 or 7"
    N, C, H, W = x.shape
    K = kernel_size
    P = K // 2
    assert conv_weight.shape == (1, 2, K, K)
    HW = H * W
    itemsize = jnp.dtype(x.dtype).itemsize
    sub = _sublane_granule(x.dtype)

    vmem_limit, default_budget = _chip_budgets()
    budget = int(block_budget) if block_budget else default_budget

    # Fold the 1/C of the channel mean into the mean-branch conv weights so the
    # kernels only ever need a channel *sum*.
    w = conv_weight.astype(jnp.float32) * jnp.array(
        [1.0 / C, 1.0], jnp.float32)[None, :, None, None]
    w_flat = w.reshape(-1)                       # (2*K*K,) SMEM scalars

    xr = x.reshape(N, C, HW)                     # lane-dense view (free reshape)
    attn_dtype = x.dtype

    Hp, Wp = H + 2 * P, W + 2 * P
    scratch = [
        pltpu.VMEM((1, HW), jnp.float32),        # flat channel-sum acc / flat attn
        pltpu.VMEM((1, HW), jnp.float32),        # flat channel-max acc
        pltpu.VMEM((Hp, Wp), jnp.float32),       # zero-padded sum map (conv input)
        pltpu.VMEM((Hp, Wp), jnp.float32),       # zero-padded max map (conv input)
    ]
    # scratch bytes (account for (8,128) tile padding of the allocations)
    scratch_bytes = 4 * (2 * _round_up(Hp, 8) * _round_up(Wp, 128)
                         + 2 * 8 * _round_up(HW, 128))

    if fuse is None:
        # in + out blocks are each double-buffered -> ~4x the per-image slab.
        fuse = (4 * C * HW * itemsize + scratch_bytes) <= (2 * vmem_limit) // 3

    if fuse:
        out = pl.pallas_call(
            functools.partial(_fused_kernel, H=H, W=W, K=K),
            out_shape=jax.ShapeDtypeStruct((N, C, HW), x.dtype),
            grid=(N,),
            in_specs=[
                pl.BlockSpec((1, C, HW), lambda n: (n, 0, 0)),
                pl.BlockSpec(memory_space=pltpu.MemorySpace.SMEM),
            ],
            out_specs=pl.BlockSpec((1, C, HW), lambda n: (n, 0, 0)),
            scratch_shapes=scratch,
            compiler_params=pltpu.CompilerParams(
                dimension_semantics=("parallel",),
                vmem_limit_bytes=vmem_limit),
        )(xr, w_flat)
        return out.reshape(N, C, H, W)

    # ---------------- two-pass fallback ----------------
    # Pass A: channel-tiled reduction (trailing "arbitrary" axis) + conv + sigmoid.
    tc_a = min(reduce_tile, C) if reduce_tile else _pick_reduce_tile(C, HW, itemsize, budget, sub)
    masked = (C % tc_a) != 0

    attn = pl.pallas_call(
        functools.partial(_attn_pass_kernel, C=C, H=H, W=W, K=K, tc=tc_a, masked=masked),
        out_shape=jax.ShapeDtypeStruct((N, 1, HW), attn_dtype),
        grid=(N, pl.cdiv(C, tc_a)),
        in_specs=[
            pl.BlockSpec((1, tc_a, HW), lambda n, c: (n, c, 0)),
            pl.BlockSpec(memory_space=pltpu.MemorySpace.SMEM),
        ],
        out_specs=pl.BlockSpec((1, 1, HW), lambda n, c: (n, 0, 0)),
        scratch_shapes=scratch,
        compiler_params=pltpu.CompilerParams(
            dimension_semantics=("parallel", "arbitrary"),
            vmem_limit_bytes=vmem_limit),
    )(xr, w_flat)

    # Pass B: lane-dense gate, tiled over C and HW (bounds VMEM on big images).
    tc_b, thw = _pick_gate_tiles(C, HW, itemsize, budget, sub)
    if gate_tile:
        tc_b = min(gate_tile, C)
    if gate_hw_tile:
        thw = min(gate_hw_tile, HW)

    out = pl.pallas_call(
        _gate_kernel,
        out_shape=jax.ShapeDtypeStruct((N, C, HW), x.dtype),
        grid=(N, pl.cdiv(C, tc_b), pl.cdiv(HW, thw)),
        in_specs=[
            pl.BlockSpec((1, tc_b, thw), lambda n, c, h: (n, c, h)),
            pl.BlockSpec((1, 1, thw), lambda n, c, h: (n, 0, h)),
        ],
        out_specs=pl.BlockSpec((1, tc_b, thw), lambda n, c, h: (n, c, h)),
        compiler_params=pltpu.CompilerParams(
            dimension_semantics=("parallel", "parallel", "parallel"),
            vmem_limit_bytes=vmem_limit),
    )(xr, attn)
    return out.reshape(N, C, H, W)


def spatial_attention_reference(x, conv_weight):
    """Pure-JAX reference matching the PyTorch forward exactly."""
    mean = jnp.mean(x, axis=1, keepdims=True)
    mx = jnp.max(x, axis=1, keepdims=True)
    cat = jnp.concatenate([mean, mx], axis=1)
    P = conv_weight.shape[-1] // 2
    conv = lax.conv_general_dilated(
        cat, conv_weight, window_strides=(1, 1),
        padding=((P, P), (P, P)),
        dimension_numbers=("NCHW", "OIHW", "NCHW"))
    return x * jax.nn.sigmoid(conv)


if __name__ == "__main__":
    key = jax.random.PRNGKey(0)
    k1, k2, k3, k4 = jax.random.split(key, 4)

    # --- Test 1: small f32, fused single-pass path, K=7 --------------------
    N, C, H, W = 2, 4, 16, 16
    K = 7
    x = jax.random.normal(k1, (N, C, H, W), dtype=jnp.float32)
    conv_w = 0.1 * jax.random.normal(k2, (1, 2, K, K), dtype=jnp.float32)
    out = jax.block_until_ready(spatial_attention(x, conv_w, kernel_size=K))
    ref = jax.block_until_ready(spatial_attention_reference(x, conv_w))
    np.testing.assert_allclose(np.asarray(out), np.asarray(ref), rtol=1e-5, atol=1e-5)

    # --- Test 2: two-pass path, K=3, ragged C (tail masking) + HW tiling ---
    N2, C2, H2, W2 = 2, 20, 12, 12
    K2 = 3
    x2 = jax.random.normal(k3, (N2, C2, H2, W2), dtype=jnp.float32)
    conv_w2 = 0.1 * jax.random.normal(k4, (1, 2, K2, K2), dtype=jnp.float32)
    out2 = jax.block_until_ready(spatial_attention(
        x2, conv_w2, kernel_size=K2, fuse=False,
        reduce_tile=8, gate_tile=8, gate_hw_tile=128))
    ref2 = jax.block_until_ready(spatial_attention_reference(x2, conv_w2))
    np.testing.assert_allclose(np.asarray(out2), np.asarray(ref2), rtol=1e-5, atol=1e-5)

    # --- Test 3: bf16 fused path (attn stored/applied in bf16) -------------
    xb = x.astype(jnp.bfloat16)
    outb = jax.block_until_ready(spatial_attention(xb, conv_w, kernel_size=K))
    refb = jax.block_until_ready(
        spatial_attention_reference(xb.astype(jnp.float32), conv_w))
    np.testing.assert_allclose(np.asarray(jnp.asarray(outb, jnp.float32)),
                               np.asarray(refb), rtol=5e-2, atol=5e-2)

    print("KERNEL_OK")
</pallas_src>

<mosaic_0001>
module attributes {stable_mosaic.version = 11 : i64} {
  func.func @_fused_kernel(%arg0: i32, %arg1: memref<1x4x256xf32, #tpu.memory_space<vmem>>, %arg2: memref<98xf32, #tpu.memory_space<smem>>, %arg3: memref<1x4x256xf32, #tpu.memory_space<vmem>>, %arg4: memref<1x256xf32, #tpu.memory_space<vmem>>, %arg5: memref<1x256xf32, #tpu.memory_space<vmem>>, %arg6: memref<22x22xf32, #tpu.memory_space<vmem>>, %arg7: memref<22x22xf32, #tpu.memory_space<vmem>>) attributes {dimension_semantics = [#tpu.dimension_semantics<parallel>], iteration_bounds = array<i64: 2>, scalar_prefetch = 0 : i64, scratch_operands = 4 : i64, tpu.core_type = #tpu.core_type<tc>, window_params = [{transform_indices = @transform_0, window_bounds = array<i64: 1, 4, 256>}, {transform_indices = @transform_1, window_bounds = array<i64: 98>}, {transform_indices = @transform_2, window_bounds = array<i64: 1, 4, 256>}]} {
    %c0 = arith.constant 0 : index
    %c0_0 = arith.constant 0 : index
    %c0_1 = arith.constant 0 : index
    %0 = vector.load %arg1[%c0, %c0_0, %c0_1] : memref<1x4x256xf32, #tpu.memory_space<vmem>>, vector<1x4x256xf32>
    %1 = vector.shape_cast %0 : vector<1x4x256xf32> to vector<4x256xf32>
    %cst = arith.constant dense<0.000000e+00> : vector<256xf32>
    %2 = vector.multi_reduction <add>, %1, %cst [0] : vector<4x256xf32> to vector<256xf32>
    %3 = vector.shape_cast %2 : vector<256xf32> to vector<1x256xf32>
    %c0_2 = arith.constant 0 : index
    %c0_3 = arith.constant 0 : index
    %4 = vector.load %arg4[%c0_2, %c0_3] : memref<1x256xf32, #tpu.memory_space<vmem>>, vector<1x256xf32>
    tpu.vector_store %arg4[%c0_2, %c0_3], %3 {strides = array<i32>} : memref<1x256xf32, #tpu.memory_space<vmem>>, vector<1x256xf32>,
    %cst_4 = arith.constant dense<0xFF800000> : vector<256xf32>
    %5 = vector.multi_reduction <maximumf>, %1, %cst_4 [0] : vector<4x256xf32> to vector<256xf32>
    %6 = vector.shape_cast %5 : vector<256xf32> to vector<1x256xf32>
    %c0_5 = arith.constant 0 : index
    %c0_6 = arith.constant 0 : index
    %7 = vector.load %arg5[%c0_5, %c0_6] : memref<1x256xf32, #tpu.memory_space<vmem>>, vector<1x256xf32>
    tpu.vector_store %arg5[%c0_5, %c0_6], %6 {strides = array<i32>} : memref<1x256xf32, #tpu.memory_space<vmem>>, vector<1x256xf32>,
    %cst_7 = arith.constant 0.000000e+00 : f32
    %8 = vector.broadcast %cst_7 : f32 to vector<22x22xf32>
    %c0_8 = arith.constant 0 : index
    %c0_9 = arith.constant 0 : index
    %9 = vector.load %arg6[%c0_8, %c0_9] : memref<22x22xf32, #tpu.memory_space<vmem>>, vector<22x22xf32>
    tpu.vector_store %arg6[%c0_8, %c0_9], %8 {strides = array<i32>} : memref<22x22xf32, #tpu.memory_space<vmem>>, vector<22x22xf32>,
    %cst_10 = arith.constant 0.000000e+00 : f32
    %10 = vector.broadcast %cst_10 : f32 to vector<22x22xf32>
    %c0_11 = arith.constant 0 : index
    %c0_12 = arith.constant 0 : index
    %11 = vector.load %arg7[%c0_11, %c0_12] : memref<22x22xf32, #tpu.memory_space<vmem>>, vector<22x22xf32>
    tpu.vector_store %arg7[%c0_11, %c0_12], %10 {strides = array<i32>} : memref<22x22xf32, #tpu.memory_space<vmem>>, vector<22x22xf32>,
    %c0_13 = arith.constant 0 : index
    %c0_14 = arith.constant 0 : index
    %12 = vector.load %arg4[%c0_13, %c0_14] : memref<1x256xf32, #tpu.memory_space<vmem>>, vector<1x16xf32>
    %c3 = arith.constant 3 : index
    %c3_15 = arith.constant 3 : index
    %13 = vector.load %arg6[%c3, %c3_15] : memref<22x22xf32, #tpu.memory_space<vmem>>, vector<1x16xf32>
    tpu.vector_store %arg6[%c3, %c3_15], %12 {strides = array<i32>} : memref<22x22xf32, #tpu.memory_space<vmem>>, vector<1x16xf32>,
    %c0_16 = arith.constant 0 : index
    %c0_17 = arith.constant 0 : index
    %14 = vector.load %arg5[%c0_16, %c0_17] : memref<1x256xf32, #tpu.memory_space<vmem>>, vector<1x16xf32>
    %c3_18 = arith.constant 3 : index
    %c3_19 = arith.constant 3 : index
    %15 = vector.load %arg7[%c3_18, %c3_19] : memref<22x22xf32, #tpu.memory_space<vmem>>, vector<1x16xf32>
    tpu.vector_store %arg7[%c3_18, %c3_19], %14 {strides = array<i32>} : memref<22x22xf32, #tpu.memory_space<vmem>>, vector<1x16xf32>,
    %c0_20 = arith.constant 0 : index
    %c16 = arith.constant 16 : index
    %16 = vector.load %arg4[%c0_20, %c16] : memref<1x256xf32, #tpu.memory_space<vmem>>, vector<1x16xf32>
    %c4 = arith.constant 4 : index
    %c3_21 = arith.constant 3 : index
    %17 = vector.load %arg6[%c4, %c3_21] : memref<22x22xf32, #tpu.memory_space<vmem>>, vector<1x16xf32>
    tpu.vector_store %arg6[%c4, %c3_21], %16 {strides = array<i32>} : memref<22x22xf32, #tpu.memory_space<vmem>>, vector<1x16xf32>,
    %c0_22 = arith.constant 0 : index
    %c16_23 = arith.constant 16 : index
    %18 = vector.load %arg5[%c0_22, %c16_23] : memref<1x256xf32, #tpu.memory_space<vmem>>, vector<1x16xf32>
    %c4_24 = arith.constant 4 : index
    %c3_25 = arith.constant 3 : index
    %19 = vector.load %arg7[%c4_24, %c3_25] : memref<22x22xf32, #tpu.memory_space<vmem>>, vector<1x16xf32>
    tpu.vector_store %arg7[%c4_24, %c3_25], %18 {strides = array<i32>} : memref<22x22xf32, #tpu.memory_space<vmem>>, vector<1x16xf32>,
    %c0_26 = arith.constant 0 : index
    %c32 = arith.constant 32 : index
    %20 = vector.load %arg4[%c0_26, %c32] : memref<1x256xf32, #tpu.memory_space<vmem>>, vector<1x16xf32>
    %c5 = arith.constant 5 : index
    %c3_27 = arith.constant 3 : index
    %21 = vector.load %arg6[%c5, %c3_27] : memref<22x22xf32, #tpu.memory_space<vmem>>, vector<1x16xf32>
    tpu.vector_store %arg6[%c5, %c3_27], %20 {strides = array<i32>} : memref<22x22xf32, #tpu.memory_space<vmem>>, vector<1x16xf32>,
    %c0_28 = arith.constant 0 : index
    %c32_29 = arith.constant 32 : index
    %22 = vector.load %arg5[%c0_28, %c32_29] : memref<1x256xf32, #tpu.memory_space<vmem>>, vector<1x16xf32>
    %c5_30 = arith.constant 5 : index
    %c3_31 = arith.constant 3 : index
    %23 = vector.load %arg7[%c5_30, %c3_31] : memref<22x22xf32, #tpu.memory_space<vmem>>, vector<1x16xf32>
    tpu.vector_store %arg7[%c5_30, %c3_31], %22 {strides = array<i32>} : memref<22x22xf32, #tpu.memory_space<vmem>>, vector<1x16xf32>,
    %c0_32 = arith.constant 0 : index
    %c48 = arith.constant 48 : index
    %24 = vector.load %arg4[%c0_32, %c48] : memref<1x256xf32, #tpu.memory_space<vmem>>, vector<1x16xf32>
    %c6 = arith.constant 6 : index
    %c3_33 = arith.constant 3 : index
    %25 = vector.load %arg6[%c6, %c3_33] : memref<22x22xf32, #tpu.memory_space<vmem>>, vector<1x16xf32>
    tpu.vector_store %arg6[%c6, %c3_33], %24 {strides = array<i32>} : memref<22x22xf32, #tpu.memory_space<vmem>>, vector<1x16xf32>,
    %c0_34 = arith.constant 0 : index
    %c48_35 = arith.constant 48 : index
    %26 = vector.load %arg5[%c0_34, %c48_35] : memref<1x256xf32, #tpu.memory_space<vmem>>, vector<1x16xf32>
    %c6_36 = arith.constant 6 : index
    %c3_37 = arith.constant 3 : index
    %27 = vector.load %arg7[%c6_36, %c3_37] : memref<22x22xf32, #tpu.memory_space<vmem>>, vector<1x16xf32>
    tpu.vector_store %arg7[%c6_36, %c3_37], %26 {strides = array<i32>} : memref<22x22xf32, #tpu.memory_space<vmem>>, vector<1x16xf32>,
    %c0_38 = arith.constant 0 : index
    %c64 = arith.constant 64 : index
    %28 = vector.load %arg4[%c0_38, %c64] : memref<1x256xf32, #tpu.memory_space<vmem>>, vector<1x16xf32>
    %c7 = arith.constant 7 : index
    %c3_39 = arith.constant 3 : index
    %29 = vector.load %arg6[%c7, %c3_39] : memref<22x22xf32, #tpu.memory_space<vmem>>, vector<1x16xf32>
    tpu.vector_store %arg6[%c7, %c3_39], %28 {strides = array<i32>} : memref<22x22xf32, #tpu.memory_space<vmem>>, vector<1x16xf32>,
    %c0_40 = arith.constant 0 : index
    %c64_41 = arith.constant 64 : index
    %30 = vector.load %arg5[%c0_40, %c64_41] : memref<1x256xf32, #tpu.memory_space<vmem>>, vector<1x16xf32>
    %c7_42 = arith.constant 7 : index
    %c3_43 = arith.constant 3 : index
    %31 = vector.load %arg7[%c7_42, %c3_43] : memref<22x22xf32, #tpu.memory_space<vmem>>, vector<1x16xf32>
    tpu.vector_store %arg7[%c7_42, %c3_43], %30 {strides = array<i32>} : memref<22x22xf32, #tpu.memory_space<vmem>>, vector<1x16xf32>,
    %c0_44 = arith.constant 0 : index
    %c80 = arith.constant 80 : index
    %32 = vector.load %arg4[%c0_44, %c80] : memref<1x256xf32, #tpu.memory_space<vmem>>, vector<1x16xf32>
    %c8 = arith.constant 8 : index
    %c3_45 = arith.constant 3 : index
    %33 = vector.load %arg6[%c8, %c3_45] : memref<22x22xf32, #tpu.memory_space<vmem>>, vector<1x16xf32>
    tpu.vector_store %arg6[%c8, %c3_45], %32 {strides = array<i32>} : memref<22x22xf32, #tpu.memory_space<vmem>>, vector<1x16xf32>,
    %c0_46 = arith.constant 0 : index
    %c80_47 = arith.constant 80 : index
    %34 = vector.load %arg5[%c0_46, %c80_47] : memref<1x256xf32, #tpu.memory_space<vmem>>, vector<1x16xf32>
    %c8_48 = arith.constant 8 : index
    %c3_49 = arith.constant 3 : index
    %35 = vector.load %arg7[%c8_48, %c3_49] : memref<22x22xf32, #tpu.memory_space<vmem>>, vector<1x16xf32>
    tpu.vector_store %arg7[%c8_48, %c3_49], %34 {strides = array<i32>} : memref<22x22xf32, #tpu.memory_space<vmem>>, vector<1x16xf32>,
    %c0_50 = arith.constant 0 : index
    %c96 = arith.constant 96 : index
    %36 = vector.load %arg4[%c0_50, %c96] : memref<1x256xf32, #tpu.memory_space<vmem>>, vector<1x16xf32>
    %c9 = arith.constant 9 : index
    %c3_51 = arith.constant 3 : index
    %37 = vector.load %arg6[%c9, %c3_51] : memref<22x22xf32, #tpu.memory_space<vmem>>, vector<1x16xf32>
    tpu.vector_store %arg6[%c9, %c3_51], %36 {strides = array<i32>} : memref<22x22xf32, #tpu.memory_space<vmem>>, vector<1x16xf32>,
    %c0_52 = arith.constant 0 : index
    %c96_53 = arith.constant 96 : index
    %38 = vector.load %arg5[%c0_52, %c96_53] : memref<1x256xf32, #tpu.memory_space<vmem>>, vector<1x16xf32>
    %c9_54 = arith.constant 9 : index
    %c3_55 = arith.constant 3 : index
    %39 = vector.load %arg7[%c9_54, %c3_55] : memref<22x22xf32, #tpu.memory_space<vmem>>, vector<1x16xf32>
    tpu.vector_store %arg7[%c9_54, %c3_55], %38 {strides = array<i32>} : memref<22x22xf32, #tpu.memory_space<vmem>>, vector<1x16xf32>,
    %c0_56 = arith.constant 0 : index
    %c112 = arith.constant 112 : index
    %40 = vector.load %arg4[%c0_56, %c112] : memref<1x256xf32, #tpu.memory_space<vmem>>, vector<1x16xf32>
    %c10 = arith.constant 10 : index
    %c3_57 = arith.constant 3 : index
    %41 = vector.load %arg6[%c10, %c3_57] : memref<22x22xf32, #tpu.memory_space<vmem>>, vector<1x16xf32>
    tpu.vector_store %arg6[%c10, %c3_57], %40 {strides = array<i32>} : memref<22x22xf32, #tpu.memory_space<vmem>>, vector<1x16xf32>,
    %c0_58 = arith.constant 0 : index
    %c112_59 = arith.constant 112 : index
    %42 = vector.load %arg5[%c0_58, %c112_59] : memref<1x256xf32, #tpu.memory_space<vmem>>, vector<1x16xf32>
    %c10_60 = arith.constant 10 : index
    %c3_61 = arith.constant 3 : index
    %43 = vector.load %arg7[%c10_60, %c3_61] : memref<22x22xf32, #tpu.memory_space<vmem>>, vector<1x16xf32>
    tpu.vector_store %arg7[%c10_60, %c3_61], %42 {strides = array<i32>} : memref<22x22xf32, #tpu.memory_space<vmem>>, vector<1x16xf32>,
    %c0_62 = arith.constant 0 : index
    %c128 = arith.constant 128 : index
    %44 = vector.load %arg4[%c0_62, %c128] : memref<1x256xf32, #tpu.memory_space<vmem>>, vector<1x16xf32>
    %c11 = arith.constant 11 : index
    %c3_63 = arith.constant 3 : index
    %45 = vector.load %arg6[%c11, %c3_63] : memref<22x22xf32, #tpu.memory_space<vmem>>, vector<1x16xf32>
    tpu.vector_store %arg6[%c11, %c3_63], %44 {strides = array<i32>} : memref<22x22xf32, #tpu.memory_space<vmem>>, vector<1x16xf32>,
    %c0_64 = arith.constant 0 : index
    %c128_65 = arith.constant 128 : index
    %46 = vector.load %arg5[%c0_64, %c128_65] : memref<1x256xf32, #tpu.memory_space<vmem>>, vector<1x16xf32>
    %c11_66 = arith.constant 11 : index
    %c3_67 = arith.constant 3 : index
    %47 = vector.load %arg7[%c11_66, %c3_67] : memref<22x22xf32, #tpu.memory_space<vmem>>, vector<1x16xf32>
    tpu.vector_store %arg7[%c11_66, %c3_67], %46 {strides = array<i32>} : memref<22x22xf32, #tpu.memory_space<vmem>>, vector<1x16xf32>,
    %c0_68 = arith.constant 0 : index
    %c144 = arith.constant 144 : index
    %48 = vector.load %arg4[%c0_68, %c144] : memref<1x256xf32, #tpu.memory_space<vmem>>, vector<1x16xf32>
    %c12 = arith.constant 12 : index
    %c3_69 = arith.constant 3 : index
    %49 = vector.load %arg6[%c12, %c3_69] : memref<22x22xf32, #tpu.memory_space<vmem>>, vector<1x16xf32>
    tpu.vector_store %arg6[%c12, %c3_69], %48 {strides = array<i32>} : memref<22x22xf32, #tpu.memory_space<vmem>>, vector<1x16xf32>,
    %c0_70 = arith.constant 0 : index
    %c144_71 = arith.constant 144 : index
    %50 = vector.load %arg5[%c0_70, %c144_71] : memref<1x256xf32, #tpu.memory_space<vmem>>, vector<1x16xf32>
    %c12_72 = arith.constant 12 : index
    %c3_73 = arith.constant 3 : index
    %51 = vector.load %arg7[%c12_72, %c3_73] : memref<22x22xf32, #tpu.memory_space<vmem>>, vector<1x16xf32>
    tpu.vector_store %arg7[%c12_72, %c3_73], %50 {strides = array<i32>} : memref<22x22xf32, #tpu.memory_space<vmem>>, vector<1x16xf32>,
    %c0_74 = arith.constant 0 : index
    %c160 = arith.constant 160 : index
    %52 = vector.load %arg4[%c0_74, %c160] : memref<1x256xf32, #tpu.memory_space<vmem>>, vector<1x16xf32>
    %c13 = arith.constant 13 : index
    %c3_75 = arith.constant 3 : index
    %53 = vector.load %arg6[%c13, %c3_75] : memref<22x22xf32, #tpu.memory_space<vmem>>, vector<1x16xf32>
    tpu.vector_store %arg6[%c13, %c3_75], %52 {strides = array<i32>} : memref<22x22xf32, #tpu.memory_space<vmem>>, vector<1x16xf32>,
    %c0_76 = arith.constant 0 : index
    %c160_77 = arith.constant 160 : index
    %54 = vector.load %arg5[%c0_76, %c160_77] : memref<1x256xf32, #tpu.memory_space<vmem>>, vector<1x16xf32>
    %c13_78 = arith.constant 13 : index
    %c3_79 = arith.constant 3 : index
    %55 = vector.load %arg7[%c13_78, %c3_79] : memref<22x22xf32, #tpu.memory_space<vmem>>, vector<1x16xf32>
    tpu.vector_store %arg7[%c13_78, %c3_79], %54 {strides = array<i32>} : memref<22x22xf32, #tpu.memory_space<vmem>>, vector<1x16xf32>,
    %c0_80 = arith.constant 0 : index
    %c176 = arith.constant 176 : index
    %56 = vector.load %arg4[%c0_80, %c176] : memref<1x256xf32, #tpu.memory_space<vmem>>, vector<1x16xf32>
    %c14 = arith.constant 14 : index
    %c3_81 = arith.constant 3 : index
    %57 = vector.load %arg6[%c14, %c3_81] : memref<22x22xf32, #tpu.memory_space<vmem>>, vector<1x16xf32>
    tpu.vector_store %arg6[%c14, %c3_81], %56 {strides = array<i32>} : memref<22x22xf32, #tpu.memory_space<vmem>>, vector<1x16xf32>,
    %c0_82 = arith.constant 0 : index
    %c176_83 = arith.constant 176 : index
    %58 = vector.load %arg5[%c0_82, %c176_83] : memref<1x256xf32, #tpu.memory_space<vmem>>, vector<1x16xf32>
    %c14_84 = arith.constant 14 : index
    %c3_85 = arith.constant 3 : index
    %59 = vector.load %arg7[%c14_84, %c3_85] : memref<22x22xf32, #tpu.memory_space<vmem>>, vector<1x16xf32>
    tpu.vector_store %arg7[%c14_84, %c3_85], %58 {strides = array<i32>} : memref<22x22xf32, #tpu.memory_space<vmem>>, vector<1x16xf32>,
    %c0_86 = arith.constant 0 : index
    %c192 = arith.constant 192 : index
    %60 = vector.load %arg4[%c0_86, %c192] : memref<1x256xf32, #tpu.memory_space<vmem>>, vector<1x16xf32>
    %c15 = arith.constant 15 : index
    %c3_87 = arith.constant 3 : index
    %61 = vector.load %arg6[%c15, %c3_87] : memref<22x22xf32, #tpu.memory_space<vmem>>, vector<1x16xf32>
    tpu.vector_store %arg6[%c15, %c3_87], %60 {strides = array<i32>} : memref<22x22xf32, #tpu.memory_space<vmem>>, vector<1x16xf32>,
    %c0_88 = arith.constant 0 : index
    %c192_89 = arith.constant 192 : index
    %62 = vector.load %arg5[%c0_88, %c192_89] : memref<1x256xf32, #tpu.memory_space<vmem>>, vector<1x16xf32>
    %c15_90 = arith.constant 15 : index
    %c3_91 = arith.constant 3 : index
    %63 = vector.load %arg7[%c15_90, %c3_91] : memref<22x22xf32, #tpu.memory_space<vmem>>, vector<1x16xf32>
    tpu.vector_store %arg7[%c15_90, %c3_91], %62 {strides = array<i32>} : memref<22x22xf32, #tpu.memory_space<vmem>>, vector<1x16xf32>,
    %c0_92 = arith.constant 0 : index
    %c208 = arith.constant 208 : index
    %64 = vector.load %arg4[%c0_92, %c208] : memref<1x256xf32, #tpu.memory_space<vmem>>, vector<1x16xf32>
    %c16_93 = arith.constant 16 : index
    %c3_94 = arith.constant 3 : index
    %65 = vector.load %arg6[%c16_93, %c3_94] : memref<22x22xf32, #tpu.memory_space<vmem>>, vector<1x16xf32>
    tpu.vector_store %arg6[%c16_93, %c3_94], %64 {strides = array<i32>} : memref<22x22xf32, #tpu.memory_space<vmem>>, vector<1x16xf32>,
    %c0_95 = arith.constant 0 : index
    %c208_96 = arith.constant 208 : index
    %66 = vector.load %arg5[%c0_95, %c208_96] : memref<1x256xf32, #tpu.memory_space<vmem>>, vector<1x16xf32>
    %c16_97 = arith.constant 16 : index
    %c3_98 = arith.constant 3 : index
    %67 = vector.load %arg7[%c16_97, %c3_98] : memref<22x22xf32, #tpu.memory_space<vmem>>, vector<1x16xf32>
    tpu.vector_store %arg7[%c16_97, %c3_98], %66 {strides = array<i32>} : memref<22x22xf32, #tpu.memory_space<vmem>>, vector<1x16xf32>,
    %c0_99 = arith.constant 0 : index
    %c224 = arith.constant 224 : index
    %68 = vector.load %arg4[%c0_99, %c224] : memref<1x256xf32, #tpu.memory_space<vmem>>, vector<1x16xf32>
    %c17 = arith.constant 17 : index
    %c3_100 = arith.constant 3 : index
    %69 = vector.load %arg6[%c17, %c3_100] : memref<22x22xf32, #tpu.memory_space<vmem>>, vector<1x16xf32>
    tpu.vector_store %arg6[%c17, %c3_100], %68 {strides = array<i32>} : memref<22x22xf32, #tpu.memory_space<vmem>>, vector<1x16xf32>,
    %c0_101 = arith.constant 0 : index
    %c224_102 = arith.constant 224 : index
    %70 = vector.load %arg5[%c0_101, %c224_102] : memref<1x256xf32, #tpu.memory_space<vmem>>, vector<1x16xf32>
    %c17_103 = arith.constant 17 : index
    %c3_104 = arith.constant 3 : index
    %71 = vector.load %arg7[%c17_103, %c3_104] : memref<22x22xf32, #tpu.memory_space<vmem>>, vector<1x16xf32>
    tpu.vector_store %arg7[%c17_103, %c3_104], %70 {strides = array<i32>} : memref<22x22xf32, #tpu.memory_space<vmem>>, vector<1x16xf32>,
    %c0_105 = arith.constant 0 : index
    %c240 = arith.constant 240 : index
    %72 = vector.load %arg4[%c0_105, %c240] : memref<1x256xf32, #tpu.memory_space<vmem>>, vector<1x16xf32>
    %c18 = arith.constant 18 : index
    %c3_106 = arith.constant 3 : index
    %73 = vector.load %arg6[%c18, %c3_106] : memref<22x22xf32, #tpu.memory_space<vmem>>, vector<1x16xf32>
    tpu.vector_store %arg6[%c18, %c3_106], %72 {strides = array<i32>} : memref<22x22xf32, #tpu.memory_space<vmem>>, vector<1x16xf32>,
    %c0_107 = arith.constant 0 : index
    %c240_108 = arith.constant 240 : index
    %74 = vector.load %arg5[%c0_107, %c240_108] : memref<1x256xf32, #tpu.memory_space<vmem>>, vector<1x16xf32>
    %c18_109 = arith.constant 18 : index
    %c3_110 = arith.constant 3 : index
    %75 = vector.load %arg7[%c18_109, %c3_110] : memref<22x22xf32, #tpu.memory_space<vmem>>, vector<1x16xf32>
    tpu.vector_store %arg7[%c18_109, %c3_110], %74 {strides = array<i32>} : memref<22x22xf32, #tpu.memory_space<vmem>>, vector<1x16xf32>,
    %c0_111 = arith.constant 0 : index
    %76 = memref.load %arg2[%c0_111] : memref<98xf32, #tpu.memory_space<smem>>
    %c1 = arith.constant 1 : index
    %77 = memref.load %arg2[%c1] : memref<98xf32, #tpu.memory_space<smem>>
    %c2 = arith.constant 2 : index
    %78 = memref.load %arg2[%c2] : memref<98xf32, #tpu.memory_space<smem>>
    %c3_112 = arith.constant 3 : index
    %79 = memref.load %arg2[%c3_112] : memref<98xf32, #tpu.memory_space<smem>>
    %c4_113 = arith.constant 4 : index
    %80 = memref.load %arg2[%c4_113] : memref<98xf32, #tpu.memory_space<smem>>
    %c5_114 = arith.constant 5 : index
    %81 = memref.load %arg2[%c5_114] : memref<98xf32, #tpu.memory_space<smem>>
    %c6_115 = arith.constant 6 : index
    %82 = memref.load %arg2[%c6_115] : memref<98xf32, #tpu.memory_space<smem>>
    %c7_116 = arith.constant 7 : index
    %83 = memref.load %arg2[%c7_116] : memref<98xf32, #tpu.memory_space<smem>>
    %c8_117 = arith.constant 8 : index
    %84 = memref.load %arg2[%c8_117] : memref<98xf32, #tpu.memory_space<smem>>
    %c9_118 = arith.constant 9 : index
    %85 = memref.load %arg2[%c9_118] : memref<98xf32, #tpu.memory_space<smem>>
    %c10_119 = arith.constant 10 : index
    %86 = memref.load %arg2[%c10_119] : memref<98xf32, #tpu.memory_space<smem>>
    %c11_120 = arith.constant 11 : index
    %87 = memref.load %arg2[%c11_120] : memref<98xf32, #tpu.memory_space<smem>>
    %c12_121 = arith.constant 12 : index
    %88 = memref.load %arg2[%c12_121] : memref<98xf32, #tpu.memory_space<smem>>
    %c13_122 = arith.constant 13 : index
    %89 = memref.load %arg2[%c13_122] : memref<98xf32, #tpu.memory_space<smem>>
    %c14_123 = arith.constant 14 : index
    %90 = memref.load %arg2[%c14_123] : memref<98xf32, #tpu.memory_space<smem>>
    %c15_124 = arith.constant 15 : index
    %91 = memref.load %arg2[%c15_124] : memref<98xf32, #tpu.memory_space<smem>>
    %c16_125 = arith.constant 16 : index
    %92 = memref.load %arg2[%c16_125] : memref<98xf32, #tpu.memory_space<smem>>
    %c17_126 = arith.constant 17 : index
    %93 = memref.load %arg2[%c17_126] : memref<98xf32, #tpu.memory_space<smem>>
    %c18_127 = arith.constant 18 : index
    %94 = memref.load %arg2[%c18_127] : memref<98xf32, #tpu.memory_space<smem>>
    %c19 = arith.constant 19 : index
    %95 = memref.load %arg2[%c19] : memref<98xf32, #tpu.memory_space<smem>>
    %c20 = arith.constant 20 : index
    %96 = memref.load %arg2[%c20] : memref<98xf32, #tpu.memory_space<smem>>
    %c21 = arith.constant 21 : index
    %97 = memref.load %arg2[%c21] : memref<98xf32, #tpu.memory_space<smem>>
    %c22 = arith.constant 22 : index
    %98 = memref.load %arg2[%c22] : memref<98xf32, #tpu.memory_space<smem>>
    %c23 = arith.constant 23 : index
    %99 = memref.load %arg2[%c23] : memref<98xf32, #tpu.memory_space<smem>>
    %c24 = arith.constant 24 : index
    %100 = memref.load %arg2[%c24] : memref<98xf32, #tpu.memory_space<smem>>
    %c25 = arith.constant 25 : index
    %101 = memref.load %arg2[%c25] : memref<98xf32, #tpu.memory_space<smem>>
    %c26 = arith.constant 26 : index
    %102 = memref.load %arg2[%c26] : memref<98xf32, #tpu.memory_space<smem>>
    %c27 = arith.constant 27 : index
    %103 = memref.load %arg2[%c27] : memref<98xf32, #tpu.memory_space<smem>>
    %c28 = arith.constant 28 : index
    %104 = memref.load %arg2[%c28] : memref<98xf32, #tpu.memory_space<smem>>
    %c29 = arith.constant 29 : index
    %105 = memref.load %arg2[%c29] : memref<98xf32, #tpu.memory_space<smem>>
    %c30 = arith.constant 30 : index
    %106 = memref.load %arg2[%c30] : memref<98xf32, #tpu.memory_space<smem>>
    %c31 = arith.constant 31 : index
    %107 = memref.load %arg2[%c31] : memref<98xf32, #tpu.memory_space<smem>>
    %c32_128 = arith.constant 32 : index
    %108 = memref.load %arg2[%c32_128] : memref<98xf32, #tpu.memory_space<smem>>
    %c33 = arith.constant 33 : index
    %109 = memref.load %arg2[%c33] : memref<98xf32, #tpu.memory_space<smem>>
    %c34 = arith.constant 34 : index
    %110 = memref.load %arg2[%c34] : memref<98xf32, #tpu.memory_space<smem>>
    %c35 = arith.constant 35 : index
    %111 = memref.load %arg2[%c35] : memref<98xf32, #tpu.memory_space<smem>>
    %c36 = arith.constant 36 : index
    %112 = memref.load %arg2[%c36] : memref<98xf32, #tpu.memory_space<smem>>
    %c37 = arith.constant 37 : index
    %113 = memref.load %arg2[%c37] : memref<98xf32, #tpu.memory_space<smem>>
    %c38 = arith.constant 38 : index
    %114 = memref.load %arg2[%c38] : memref<98xf32, #tpu.memory_space<smem>>
    %c39 = arith.constant 39 : index
    %115 = memref.load %arg2[%c39] : memref<98xf32, #tpu.memory_space<smem>>
    %c40 = arith.constant 40 : index
    %116 = memref.load %arg2[%c40] : memref<98xf32, #tpu.memory_space<smem>>
    %c41 = arith.constant 41 : index
    %117 = memref.load %arg2[%c41] : memref<98xf32, #tpu.memory_space<smem>>
    %c42 = arith.constant 42 : index
    %118 = memref.load %arg2[%c42] : memref<98xf32, #tpu.memory_space<smem>>
    %c43 = arith.constant 43 : index
    %119 = memref.load %arg2[%c43] : memref<98xf32, #tpu.memory_space<smem>>
    %c44 = arith.constant 44 : index
    %120 = memref.load %arg2[%c44] : memref<98xf32, #tpu.memory_space<smem>>
    %c45 = arith.constant 45 : index
    %121 = memref.load %arg2[%c45] : memref<98xf32, #tpu.memory_space<smem>>
    %c46 = arith.constant 46 : index
    %122 = memref.load %arg2[%c46] : memref<98xf32, #tpu.memory_space<smem>>
    %c47 = arith.constant 47 : index
    %123 = memref.load %arg2[%c47] : memref<98xf32, #tpu.memory_space<smem>>
    %c48_129 = arith.constant 48 : index
    %124 = memref.load %arg2[%c48_129] : memref<98xf32, #tpu.memory_space<smem>>
    %c49 = arith.constant 49 : index
    %125 = memref.load %arg2[%c49] : memref<98xf32, #tpu.memory_space<smem>>
    %c50 = arith.constant 50 : index
    %126 = memref.load %arg2[%c50] : memref<98xf32, #tpu.memory_space<smem>>
    %c51 = arith.constant 51 : index
    %127 = memref.load %arg2[%c51] : memref<98xf32, #tpu.memory_space<smem>>
    %c52 = arith.constant 52 : index
    %128 = memref.load %arg2[%c52] : memref<98xf32, #tpu.memory_space<smem>>
    %c53 = arith.constant 53 : index
    %129 = memref.load %arg2[%c53] : memref<98xf32, #tpu.memory_space<smem>>
    %c54 = arith.constant 54 : index
    %130 = memref.load %arg2[%c54] : memref<98xf32, #tpu.memory_space<smem>>
    %c55 = arith.constant 55 : index
    %131 = memref.load %arg2[%c55] : memref<98xf32, #tpu.memory_space<smem>>
    %c56 = arith.constant 56 : index
    %132 = memref.load %arg2[%c56] : memref<98xf32, #tpu.memory_space<smem>>
    %c57 = arith.constant 57 : index
    %133 = memref.load %arg2[%c57] : memref<98xf32, #tpu.memory_space<smem>>
    %c58 = arith.constant 58 : index
    %134 = memref.load %arg2[%c58] : memref<98xf32, #tpu.memory_space<smem>>
    %c59 = arith.constant 59 : index
    %135 = memref.load %arg2[%c59] : memref<98xf32, #tpu.memory_space<smem>>
    %c60 = arith.constant 60 : index
    %136 = memref.load %arg2[%c60] : memref<98xf32, #tpu.memory_space<smem>>
    %c61 = arith.constant 61 : index
    %137 = memref.load %arg2[%c61] : memref<98xf32, #tpu.memory_space<smem>>
    %c62 = arith.constant 62 : index
    %138 = memref.load %arg2[%c62] : memref<98xf32, #tpu.memory_space<smem>>
    %c63 = arith.constant 63 : index
    %139 = memref.load %arg2[%c63] : memref<98xf32, #tpu.memory_space<smem>>
    %c64_130 = arith.constant 64 : index
    %140 = memref.load %arg2[%c64_130] : memref<98xf32, #tpu.memory_space<smem>>
    %c65 = arith.constant 65 : index
    %141 = memref.load %arg2[%c65] : memref<98xf32, #tpu.memory_space<smem>>
    %c66 = arith.constant 66 : index
    %142 = memref.load %arg2[%c66] : memref<98xf32, #tpu.memory_space<smem>>
    %c67 = arith.constant 67 : index
    %143 = memref.load %arg2[%c67] : memref<98xf32, #tpu.memory_space<smem>>
    %c68 = arith.constant 68 : index
    %144 = memref.load %arg2[%c68] : memref<98xf32, #tpu.memory_space<smem>>
    %c69 = arith.constant 69 : index
    %145 = memref.load %arg2[%c69] : memref<98xf32, #tpu.memory_space<smem>>
    %c70 = arith.constant 70 : index
    %146 = memref.load %arg2[%c70] : memref<98xf32, #tpu.memory_space<smem>>
    %c71 = arith.constant 71 : index
    %147 = memref.load %arg2[%c71] : memref<98xf32, #tpu.memory_space<smem>>
    %c72 = arith.constant 72 : index
    %148 = memref.load %arg2[%c72] : memref<98xf32, #tpu.memory_space<smem>>
    %c73 = arith.constant 73 : index
    %149 = memref.load %arg2[%c73] : memref<98xf32, #tpu.memory_space<smem>>
    %c74 = arith.constant 74 : index
    %150 = memref.load %arg2[%c74] : memref<98xf32, #tpu.memory_space<smem>>
    %c75 = arith.constant 75 : index
    %151 = memref.load %arg2[%c75] : memref<98xf32, #tpu.memory_space<smem>>
    %c76 = arith.constant 76 : index
    %152 = memref.load %arg2[%c76] : memref<98xf32, #tpu.memory_space<smem>>
    %c77 = arith.constant 77 : index
    %153 = memref.load %arg2[%c77] : memref<98xf32, #tpu.memory_space<smem>>
    %c78 = arith.constant 78 : index
    %154 = memref.load %arg2[%c78] : memref<98xf32, #tpu.memory_space<smem>>
    %c79 = arith.constant 79 : index
    %155 = memref.load %arg2[%c79] : memref<98xf32, #tpu.memory_space<smem>>
    %c80_131 = arith.constant 80 : index
    %156 = memref.load %arg2[%c80_131] : memref<98xf32, #tpu.memory_space<smem>>
    %c81 = arith.constant 81 : index
    %157 = memref.load %arg2[%c81] : memref<98xf32, #tpu.memory_space<smem>>
    %c82 = arith.constant 82 : index
    %158 = memref.load %arg2[%c82] : memref<98xf32, #tpu.memory_space<smem>>
    %c83 = arith.constant 83 : index
    %159 = memref.load %arg2[%c83] : memref<98xf32, #tpu.memory_space<smem>>
    %c84 = arith.constant 84 : index
    %160 = memref.load %arg2[%c84] : memref<98xf32, #tpu.memory_space<smem>>
    %c85 = arith.constant 85 : index
    %161 = memref.load %arg2[%c85] : memref<98xf32, #tpu.memory_space<smem>>
    %c86 = arith.constant 86 : index
    %162 = memref.load %arg2[%c86] : memref<98xf32, #tpu.memory_space<smem>>
    %c87 = arith.constant 87 : index
    %163 = memref.load %arg2[%c87] : memref<98xf32, #tpu.memory_space<smem>>
    %c88 = arith.constant 88 : index
    %164 = memref.load %arg2[%c88] : memref<98xf32, #tpu.memory_space<smem>>
    %c89 = arith.constant 89 : index
    %165 = memref.load %arg2[%c89] : memref<98xf32, #tpu.memory_space<smem>>
    %c90 = arith.constant 90 : index
    %166 = memref.load %arg2[%c90] : memref<98xf32, #tpu.memory_space<smem>>
    %c91 = arith.constant 91 : index
    %167 = memref.load %arg2[%c91] : memref<98xf32, #tpu.memory_space<smem>>
    %c92 = arith.constant 92 : index
    %168 = memref.load %arg2[%c92] : memref<98xf32, #tpu.memory_space<smem>>
    %c93 = arith.constant 93 : index
    %169 = memref.load %arg2[%c93] : memref<98xf32, #tpu.memory_space<smem>>
    %c94 = arith.constant 94 : index
    %170 = memref.load %arg2[%c94] : memref<98xf32, #tpu.memory_space<smem>>
    %c95 = arith.constant 95 : index
    %171 = memref.load %arg2[%c95] : memref<98xf32, #tpu.memory_space<smem>>
    %c96_132 = arith.constant 96 : index
    %172 = memref.load %arg2[%c96_132] : memref<98xf32, #tpu.memory_space<smem>>
    %c97 = arith.constant 97 : index
    %173 = memref.load %arg2[%c97] : memref<98xf32, #tpu.memory_space<smem>>
    %c0_133 = arith.constant 0 : index
    %c0_134 = arith.constant 0 : index
    %174 = vector.load %arg6[%c0_133, %c0_134] : memref<22x22xf32, #tpu.memory_space<vmem>>, vector<22x22xf32>
    %c0_135 = arith.constant 0 : index
    %c0_136 = arith.constant 0 : index
    %175 = vector.load %arg7[%c0_135, %c0_136] : memref<22x22xf32, #tpu.memory_space<vmem>>, vector<22x22xf32>
    %cst_137 = arith.constant 0.000000e+00 : f32
    %176 = vector.broadcast %cst_137 : f32 to vector<16x16xf32>
    %177 = vector.extract_strided_slice %174 {offsets = [0, 0], sizes = [22, 16], strides = [1, 1]} : vector<22x22xf32> to vector<22x16xf32>
    %178 = vector.extract_strided_slice %175 {offsets = [0, 0], sizes = [22, 16], strides = [1, 1]} : vector<22x22xf32> to vector<22x16xf32>
    %179 = vector.extract_strided_slice %177 {offsets = [0, 0], sizes = [16, 16], strides = [1, 1]} : vector<22x16xf32> to vector<16x16xf32>
    %180 = vector.broadcast %76 : f32 to vector<16x16xf32>
    %181 = arith.mulf %180, %179 : vector<16x16xf32>
    %182 = arith.addf %176, %181 : vector<16x16xf32>
    %183 = vector.extract_strided_slice %178 {offsets = [0, 0], sizes = [16, 16], strides = [1, 1]} : vector<22x16xf32> to vector<16x16xf32>
    %184 = vector.broadcast %125 : f32 to vector<16x16xf32>
    %185 = arith.mulf %184, %183 : vector<16x16xf32>
    %186 = arith.addf %182, %185 : vector<16x16xf32>
    %187 = vector.extract_strided_slice %177 {offsets = [1, 0], sizes = [16, 16], strides = [1, 1]} : vector<22x16xf32> to vector<16x16xf32>
    %188 = vector.broadcast %83 : f32 to vector<16x16xf32>
    %189 = arith.mulf %188, %187 : vector<16x16xf32>
    %190 = arith.addf %186, %189 : vector<16x16xf32>
    %191 = vector.extract_strided_slice %178 {offsets = [1, 0], sizes = [16, 16], strides = [1, 1]} : vector<22x16xf32> to vector<16x16xf32>
    %192 = vector.broadcast %132 : f32 to vector<16x16xf32>
    %193 = arith.mulf %192, %191 : vector<16x16xf32>
    %194 = arith.addf %190, %193 : vector<16x16xf32>
    %195 = vector.extract_strided_slice %177 {offsets = [2, 0], sizes = [16, 16], strides = [1, 1]} : vector<22x16xf32> to vector<16x16xf32>
    %196 = vector.broadcast %90 : f32 to vector<16x16xf32>
    %197 = arith.mulf %196, %195 : vector<16x16xf32>
    %198 = arith.addf %194, %197 : vector<16x16xf32>
    %199 = vector.extract_strided_slice %178 {offsets = [2, 0], sizes = [16, 16], strides = [1, 1]} : vector<22x16xf32> to vector<16x16xf32>
    %200 = vector.broadcast %139 : f32 to vector<16x16xf32>
    %201 = arith.mulf %200, %199 : vector<16x16xf32>
    %202 = arith.addf %198, %201 : vector<16x16xf32>
    %203 = vector.extract_strided_slice %177 {offsets = [3, 0], sizes = [16, 16], strides = [1, 1]} : vector<22x16xf32> to vector<16x16xf32>
    %204 = vector.broadcast %97 : f32 to vector<16x16xf32>
    %205 = arith.mulf %204, %203 : vector<16x16xf32>
    %206 = arith.addf %202, %205 : vector<16x16xf32>
    %207 = vector.extract_strided_slice %178 {offsets = [3, 0], sizes = [16, 16], strides = [1, 1]} : vector<22x16xf32> to vector<16x16xf32>
    %208 = vector.broadcast %146 : f32 to vector<16x16xf32>
    %209 = arith.mulf %208, %207 : vector<16x16xf32>
    %210 = arith.addf %206, %209 : vector<16x16xf32>
    %211 = vector.extract_strided_slice %177 {offsets = [4, 0], sizes = [16, 16], strides = [1, 1]} : vector<22x16xf32> to vector<16x16xf32>
    %212 = vector.broadcast %104 : f32 to vector<16x16xf32>
    %213 = arith.mulf %212, %211 : vector<16x16xf32>
    %214 = arith.addf %210, %213 : vector<16x16xf32>
    %215 = vector.extract_strided_slice %178 {offsets = [4, 0], sizes = [16, 16], strides = [1, 1]} : vector<22x16xf32> to vector<16x16xf32>
    %216 = vector.broadcast %153 : f32 to vector<16x16xf32>
    %217 = arith.mulf %216, %215 : vector<16x16xf32>
    %218 = arith.addf %214, %217 : vector<16x16xf32>
    %219 = vector.extract_strided_slice %177 {offsets = [5, 0], sizes = [16, 16], strides = [1, 1]} : vector<22x16xf32> to vector<16x16xf32>
    %220 = vector.broadcast %111 : f32 to vector<16x16xf32>
    %221 = arith.mulf %220, %219 : vector<16x16xf32>
    %222 = arith.addf %218, %221 : vector<16x16xf32>
    %223 = vector.extract_strided_slice %178 {offsets = [5, 0], sizes = [16, 16], strides = [1, 1]} : vector<22x16xf32> to vector<16x16xf32>
    %224 = vector.broadcast %160 : f32 to vector<16x16xf32>
    %225 = arith.mulf %224, %223 : vector<16x16xf32>
    %226 = arith.addf %222, %225 : vector<16x16xf32>
    %227 = vector.extract_strided_slice %177 {offsets = [6, 0], sizes = [16, 16], strides = [1, 1]} : vector<22x16xf32> to vector<16x16xf32>
    %228 = vector.broadcast %118 : f32 to vector<16x16xf32>
    %229 = arith.mulf %228, %227 : vector<16x16xf32>
    %230 = arith.addf %226, %229 : vector<16x16xf32>
    %231 = vector.extract_strided_slice %178 {offsets = [6, 0], sizes = [16, 16], strides = [1, 1]} : vector<22x16xf32> to vector<16x16xf32>
    %232 = vector.broadcast %167 : f32 to vector<16x16xf32>
    %233 = arith.mulf %232, %231 : vector<16x16xf32>
    %234 = arith.addf %230, %233 : vector<16x16xf32>
    %235 = vector.extract_strided_slice %174 {offsets = [0, 1], sizes = [22, 16], strides = [1, 1]} : vector<22x22xf32> to vector<22x16xf32>
    %236 = vector.extract_strided_slice %175 {offsets = [0, 1], sizes = [22, 16], strides = [1, 1]} : vector<22x22xf32> to vector<22x16xf32>
    %237 = vector.extract_strided_slice %235 {offsets = [0, 0], sizes = [16, 16], strides = [1, 1]} : vector<22x16xf32> to vector<16x16xf32>
    %238 = vector.broadcast %77 : f32 to vector<16x16xf32>
    %239 = arith.mulf %238, %237 : vector<16x16xf32>
    %240 = arith.addf %234, %239 : vector<16x16xf32>
    %241 = vector.extract_strided_slice %236 {offsets = [0, 0], sizes = [16, 16], strides = [1, 1]} : vector<22x16xf32> to vector<16x16xf32>
    %242 = vector.broadcast %126 : f32 to vector<16x16xf32>
    %243 = arith.mulf %242, %241 : vector<16x16xf32>
    %244 = arith.addf %240, %243 : vector<16x16xf32>
    %245 = vector.extract_strided_slice %235 {offsets = [1, 0], sizes = [16, 16], strides = [1, 1]} : vector<22x16xf32> to vector<16x16xf32>
    %246 = vector.broadcast %84 : f32 to vector<16x16xf32>
    %247 = arith.mulf %246, %245 : vector<16x16xf32>
    %248 = arith.addf %244, %247 : vector<16x16xf32>
    %249 = vector.extract_strided_slice %236 {offsets = [1, 0], sizes = [16, 16], strides = [1, 1]} : vector<22x16xf32> to vector<16x16xf32>
    %250 = vector.broadcast %133 : f32 to vector<16x16xf32>
    %251 = arith.mulf %250, %249 : vector<16x16xf32>
    %252 = arith.addf %248, %251 : vector<16x16xf32>
    %253 = vector.extract_strided_slice %235 {offsets = [2, 0], sizes = [16, 16], strides = [1, 1]} : vector<22x16xf32> to vector<16x16xf32>
    %254 = vector.broadcast %91 : f32 to vector<16x16xf32>
    %255 = arith.mulf %254, %253 : vector<16x16xf32>
    %256 = arith.addf %252, %255 : vector<16x16xf32>
    %257 = vector.extract_strided_slice %236 {offsets = [2, 0], sizes = [16, 16], strides = [1, 1]} : vector<22x16xf32> to vector<16x16xf32>
    %258 = vector.broadcast %140 : f32 to vector<16x16xf32>
    %259 = arith.mulf %258, %257 : vector<16x16xf32>
    %260 = arith.addf %256, %259 : vector<16x16xf32>
    %261 = vector.extract_strided_slice %235 {offsets = [3, 0], sizes = [16, 16], strides = [1, 1]} : vector<22x16xf32> to vector<16x16xf32>
    %262 = vector.broadcast %98 : f32 to vector<16x16xf32>
    %263 = arith.mulf %262, %261 : vector<16x16xf32>
    %264 = arith.addf %260, %263 : vector<16x16xf32>
    %265 = vector.extract_strided_slice %236 {offsets = [3, 0], sizes = [16, 16], strides = [1, 1]} : vector<22x16xf32> to vector<16x16xf32>
    %266 = vector.broadcast %147 : f32 to vector<16x16xf32>
    %267 = arith.mulf %266, %265 : vector<16x16xf32>
    %268 = arith.addf %264, %267 : vector<16x16xf32>
    %269 = vector.extract_strided_slice %235 {offsets = [4, 0], sizes = [16, 16], strides = [1, 1]} : vector<22x16xf32> to vector<16x16xf32>
    %270 = vector.broadcast %105 : f32 to vector<16x16xf32>
    %271 = arith.mulf %270, %269 : vector<16x16xf32>
    %272 = arith.addf %268, %271 : vector<16x16xf32>
    %273 = vector.extract_strided_slice %236 {offsets = [4, 0], sizes = [16, 16], strides = [1, 1]} : vector<22x16xf32> to vector<16x16xf32>
    %274 = vector.broadcast %154 : f32 to vector<16x16xf32>
    %275 = arith.mulf %274, %273 : vector<16x16xf32>
    %276 = arith.addf %272, %275 : vector<16x16xf32>
    %277 = vector.extract_strided_slice %235 {offsets = [5, 0], sizes = [16, 16], strides = [1, 1]} : vector<22x16xf32> to vector<16x16xf32>
    %278 = vector.broadcast %112 : f32 to vector<16x16xf32>
    %279 = arith.mulf %278, %277 : vector<16x16xf32>
    %280 = arith.addf %276, %279 : vector<16x16xf32>
    %281 = vector.extract_strided_slice %236 {offsets = [5, 0], sizes = [16, 16], strides = [1, 1]} : vector<22x16xf32> to vector<16x16xf32>
    %282 = vector.broadcast %161 : f32 to vector<16x16xf32>
    %283 = arith.mulf %282, %281 : vector<16x16xf32>
    %284 = arith.addf %280, %283 : vector<16x16xf32>
    %285 = vector.extract_strided_slice %235 {offsets = [6, 0], sizes = [16, 16], strides = [1, 1]} : vector<22x16xf32> to vector<16x16xf32>
    %286 = vector.broadcast %119 : f32 to vector<16x16xf32>
    %287 = arith.mulf %286, %285 : vector<16x16xf32>
    %288 = arith.addf %284, %287 : vector<16x16xf32>
    %289 = vector.extract_strided_slice %236 {offsets = [6, 0], sizes = [16, 16], strides = [1, 1]} : vector<22x16xf32> to vector<16x16xf32>
    %290 = vector.broadcast %168 : f32 to vector<16x16xf32>
    %291 = arith.mulf %290, %289 : vector<16x16xf32>
    %292 = arith.addf %288, %291 : vector<16x16xf32>
    %293 = vector.extract_strided_slice %174 {offsets = [0, 2], sizes = [22, 16], strides = [1, 1]} : vector<22x22xf32> to vector<22x16xf32>
    %294 = vector.extract_strided_slice %175 {offsets = [0, 2], sizes = [22, 16], strides = [1, 1]} : vector<22x22xf32> to vector<22x16xf32>
    %295 = vector.extract_strided_slice %293 {offsets = [0, 0], sizes = [16, 16], strides = [1, 1]} : vector<22x16xf32> to vector<16x16xf32>
    %296 = vector.broadcast %78 : f32 to vector<16x16xf32>
    %297 = arith.mulf %296, %295 : vector<16x16xf32>
    %298 = arith.addf %292, %297 : vector<16x16xf32>
    %299 = vector.extract_strided_slice %294 {offsets = [0, 0], sizes = [16, 16], strides = [1, 1]} : vector<22x16xf32> to vector<16x16xf32>
    %300 = vector.broadcast %127 : f32 to vector<16x16xf32>
    %301 = arith.mulf %300, %299 : vector<16x16xf32>
    %302 = arith.addf %298, %301 : vector<16x16xf32>
    %303 = vector.extract_strided_slice %293 {offsets = [1, 0], sizes = [16, 16], strides = [1, 1]} : vector<22x16xf32> to vector<16x16xf32>
    %304 = vector.broadcast %85 : f32 to vector<16x16xf32>
    %305 = arith.mulf %304, %303 : vector<16x16xf32>
    %306 = arith.addf %302, %305 : vector<16x16xf32>
    %307 = vector.extract_strided_slice %294 {offsets = [1, 0], sizes = [16, 16], strides = [1, 1]} : vector<22x16xf32> to vector<16x16xf32>
    %308 = vector.broadcast %134 : f32 to vector<16x16xf32>
    %309 = arith.mulf %308, %307 : vector<16x16xf32>
    %310 = arith.addf %306, %309 : vector<16x16xf32>
    %311 = vector.extract_strided_slice %293 {offsets = [2, 0], sizes = [16, 16], strides = [1, 1]} : vector<22x16xf32> to vector<16x16xf32>
    %312 = vector.broadcast %92 : f32 to vector<16x16xf32>
    %313 = arith.mulf %312, %311 : vector<16x16xf32>
    %314 = arith.addf %310, %313 : vector<16x16xf32>
    %315 = vector.extract_strided_slice %294 {offsets = [2, 0], sizes = [16, 16], strides = [1, 1]} : vector<22x16xf32> to vector<16x16xf32>
    %316 = vector.broadcast %141 : f32 to vector<16x16xf32>
    %317 = arith.mulf %316, %315 : vector<16x16xf32>
    %318 = arith.addf %314, %317 : vector<16x16xf32>
    %319 = vector.extract_strided_slice %293 {offsets = [3, 0], sizes = [16, 16], strides = [1, 1]} : vector<22x16xf32> to vector<16x16xf32>
    %320 = vector.broadcast %99 : f32 to vector<16x16xf32>
    %321 = arith.mulf %320, %319 : vector<16x16xf32>
    %322 = arith.addf %318, %321 : vector<16x16xf32>
    %323 = vector.extract_strided_slice %294 {offsets = [3, 0], sizes = [16, 16], strides = [1, 1]} : vector<22x16xf32> to vector<16x16xf32>
    %324 = vector.broadcast %148 : f32 to vector<16x16xf32>
    %325 = arith.mulf %324, %323 : vector<16x16xf32>
    %326 = arith.addf %322, %325 : vector<16x16xf32>
    %327 = vector.extract_strided_slice %293 {offsets = [4, 0], sizes = [16, 16], strides = [1, 1]} : vector<22x16xf32> to vector<16x16xf32>
    %328 = vector.broadcast %106 : f32 to vector<16x16xf32>
    %329 = arith.mulf %328, %327 : vector<16x16xf32>
    %330 = arith.addf %326, %329 : vector<16x16xf32>
    %331 = vector.extract_strided_slice %294 {offsets = [4, 0], sizes = [16, 16], strides = [1, 1]} : vector<22x16xf32> to vector<16x16xf32>
    %332 = vector.broadcast %155 : f32 to vector<16x16xf32>
    %333 = arith.mulf %332, %331 : vector<16x16xf32>
    %334 = arith.addf %330, %333 : vector<16x16xf32>
    %335 = vector.extract_strided_slice %293 {offsets = [5, 0], sizes = [16, 16], strides = [1, 1]} : vector<22x16xf32> to vector<16x16xf32>
    %336 = vector.broadcast %113 : f32 to vector<16x16xf32>
    %337 = arith.mulf %336, %335 : vector<16x16xf32>
    %338 = arith.addf %334, %337 : vector<16x16xf32>
    %339 = vector.extract_strided_slice %294 {offsets = [5, 0], sizes = [16, 16], strides = [1, 1]} : vector<22x16xf32> to vector<16x16xf32>
    %340 = vector.broadcast %162 : f32 to vector<16x16xf32>
    %341 = arith.mulf %340, %339 : vector<16x16xf32>
    %342 = arith.addf %338, %341 : vector<16x16xf32>
    %343 = vector.extract_strided_slice %293 {offsets = [6, 0], sizes = [16, 16], strides = [1, 1]} : vector<22x16xf32> to vector<16x16xf32>
    %344 = vector.broadcast %120 : f32 to vector<16x16xf32>
    %345 = arith.mulf %344, %343 : vector<16x16xf32>
    %346 = arith.addf %342, %345 : vector<16x16xf32>
    %347 = vector.extract_strided_slice %294 {offsets = [6, 0], sizes = [16, 16], strides = [1, 1]} : vector<22x16xf32> to vector<16x16xf32>
    %348 = vector.broadcast %169 : f32 to vector<16x16xf32>
    %349 = arith.mulf %348, %347 : vector<16x16xf32>
    %350 = arith.addf %346, %349 : vector<16x16xf32>
    %351 = vector.extract_strided_slice %174 {offsets = [0, 3], sizes = [22, 16], strides = [1, 1]} : vector<22x22xf32> to vector<22x16xf32>
    %352 = vector.extract_strided_slice %175 {offsets = [0, 3], sizes = [22, 16], strides = [1, 1]} : vector<22x22xf32> to vector<22x16xf32>
    %353 = vector.extract_strided_slice %351 {offsets = [0, 0], sizes = [16, 16], strides = [1, 1]} : vector<22x16xf32> to vector<16x16xf32>
    %354 = vector.broadcast %79 : f32 to vector<16x16xf32>
    %355 = arith.mulf %354, %353 : vector<16x16xf32>
    %356 = arith.addf %350, %355 : vector<16x16xf32>
    %357 = vector.extract_strided_slice %352 {offsets = [0, 0], sizes = [16, 16], strides = [1, 1]} : vector<22x16xf32> to vector<16x16xf32>
    %358 = vector.broadcast %128 : f32 to vector<16x16xf32>
    %359 = arith.mulf %358, %357 : vector<16x16xf32>
    %360 = arith.addf %356, %359 : vector<16x16xf32>
    %361 = vector.extract_strided_slice %351 {offsets = [1, 0], sizes = [16, 16], strides = [1, 1]} : vector<22x16xf32> to vector<16x16xf32>
    %362 = vector.broadcast %86 : f32 to vector<16x16xf32>
    %363 = arith.mulf %362, %361 : vector<16x16xf32>
    %364 = arith.addf %360, %363 : vector<16x16xf32>
    %365 = vector.extract_strided_slice %352 {offsets = [1, 0], sizes = [16, 16], strides = [1, 1]} : vector<22x16xf32> to vector<16x16xf32>
    %366 = vector.broadcast %135 : f32 to vector<16x16xf32>
    %367 = arith.mulf %366, %365 : vector<16x16xf32>
    %368 = arith.addf %364, %367 : vector<16x16xf32>
    %369 = vector.extract_strided_slice %351 {offsets = [2, 0], sizes = [16, 16], strides = [1, 1]} : vector<22x16xf32> to vector<16x16xf32>
    %370 = vector.broadcast %93 : f32 to vector<16x16xf32>
    %371 = arith.mulf %370, %369 : vector<16x16xf32>
    %372 = arith.addf %368, %371 : vector<16x16xf32>
    %373 = vector.extract_strided_slice %352 {offsets = [2, 0], sizes = [16, 16], strides = [1, 1]} : vector<22x16xf32> to vector<16x16xf32>
    %374 = vector.broadcast %142 : f32 to vector<16x16xf32>
    %375 = arith.mulf %374, %373 : vector<16x16xf32>
    %376 = arith.addf %372, %375 : vector<16x16xf32>
    %377 = vector.extract_strided_slice %351 {offsets = [3, 0], sizes = [16, 16], strides = [1, 1]} : vector<22x16xf32> to vector<16x16xf32>
    %378 = vector.broadcast %100 : f32 to vector<16x16xf32>
    %379 = arith.mulf %378, %377 : vector<16x16xf32>
    %380 = arith.addf %376, %379 : vector<16x16xf32>
    %381 = vector.extract_strided_slice %352 {offsets = [3, 0], sizes = [16, 16], strides = [1, 1]} : vector<22x16xf32> to vector<16x16xf32>
    %382 = vector.broadcast %149 : f32 to vector<16x16xf32>
    %383 = arith.mulf %382, %381 : vector<16x16xf32>
    %384 = arith.addf %380, %383 : vector<16x16xf32>
    %385 = vector.extract_strided_slice %351 {offsets = [4, 0], sizes = [16, 16], strides = [1, 1]} : vector<22x16xf32> to vector<16x16xf32>
    %386 = vector.broadcast %107 : f32 to vector<16x16xf32>
    %387 = arith.mulf %386, %385 : vector<16x16xf32>
    %388 = arith.addf %384, %387 : vector<16x16xf32>
    %389 = vector.extract_strided_slice %352 {offsets = [4, 0], sizes = [16, 16], strides = [1, 1]} : vector<22x16xf32> to vector<16x16xf32>
    %390 = vector.broadcast %156 : f32 to vector<16x16xf32>
    %391 = arith.mulf %390, %389 : vector<16x16xf32>
    %392 = arith.addf %388, %391 : vector<16x16xf32>
    %393 = vector.extract_strided_slice %351 {offsets = [5, 0], sizes = [16, 16], strides = [1, 1]} : vector<22x16xf32> to vector<16x16xf32>
    %394 = vector.broadcast %114 : f32 to vector<16x16xf32>
    %395 = arith.mulf %394, %393 : vector<16x16xf32>
    %396 = arith.addf %392, %395 : vector<16x16xf32>
    %397 = vector.extract_strided_slice %352 {offsets = [5, 0], sizes = [16, 16], strides = [1, 1]} : vector<22x16xf32> to vector<16x16xf32>
    %398 = vector.broadcast %163 : f32 to vector<16x16xf32>
    %399 = arith.mulf %398, %397 : vector<16x16xf32>
    %400 = arith.addf %396, %399 : vector<16x16xf32>
    %401 = vector.extract_strided_slice %351 {offsets = [6, 0], sizes = [16, 16], strides = [1, 1]} : vector<22x16xf32> to vector<16x16xf32>
    %402 = vector.broadcast %121 : f32 to vector<16x16xf32>
    %403 = arith.mulf %402, %401 : vector<16x16xf32>
    %404 = arith.addf %400, %403 : vector<16x16xf32>
    %405 = vector.extract_strided_slice %352 {offsets = [6, 0], sizes = [16, 16], strides = [1, 1]} : vector<22x16xf32> to vector<16x16xf32>
    %406 = vector.broadcast %170 : f32 to vector<16x16xf32>
    %407 = arith.mulf %406, %405 : vector<16x16xf32>
    %408 = arith.addf %404, %407 : vector<16x16xf32>
    %409 = vector.extract_strided_slice %174 {offsets = [0, 4], sizes = [22, 16], strides = [1, 1]} : vector<22x22xf32> to vector<22x16xf32>
    %410 = vector.extract_strided_slice %175 {offsets = [0, 4], sizes = [22, 16], strides = [1, 1]} : vector<22x22xf32> to vector<22x16xf32>
    %411 = vector.extract_strided_slice %409 {offsets = [0, 0], sizes = [16, 16], strides = [1, 1]} : vector<22x16xf32> to vector<16x16xf32>
    %412 = vector.broadcast %80 : f32 to vector<16x16xf32>
    %413 = arith.mulf %412, %411 : vector<16x16xf32>
    %414 = arith.addf %408, %413 : vector<16x16xf32>
    %415 = vector.extract_strided_slice %410 {offsets = [0, 0], sizes = [16, 16], strides = [1, 1]} : vector<22x16xf32> to vector<16x16xf32>
    %416 = vector.broadcast %129 : f32 to vector<16x16xf32>
    %417 = arith.mulf %416, %415 : vector<16x16xf32>
    %418 = arith.addf %414, %417 : vector<16x16xf32>
    %419 = vector.extract_strided_slice %409 {offsets = [1, 0], sizes = [16, 16], strides = [1, 1]} : vector<22x16xf32> to vector<16x16xf32>
    %420 = vector.broadcast %87 : f32 to vector<16x16xf32>
    %421 = arith.mulf %420, %419 : vector<16x16xf32>
    %422 = arith.addf %418, %421 : vector<16x16xf32>
    %423 = vector.extract_strided_slice %410 {offsets = [1, 0], sizes = [16, 16], strides = [1, 1]} : vector<22x16xf32> to vector<16x16xf32>
    %424 = vector.broadcast %136 : f32 to vector<16x16xf32>
    %425 = arith.mulf %424, %423 : vector<16x16xf32>
    %426 = arith.addf %422, %425 : vector<16x16xf32>
    %427 = vector.extract_strided_slice %409 {offsets = [2, 0], sizes = [16, 16], strides = [1, 1]} : vector<22x16xf32> to vector<16x16xf32>
    %428 = vector.broadcast %94 : f32 to vector<16x16xf32>
    %429 = arith.mulf %428, %427 : vector<16x16xf32>
    %430 = arith.addf %426, %429 : vector<16x16xf32>
    %431 = vector.extract_strided_slice %410 {offsets = [2, 0], sizes = [16, 16], strides = [1, 1]} : vector<22x16xf32> to vector<16x16xf32>
    %432 = vector.broadcast %143 : f32 to vector<16x16xf32>
    %433 = arith.mulf %432, %431 : vector<16x16xf32>
    %434 = arith.addf %430, %433 : vector<16x16xf32>
    %435 = vector.extract_strided_slice %409 {offsets = [3, 0], sizes = [16, 16], strides = [1, 1]} : vector<22x16xf32> to vector<16x16xf32>
    %436 = vector.broadcast %101 : f32 to vector<16x16xf32>
    %437 = arith.mulf %436, %435 : vector<16x16xf32>
    %438 = arith.addf %434, %437 : vector<16x16xf32>
    %439 = vector.extract_strided_slice %410 {offsets = [3, 0], sizes = [16, 16], strides = [1, 1]} : vector<22x16xf32> to vector<16x16xf32>
    %440 = vector.broadcast %150 : f32 to vector<16x16xf32>
    %441 = arith.mulf %440, %439 : vector<16x16xf32>
    %442 = arith.addf %438, %441 : vector<16x16xf32>
    %443 = vector.extract_strided_slice %409 {offsets = [4, 0], sizes = [16, 16], strides = [1, 1]} : vector<22x16xf32> to vector<16x16xf32>
    %444 = vector.broadcast %108 : f32 to vector<16x16xf32>
    %445 = arith.mulf %444, %443 : vector<16x16xf32>
    %446 = arith.addf %442, %445 : vector<16x16xf32>
    %447 = vector.extract_strided_slice %410 {offsets = [4, 0], sizes = [16, 16], strides = [1, 1]} : vector<22x16xf32> to vector<16x16xf32>
    %448 = vector.broadcast %157 : f32 to vector<16x16xf32>
    %449 = arith.mulf %448, %447 : vector<16x16xf32>
    %450 = arith.addf %446, %449 : vector<16x16xf32>
    %451 = vector.extract_strided_slice %409 {offsets = [5, 0], sizes = [16, 16], strides = [1, 1]} : vector<22x16xf32> to vector<16x16xf32>
    %452 = vector.broadcast %115 : f32 to vector<16x16xf32>
    %453 = arith.mulf %452, %451 : vector<16x16xf32>
    %454 = arith.addf %450, %453 : vector<16x16xf32>
    %455 = vector.extract_strided_slice %410 {offsets = [5, 0], sizes = [16, 16], strides = [1, 1]} : vector<22x16xf32> to vector<16x16xf32>
    %456 = vector.broadcast %164 : f32 to vector<16x16xf32>
    %457 = arith.mulf %456, %455 : vector<16x16xf32>
    %458 = arith.addf %454, %457 : vector<16x16xf32>
    %459 = vector.extract_strided_slice %409 {offsets = [6, 0], sizes = [16, 16], strides = [1, 1]} : vector<22x16xf32> to vector<16x16xf32>
    %460 = vector.broadcast %122 : f32 to vector<16x16xf32>
    %461 = arith.mulf %460, %459 : vector<16x16xf32>
    %462 = arith.addf %458, %461 : vector<16x16xf32>
    %463 = vector.extract_strided_slice %410 {offsets = [6, 0], sizes = [16, 16], strides = [1, 1]} : vector<22x16xf32> to vector<16x16xf32>
    %464 = vector.broadcast %171 : f32 to vector<16x16xf32>
    %465 = arith.mulf %464, %463 : vector<16x16xf32>
    %466 = arith.addf %462, %465 : vector<16x16xf32>
    %467 = vector.extract_strided_slice %174 {offsets = [0, 5], sizes = [22, 16], strides = [1, 1]} : vector<22x22xf32> to vector<22x16xf32>
    %468 = vector.extract_strided_slice %175 {offsets = [0, 5], sizes = [22, 16], strides = [1, 1]} : vector<22x22xf32> to vector<22x16xf32>
    %469 = vector.extract_strided_slice %467 {offsets = [0, 0], sizes = [16, 16], strides = [1, 1]} : vector<22x16xf32> to vector<16x16xf32>
    %470 = vector.broadcast %81 : f32 to vector<16x16xf32>
    %471 = arith.mulf %470, %469 : vector<16x16xf32>
    %472 = arith.addf %466, %471 : vector<16x16xf32>
    %473 = vector.extract_strided_slice %468 {offsets = [0, 0], sizes = [16, 16], strides = [1, 1]} : vector<22x16xf32> to vector<16x16xf32>
    %474 = vector.broadcast %130 : f32 to vector<16x16xf32>
    %475 = arith.mulf %474, %473 : vector<16x16xf32>
    %476 = arith.addf %472, %475 : vector<16x16xf32>
    %477 = vector.extract_strided_slice %467 {offsets = [1, 0], sizes = [16, 16], strides = [1, 1]} : vector<22x16xf32> to vector<16x16xf32>
    %478 = vector.broadcast %88 : f32 to vector<16x16xf32>
    %479 = arith.mulf %478, %477 : vector<16x16xf32>
    %480 = arith.addf %476, %479 : vector<16x16xf32>
    %481 = vector.extract_strided_slice %468 {offsets = [1, 0], sizes = [16, 16], strides = [1, 1]} : vector<22x16xf32> to vector<16x16xf32>
    %482 = vector.broadcast %137 : f32 to vector<16x16xf32>
    %483 = arith.mulf %482, %481 : vector<16x16xf32>
    %484 = arith.addf %480, %483 : vector<16x16xf32>
    %485 = vector.extract_strided_slice %467 {offsets = [2, 0], sizes = [16, 16], strides = [1, 1]} : vector<22x16xf32> to vector<16x16xf32>
    %486 = vector.broadcast %95 : f32 to vector<16x16xf32>
    %487 = arith.mulf %486, %485 : vector<16x16xf32>
    %488 = arith.addf %484, %487 : vector<16x16xf32>
    %489 = vector.extract_strided_slice %468 {offsets = [2, 0], sizes = [16, 16], strides = [1, 1]} : vector<22x16xf32> to vector<16x16xf32>
    %490 = vector.broadcast %144 : f32 to vector<16x16xf32>
    %491 = arith.mulf %490, %489 : vector<16x16xf32>
    %492 = arith.addf %488, %491 : vector<16x16xf32>
    %493 = vector.extract_strided_slice %467 {offsets = [3, 0], sizes = [16, 16], strides = [1, 1]} : vector<22x16xf32> to vector<16x16xf32>
    %494 = vector.broadcast %102 : f32 to vector<16x16xf32>
    %495 = arith.mulf %494, %493 : vector<16x16xf32>
    %496 = arith.addf %492, %495 : vector<16x16xf32>
    %497 = vector.extract_strided_slice %468 {offsets = [3, 0], sizes = [16, 16], strides = [1, 1]} : vector<22x16xf32> to vector<16x16xf32>
    %498 = vector.broadcast %151 : f32 to vector<16x16xf32>
    %499 = arith.mulf %498, %497 : vector<16x16xf32>
    %500 = arith.addf %496, %499 : vector<16x16xf32>
    %501 = vector.extract_strided_slice %467 {offsets = [4, 0], sizes = [16, 16], strides = [1, 1]} : vector<22x16xf32> to vector<16x16xf32>
    %502 = vector.broadcast %109 : f32 to vector<16x16xf32>
    %503 = arith.mulf %502, %501 : vector<16x16xf32>
    %504 = arith.addf %500, %503 : vector<16x16xf32>
    %505 = vector.extract_strided_slice %468 {offsets = [4, 0], sizes = [16, 16], strides = [1, 1]} : vector<22x16xf32> to vector<16x16xf32>
    %506 = vector.broadcast %158 : f32 to vector<16x16xf32>
    %507 = arith.mulf %506, %505 : vector<16x16xf32>
    %508 = arith.addf %504, %507 : vector<16x16xf32>
    %509 = vector.extract_strided_slice %467 {offsets = [5, 0], sizes = [16, 16], strides = [1, 1]} : vector<22x16xf32> to vector<16x16xf32>
    %510 = vector.broadcast %116 : f32 to vector<16x16xf32>
    %511 = arith.mulf %510, %509 : vector<16x16xf32>
    %512 = arith.addf %508, %511 : vector<16x16xf32>
    %513 = vector.extract_strided_slice %468 {offsets = [5, 0], sizes = [16, 16], strides = [1, 1]} : vector<22x16xf32> to vector<16x16xf32>
    %514 = vector.broadcast %165 : f32 to vector<16x16xf32>
    %515 = arith.mulf %514, %513 : vector<16x16xf32>
    %516 = arith.addf %512, %515 : vector<16x16xf32>
    %517 = vector.extract_strided_slice %467 {offsets = [6, 0], sizes = [16, 16], strides = [1, 1]} : vector<22x16xf32> to vector<16x16xf32>
    %518 = vector.broadcast %123 : f32 to vector<16x16xf32>
    %519 = arith.mulf %518, %517 : vector<16x16xf32>
    %520 = arith.addf %516, %519 : vector<16x16xf32>
    %521 = vector.extract_strided_slice %468 {offsets = [6, 0], sizes = [16, 16], strides = [1, 1]} : vector<22x16xf32> to vector<16x16xf32>
    %522 = vector.broadcast %172 : f32 to vector<16x16xf32>
    %523 = arith.mulf %522, %521 : vector<16x16xf32>
    %524 = arith.addf %520, %523 : vector<16x16xf32>
    %525 = vector.extract_strided_slice %174 {offsets = [0, 6], sizes = [22, 16], strides = [1, 1]} : vector<22x22xf32> to vector<22x16xf32>
    %526 = vector.extract_strided_slice %175 {offsets = [0, 6], sizes = [22, 16], strides = [1, 1]} : vector<22x22xf32> to vector<22x16xf32>
    %527 = vector.extract_strided_slice %525 {offsets = [0, 0], sizes = [16, 16], strides = [1, 1]} : vector<22x16xf32> to vector<16x16xf32>
    %528 = vector.broadcast %82 : f32 to vector<16x16xf32>
    %529 = arith.mulf %528, %527 : vector<16x16xf32>
    %530 = arith.addf %524, %529 : vector<16x16xf32>
    %531 = vector.extract_strided_slice %526 {offsets = [0, 0], sizes = [16, 16], strides = [1, 1]} : vector<22x16xf32> to vector<16x16xf32>
    %532 = vector.broadcast %131 : f32 to vector<16x16xf32>
    %533 = arith.mulf %532, %531 : vector<16x16xf32>
    %534 = arith.addf %530, %533 : vector<16x16xf32>
    %535 = vector.extract_strided_slice %525 {offsets = [1, 0], sizes = [16, 16], strides = [1, 1]} : vector<22x16xf32> to vector<16x16xf32>
    %536 = vector.broadcast %89 : f32 to vector<16x16xf32>
    %537 = arith.mulf %536, %535 : vector<16x16xf32>
    %538 = arith.addf %534, %537 : vector<16x16xf32>
    %539 = vector.extract_strided_slice %526 {offsets = [1, 0], sizes = [16, 16], strides = [1, 1]} : vector<22x16xf32> to vector<16x16xf32>
    %540 = vector.broadcast %138 : f32 to vector<16x16xf32>
    %541 = arith.mulf %540, %539 : vector<16x16xf32>
    %542 = arith.addf %538, %541 : vector<16x16xf32>
    %543 = vector.extract_strided_slice %525 {offsets = [2, 0], sizes = [16, 16], strides = [1, 1]} : vector<22x16xf32> to vector<16x16xf32>
    %544 = vector.broadcast %96 : f32 to vector<16x16xf32>
    %545 = arith.mulf %544, %543 : vector<16x16xf32>
    %546 = arith.addf %542, %545 : vector<16x16xf32>
    %547 = vector.extract_strided_slice %526 {offsets = [2, 0], sizes = [16, 16], strides = [1, 1]} : vector<22x16xf32> to vector<16x16xf32>
    %548 = vector.broadcast %145 : f32 to vector<16x16xf32>
    %549 = arith.mulf %548, %547 : vector<16x16xf32>
    %550 = arith.addf %546, %549 : vector<16x16xf32>
    %551 = vector.extract_strided_slice %525 {offsets = [3, 0], sizes = [16, 16], strides = [1, 1]} : vector<22x16xf32> to vector<16x16xf32>
    %552 = vector.broadcast %103 : f32 to vector<16x16xf32>
    %553 = arith.mulf %552, %551 : vector<16x16xf32>
    %554 = arith.addf %550, %553 : vector<16x16xf32>
    %555 = vector.extract_strided_slice %526 {offsets = [3, 0], sizes = [16, 16], strides = [1, 1]} : vector<22x16xf32> to vector<16x16xf32>
    %556 = vector.broadcast %152 : f32 to vector<16x16xf32>
    %557 = arith.mulf %556, %555 : vector<16x16xf32>
    %558 = arith.addf %554, %557 : vector<16x16xf32>
    %559 = vector.extract_strided_slice %525 {offsets = [4, 0], sizes = [16, 16], strides = [1, 1]} : vector<22x16xf32> to vector<16x16xf32>
    %560 = vector.broadcast %110 : f32 to vector<16x16xf32>
    %561 = arith.mulf %560, %559 : vector<16x16xf32>
    %562 = arith.addf %558, %561 : vector<16x16xf32>
    %563 = vector.extract_strided_slice %526 {offsets = [4, 0], sizes = [16, 16], strides = [1, 1]} : vector<22x16xf32> to vector<16x16xf32>
    %564 = vector.broadcast %159 : f32 to vector<16x16xf32>
    %565 = arith.mulf %564, %563 : vector<16x16xf32>
    %566 = arith.addf %562, %565 : vector<16x16xf32>
    %567 = vector.extract_strided_slice %525 {offsets = [5, 0], sizes = [16, 16], strides = [1, 1]} : vector<22x16xf32> to vector<16x16xf32>
    %568 = vector.broadcast %117 : f32 to vector<16x16xf32>
    %569 = arith.mulf %568, %567 : vector<16x16xf32>
    %570 = arith.addf %566, %569 : vector<16x16xf32>
    %571 = vector.extract_strided_slice %526 {offsets = [5, 0], sizes = [16, 16], strides = [1, 1]} : vector<22x16xf32> to vector<16x16xf32>
    %572 = vector.broadcast %166 : f32 to vector<16x16xf32>
    %573 = arith.mulf %572, %571 : vector<16x16xf32>
    %574 = arith.addf %570, %573 : vector<16x16xf32>
    %575 = vector.extract_strided_slice %525 {offsets = [6, 0], sizes = [16, 16], strides = [1, 1]} : vector<22x16xf32> to vector<16x16xf32>
    %576 = vector.broadcast %124 : f32 to vector<16x16xf32>
    %577 = arith.mulf %576, %575 : vector<16x16xf32>
    %578 = arith.addf %574, %577 : vector<16x16xf32>
    %579 = vector.extract_strided_slice %526 {offsets = [6, 0], sizes = [16, 16], strides = [1, 1]} : vector<22x16xf32> to vector<16x16xf32>
    %580 = vector.broadcast %173 : f32 to vector<16x16xf32>
    %581 = arith.mulf %580, %579 : vector<16x16xf32>
    %582 = arith.addf %578, %581 : vector<16x16xf32>
    %583 = arith.negf %582 : vector<16x16xf32>
    %584 = math.exp %583 : vector<16x16xf32>
    %cst_138 = arith.constant 1.000000e+00 : f32
    %585 = vector.broadcast %cst_138 : f32 to vector<16x16xf32>
    %586 = arith.addf %585, %584 : vector<16x16xf32>
    %587 = arith.divf %585, %586 : vector<16x16xf32>
    %c3_139 = arith.constant 3 : index
    %c3_140 = arith.constant 3 : index
    %588 = vector.load %arg6[%c3_139, %c3_140] : memref<22x22xf32, #tpu.memory_space<vmem>>, vector<16x16xf32>
    tpu.vector_store %arg6[%c3_139, %c3_140], %587 {strides = array<i32>} : memref<22x22xf32, #tpu.memory_space<vmem>>, vector<16x16xf32>,
    %c3_141 = arith.constant 3 : index
    %c3_142 = arith.constant 3 : index
    %589 = vector.load %arg6[%c3_141, %c3_142] : memref<22x22xf32, #tpu.memory_space<vmem>>, vector<1x16xf32>
    %c0_143 = arith.constant 0 : index
    %c0_144 = arith.constant 0 : index
    %590 = vector.load %arg4[%c0_143, %c0_144] : memref<1x256xf32, #tpu.memory_space<vmem>>, vector<1x16xf32>
    tpu.vector_store %arg4[%c0_143, %c0_144], %589 {strides = array<i32>} : memref<1x256xf32, #tpu.memory_space<vmem>>, vector<1x16xf32>,
    %c4_145 = arith.constant 4 : index
    %c3_146 = arith.constant 3 : index
    %591 = vector.load %arg6[%c4_145, %c3_146] : memref<22x22xf32, #tpu.memory_space<vmem>>, vector<1x16xf32>
    %c0_147 = arith.constant 0 : index
    %c16_148 = arith.constant 16 : index
    %592 = vector.load %arg4[%c0_147, %c16_148] : memref<1x256xf32, #tpu.memory_space<vmem>>, vector<1x16xf32>
    tpu.vector_store %arg4[%c0_147, %c16_148], %591 {strides = array<i32>} : memref<1x256xf32, #tpu.memory_space<vmem>>, vector<1x16xf32>,
    %c5_149 = arith.constant 5 : index
    %c3_150 = arith.constant 3 : index
    %593 = vector.load %arg6[%c5_149, %c3_150] : memref<22x22xf32, #tpu.memory_space<vmem>>, vector<1x16xf32>
    %c0_151 = arith.constant 0 : index
    %c32_152 = arith.constant 32 : index
    %594 = vector.load %arg4[%c0_151, %c32_152] : memref<1x256xf32, #tpu.memory_space<vmem>>, vector<1x16xf32>
    tpu.vector_store %arg4[%c0_151, %c32_152], %593 {strides = array<i32>} : memref<1x256xf32, #tpu.memory_space<vmem>>, vector<1x16xf32>,
    %c6_153 = arith.constant 6 : index
    %c3_154 = arith.constant 3 : index
    %595 = vector.load %arg6[%c6_153, %c3_154] : memref<22x22xf32, #tpu.memory_space<vmem>>, vector<1x16xf32>
    %c0_155 = arith.constant 0 : index
    %c48_156 = arith.constant 48 : index
    %596 = vector.load %arg4[%c0_155, %c48_156] : memref<1x256xf32, #tpu.memory_space<vmem>>, vector<1x16xf32>
    tpu.vector_store %arg4[%c0_155, %c48_156], %595 {strides = array<i32>} : memref<1x256xf32, #tpu.memory_space<vmem>>, vector<1x16xf32>,
    %c7_157 = arith.constant 7 : index
    %c3_158 = arith.constant 3 : index
    %597 = vector.load %arg6[%c7_157, %c3_158] : memref<22x22xf32, #tpu.memory_space<vmem>>, vector<1x16xf32>
    %c0_159 = arith.constant 0 : index
    %c64_160 = arith.constant 64 : index
    %598 = vector.load %arg4[%c0_159, %c64_160] : memref<1x256xf32, #tpu.memory_space<vmem>>, vector<1x16xf32>
    tpu.vector_store %arg4[%c0_159, %c64_160], %597 {strides = array<i32>} : memref<1x256xf32, #tpu.memory_space<vmem>>, vector<1x16xf32>,
    %c8_161 = arith.constant 8 : index
    %c3_162 = arith.constant 3 : index
    %599 = vector.load %arg6[%c8_161, %c3_162] : memref<22x22xf32, #tpu.memory_space<vmem>>, vector<1x16xf32>
    %c0_163 = arith.constant 0 : index
    %c80_164 = arith.constant 80 : index
    %600 = vector.load %arg4[%c0_163, %c80_164] : memref<1x256xf32, #tpu.memory_space<vmem>>, vector<1x16xf32>
    tpu.vector_store %arg4[%c0_163, %c80_164], %599 {strides = array<i32>} : memref<1x256xf32, #tpu.memory_space<vmem>>, vector<1x16xf32>,
    %c9_165 = arith.constant 9 : index
    %c3_166 = arith.constant 3 : index
    %601 = vector.load %arg6[%c9_165, %c3_166] : memref<22x22xf32, #tpu.memory_space<vmem>>, vector<1x16xf32>
    %c0_167 = arith.constant 0 : index
    %c96_168 = arith.constant 96 : index
    %602 = vector.load %arg4[%c0_167, %c96_168] : memref<1x256xf32, #tpu.memory_space<vmem>>, vector<1x16xf32>
    tpu.vector_store %arg4[%c0_167, %c96_168], %601 {strides = array<i32>} : memref<1x256xf32, #tpu.memory_space<vmem>>, vector<1x16xf32>,
    %c10_169 = arith.constant 10 : index
    %c3_170 = arith.constant 3 : index
    %603 = vector.load %arg6[%c10_169, %c3_170] : memref<22x22xf32, #tpu.memory_space<vmem>>, vector<1x16xf32>
    %c0_171 = arith.constant 0 : index
    %c112_172 = arith.constant 112 : index
    %604 = vector.load %arg4[%c0_171, %c112_172] : memref<1x256xf32, #tpu.memory_space<vmem>>, vector<1x16xf32>
    tpu.vector_store %arg4[%c0_171, %c112_172], %603 {strides = array<i32>} : memref<1x256xf32, #tpu.memory_space<vmem>>, vector<1x16xf32>,
    %c11_173 = arith.constant 11 : index
    %c3_174 = arith.constant 3 : index
    %605 = vector.load %arg6[%c11_173, %c3_174] : memref<22x22xf32, #tpu.memory_space<vmem>>, vector<1x16xf32>
    %c0_175 = arith.constant 0 : index
    %c128_176 = arith.constant 128 : index
    %606 = vector.load %arg4[%c0_175, %c128_176] : memref<1x256xf32, #tpu.memory_space<vmem>>, vector<1x16xf32>
    tpu.vector_store %arg4[%c0_175, %c128_176], %605 {strides = array<i32>} : memref<1x256xf32, #tpu.memory_space<vmem>>, vector<1x16xf32>,
    %c12_177 = arith.constant 12 : index
    %c3_178 = arith.constant 3 : index
    %607 = vector.load %arg6[%c12_177, %c3_178] : memref<22x22xf32, #tpu.memory_space<vmem>>, vector<1x16xf32>
    %c0_179 = arith.constant 0 : index
    %c144_180 = arith.constant 144 : index
    %608 = vector.load %arg4[%c0_179, %c144_180] : memref<1x256xf32, #tpu.memory_space<vmem>>, vector<1x16xf32>
    tpu.vector_store %arg4[%c0_179, %c144_180], %607 {strides = array<i32>} : memref<1x256xf32, #tpu.memory_space<vmem>>, vector<1x16xf32>,
    %c13_181 = arith.constant 13 : index
    %c3_182 = arith.constant 3 : index
    %609 = vector.load %arg6[%c13_181, %c3_182] : memref<22x22xf32, #tpu.memory_space<vmem>>, vector<1x16xf32>
    %c0_183 = arith.constant 0 : index
    %c160_184 = arith.constant 160 : index
    %610 = vector.load %arg4[%c0_183, %c160_184] : memref<1x256xf32, #tpu.memory_space<vmem>>, vector<1x16xf32>
    tpu.vector_store %arg4[%c0_183, %c160_184], %609 {strides = array<i32>} : memref<1x256xf32, #tpu.memory_space<vmem>>, vector<1x16xf32>,
    %c14_185 = arith.constant 14 : index
    %c3_186 = arith.constant 3 : index
    %611 = vector.load %arg6[%c14_185, %c3_186] : memref<22x22xf32, #tpu.memory_space<vmem>>, vector<1x16xf32>
    %c0_187 = arith.constant 0 : index
    %c176_188 = arith.constant 176 : index
    %612 = vector.load %arg4[%c0_187, %c176_188] : memref<1x256xf32, #tpu.memory_space<vmem>>, vector<1x16xf32>
    tpu.vector_store %arg4[%c0_187, %c176_188], %611 {strides = array<i32>} : memref<1x256xf32, #tpu.memory_space<vmem>>, vector<1x16xf32>,
    %c15_189 = arith.constant 15 : index
    %c3_190 = arith.constant 3 : index
    %613 = vector.load %arg6[%c15_189, %c3_190] : memref<22x22xf32, #tpu.memory_space<vmem>>, vector<1x16xf32>
    %c0_191 = arith.constant 0 : index
    %c192_192 = arith.constant 192 : index
    %614 = vector.load %arg4[%c0_191, %c192_192] : memref<1x256xf32, #tpu.memory_space<vmem>>, vector<1x16xf32>
    tpu.vector_store %arg4[%c0_191, %c192_192], %613 {strides = array<i32>} : memref<1x256xf32, #tpu.memory_space<vmem>>, vector<1x16xf32>,
    %c16_193 = arith.constant 16 : index
    %c3_194 = arith.constant 3 : index
    %615 = vector.load %arg6[%c16_193, %c3_194] : memref<22x22xf32, #tpu.memory_space<vmem>>, vector<1x16xf32>
    %c0_195 = arith.constant 0 : index
    %c208_196 = arith.constant 208 : index
    %616 = vector.load %arg4[%c0_195, %c208_196] : memref<1x256xf32, #tpu.memory_space<vmem>>, vector<1x16xf32>
    tpu.vector_store %arg4[%c0_195, %c208_196], %615 {strides = array<i32>} : memref<1x256xf32, #tpu.memory_space<vmem>>, vector<1x16xf32>,
    %c17_197 = arith.constant 17 : index
    %c3_198 = arith.constant 3 : index
    %617 = vector.load %arg6[%c17_197, %c3_198] : memref<22x22xf32, #tpu.memory_space<vmem>>, vector<1x16xf32>
    %c0_199 = arith.constant 0 : index
    %c224_200 = arith.constant 224 : index
    %618 = vector.load %arg4[%c0_199, %c224_200] : memref<1x256xf32, #tpu.memory_space<vmem>>, vector<1x16xf32>
    tpu.vector_store %arg4[%c0_199, %c224_200], %617 {strides = array<i32>} : memref<1x256xf32, #tpu.memory_space<vmem>>, vector<1x16xf32>,
    %c18_201 = arith.constant 18 : index
    %c3_202 = arith.constant 3 : index
    %619 = vector.load %arg6[%c18_201, %c3_202] : memref<22x22xf32, #tpu.memory_space<vmem>>, vector<1x16xf32>
    %c0_203 = arith.constant 0 : index
    %c240_204 = arith.constant 240 : index
    %620 = vector.load %arg4[%c0_203, %c240_204] : memref<1x256xf32, #tpu.memory_space<vmem>>, vector<1x16xf32>
    tpu.vector_store %arg4[%c0_203, %c240_204], %619 {strides = array<i32>} : memref<1x256xf32, #tpu.memory_space<vmem>>, vector<1x16xf32>,
    %c0_205 = arith.constant 0 : index
    %c0_206 = arith.constant 0 : index
    %621 = vector.load %arg4[%c0_205, %c0_206] : memref<1x256xf32, #tpu.memory_space<vmem>>, vector<1x256xf32>
    %622 = vector.broadcast %621 : vector<1x256xf32> to vector<4x256xf32>
    %623 = arith.mulf %1, %622 : vector<4x256xf32>
    %624 = vector.shape_cast %623 : vector<4x256xf32> to vector<1x4x256xf32>
    %c0_207 = arith.constant 0 : index
    %c0_208 = arith.constant 0 : index
    %c0_209 = arith.constant 0 : index
    %625 = vector.load %arg3[%c0_207, %c0_208, %c0_209] : memref<1x4x256xf32, #tpu.memory_space<vmem>>, vector<1x4x256xf32>
    tpu.vector_store %arg3[%c0_207, %c0_208, %c0_209], %624 {strides = array<i32>} : memref<1x4x256xf32, #tpu.memory_space<vmem>>, vector<1x4x256xf32>,
    return
  }
  func.func @transform_0(%arg0: i32) -> (i32, i32, i32) {
    %c0_i32 = arith.constant 0 : i32
    %c0_i32_0 = arith.constant 0 : i32
    %c0_i32_1 = arith.constant 0 : i32
    return %arg0, %c0_i32, %c0_i32_0 : i32, i32, i32
  }
  func.func @transform_1(%arg0: i32) -> i32 {
    %c0_i32 = arith.constant 0 : i32
    %c0_i32_0 = arith.constant 0 : i32
    return %c0_i32 : i32
  }
  func.func @transform_2(%arg0: i32) -> (i32, i32, i32) {
    %c0_i32 = arith.constant 0 : i32
    %c0_i32_0 = arith.constant 0 : i32
    %c0_i32_1 = arith.constant 0 : i32
    return %arg0, %c0_i32, %c0_i32_0 : i32, i32, i32
  }
}

</mosaic_0001>

<bundles_post_ra>
// kernel: tpu_custom_call.1
= control target key start
LH: loop header
LB: loop body
LE: loop exit
PB: predicated region body
PF: predicated region fallthrough
CT: control target
= control target key end

     0   :  { %s5641_s0 = inlined_call_operand.hbm [shape: f32[2,4,256], index: 0, kind: input, shape index: {}]   ;;  %s5642_s1 = inlined_call_operand.hbm [shape: f32[98], index: 1, kind: input, shape index: {}]   ;;  %s5643_s2 = inlined_call_operand.hbm [shape: f32[2,4,256], index: 2, kind: output, shape index: {}]  }
   0x1   :  { %5674 = sst [smem:[#allocation36_spill]] %s5641_s0 }
   0x2   :  { %5675 = sst [smem:[#allocation37_spill]] %s5642_s1 }
   0x3   :  { %7 = vsyncpa [#allocation7], 0 }
   0x4   :  { %9 = vsyncpa [#allocation7 + $0x1], 0 }
   0x5   :  { %10 = vsyncpa [#allocation9], 0 }
   0x6   :  { %11 = vsyncpa [#allocation8], 0 }
   0x7   :  { %13 = vsyncpa [#allocation8 + $0x1], 0  ;;  %s3383_s9 = smov 0   ;;  %s3385_s10 = smov 0  }
   0x8   :  { %s3387_s11 = smov 0   ;;  %s3389_s12 = smov 0  }
   0x9 LB: > { %5676 = sst [smem:[#allocation15_spill]] %s3332_s10  ;;  %s3404_s13 = sadd.s32 4294967295, %s3340_s12   ;;  %s3340_s12 = sphi %s3389_s12, %s5813_s12   ;;  %s3336_s11 = sphi %s3387_s11, %s5812_s11   ;;  %s3332_s10 = sphi %s3385_s10, %s5811_s10   ;;  %s3328_s9 = sphi %s3383_s9, %s5810_s9  }
   0xa   : > { %5677 = sst [smem:[#allocation16_spill]] %s3336_s11  ;;  %s2960_s14 = sadd.s32 4294967294, %s3340_s12  }
   0xb   : > { %p39_p0 = scmp.ne.s32.totalorder %s3332_s10, %s3328_s9  ;;  %p5644_p1 = scmp.eq.s32.totalorder %s3404_s13, 0 }
   0xc   : > { %p90_p3 = scmp.eq.s32.totalorder %s2960_s14, 1  ;;  %p2961_p5 = scmp.ge.s32.totalorder %s3340_s12, 1 }
   0xd   : > { %p3413_p4 = por %p5644_p1, %p39_p0  ;;  %p97_p7 = scmp.lt.s32.totalorder %s3340_s12, 3 }
   0xe   : > { %p3418_p6 = por %p90_p3, %p39_p0  ;;  %s3429_s18 = sadd.s32 1, %s3340_s12  }
   0xf   : > { %s5678_s15 = scalar_select %p3413_p4, 1, 0 }
  0x10   : > { %s5679_s16 = scalar_select %p3418_p6, 1, 0 }
  0x11   : > { %p3423_p8 = pnand %p2961_p5, %p97_p7  ;;  %s23_s19 = ssub.s32 %s3340_s12, %s3429_s18 }
  0x12   : > { %s26_s20 = sadd.s32 1, %s3336_s11  ;;  %p3442_p12 = scmp.eq.s32.totalorder %s23_s19, 0 }
  0x13   : > { %p3133_p10 = pneg %p3423_p8  ;;  %p33_p13 = scmp.ne.s32.totalorder %s3336_s11, %s3332_s10 }
  0x14   : > { %p34_p0 = scmp.eq.s32.totalorder %s3340_s12, 0  ;;  %p3146_p3 = scmp.lt.s32.totalorder %s3340_s12, 2 }
  0x15   : > { %p3438_p11 = pnand %p3133_p10, %p5644_p1  ;;  %s5683_s1 = sld [smem:[#allocation37_spill]] }
  0x17   : > { %p3229_p7 = pneg %p3438_p11 }
  0x1b   : > { %s3227_s25 = scalar_lea.hbm %s5683_s1, 16 }
  0x1c   : > { %p3228_p5 = scmp.ne.s32.totalorder %s5683_s1, %s3227_s25  ;;  %p3234_p1 = scmp.lt.u32.totalorder %s3227_s25, %s5683_s1 }
  0x1e   : > { %p3230_p10 = pnand %p3229_p7, %p3228_p5 }
  0x20   : > { %p3231_p9 = pneg %p3230_p10 }
  0x22   : > { %p3236_p2 = pnand %p3234_p1, %p3231_p9 }
  0x24   : > { %3239 = shalt.err (!%p3236_p2)
}
  0x25   : > { %s3342_s30 = smov [#allocation10]   ;;  %p35_p1 = por %p34_p0, %p33_p13 }
  0x26   : > { %3136 = dma.hbm_to_smem (!%p3438_p11), %s5683_s1, 16, %s3342_s30, [#allocation9]  }
  0x27   : > { %s3469_s5 = scalar_select %p3442_p12, %s3336_s11, %s26_s20  }
  0x28   : > { %p5685_p2 = scmp.eq.s32.totalorder %s3404_s13, 1  ;;  %s119_s7 = sand.u32 1, %s3336_s11  }
  0x29   : > { %5684 = sst [smem:[#allocation17_spill]] %s3469_s5  ;;  %s3123_s8 = sshll.u32 %s3340_s12, 7 }
  0x2a   : > { %p3481_p9 = por %p5685_p2, %p33_p13  ;;  %s2964_s14 = sshll.u32 %s119_s7, 3 }
  0x2b   : > { %s5687_s0 = sld [smem:[#allocation36_spill]]  ;;  %s123_s20 = scalar_lea.vmem [#allocation6], %s2964_s14 }
  0x2c   : > { %s5686_s6 = scalar_select %p3481_p9, 1, 0 }
  0x2d   : > { %s131_s22 = sshll.u32 %s123_s20, 4  ;;  %p3494_p11 = pnand %p3146_p3, %p35_p1  ;;  %s3498_s22 = int_to_ptr.vmem [resolvable:$true] %s131_s22 }
  0x2e   : > { %s120_s25 = scalar_lea.sflag [#allocation7], %s119_s7 }
  0x2f   : > { %p3242_p13 = pneg %p3494_p11 }
  0x31   : > { %s3490_s23 = scalar_lea.hbm %s5687_s0, %s3123_s8  ;;  %s3245_s29 = scalar_lea.hbm %s5687_s0, 256 }
  0x32   : > { %s3240_s26 = scalar_lea.hbm %s3490_s23, 128  ;;  %p3246_p3 = scmp.lt.u32.totalorder %s3490_s23, %s5687_s0 }
  0x33   : > { %p3241_p12 = scmp.ne.s32.totalorder %s3490_s23, %s3240_s26  ;;  %p3247_p7 = scmp.lt.u32.totalorder %s3245_s29, %s3240_s26 }
  0x34   : > { %p3249_p1 = scmp.lt.u32.totalorder %s3240_s26, %s3490_s23 }
  0x35   : > { %p3243_p0 = pnand %p3242_p13, %p3241_p12  ;;  %p3248_p10 = por %p3247_p7, %p3246_p3 }
  0x37   : > { %p3244_p5 = pneg %p3243_p0  ;;  %p3250_p2 = por %p3249_p1, %p3248_p10 }
  0x39   : > { %p3251_p6 = pnand %p3250_p2, %p3244_p5 }
  0x3b   : > { %3254 = shalt.err (!%p3251_p6)
}
  0x3c   : > { %s3255_s4 = scalar_lea.vmem %s3498_s22, 128  ;;  %s3343_s7 = smov [#allocation6]  }
  0x3d   : > { %p3256_p12 = scmp.ne.s32.totalorder %s3498_s22, %s3255_s4  ;;  %s3260_s8 = sshll.u32 %s3343_s7, 4  ;;  %s3261_s8 = int_to_ptr.vmem [resolvable:$false] %s3260_s8 }
  0x3e   : > { %s3262_s14 = scalar_lea.vmem %s3261_s8, 256  ;;  %p3263_p4 = scmp.lt.s32.totalorder %s3498_s22, %s3261_s8 }
  0x3f   : > { %p3258_p0 = pnand %p3256_p12, %p3242_p13  ;;  %p3264_p3 = scmp.lt.s32.totalorder %s3262_s14, %s3255_s4 }
  0x41   : > { %p3259_p9 = pneg %p3258_p0  ;;  %p3265_p7 = por %p3264_p3, %p3263_p4 }
  0x43   : > { %p3266_p10 = pnand %p3265_p7, %p3259_p9 }
  0x45   : > { %3269 = shalt.err (!%p3266_p10)
}
  0x46   : > { %3140 = dma.hbm_to_vmem [thread:$0]  (!%p3494_p11), %s3490_s23, 128, %s3498_s22, %s120_s25  }
  0x47   : > { %140 = sbr.rel (%p3423_p8) target bundleno = 1072 (0x430), region = 28 }
  0x4e   : > { %s3528_s19 = sand.u32 1, %s3332_s10   ;;  %p5689_p4 = scmp.ne.s32.totalorder %s5678_s15, 0 }
  0x4f   : > { %s5647_s21 = sshll.u32 %s3528_s19, 3  ;;  %s143_s20 = scalar_lea.sflag [#allocation7], %s3528_s19 }
  0x50   : > { %s3534_s26 = scalar_lea.vmem [#allocation6], %s5647_s21 }
  0x51   : > { %3315 = dma.done.wait (%p5689_p4), %s143_s20, 128  }
  0x52   : > { %3317 = vsyncadd (%p5689_p4), %s143_s20, 4294967168  ;;  %p5690_p6 = scmp.eq.s32.totalorder %s3404_s13, 0 }
  0x54   : > { %3319 = dma.done.wait (%p5690_p6), [#allocation9], 16   ;;  %p5691_p8 = pmov %p5690_p6 }
  0x56   : > { %3321 = vsyncadd (%p5691_p8), [#allocation9], 4294967280 }
  0x57   : > { %155 = sfence }
  0x58   : > { %v172_v0 = vld [vmem:[%s3534_s26] sm:$0xff]  ;;  %vm176_vm0 = vcmask 1043456   ;;  %vm247_vm1 = vcmask 179200   ;;  %v3344_v12 = vmov 1966171168   ;;  %v5652_v14 = vlaneseq  ;;  %s3346_s15 = smov 99  }
  0x59   : > { %v174_v1 = vcombine.high %v172_v0, %v172_v0  ;;  %v177_v2 = vsel %vm176_vm0, %v172_v0, 0.0  ;;  %v214_v3 = vsel %vm176_vm0, %v172_v0, -inf  ;;  %v195_v13 = vunpack.c.l.s4 %v3344_v12  ;;  %s5648_s17 = smov 3   ;;  %s3348_s23 = smov 83  }
  0x5a   : > { %v178_v4 = vrot.slane %v177_v2, 4  ;;  %v215_v5 = vrot.slane %v214_v3, 4  ;;  %v3345_v19 = vmov 0.0   ;;  %v3554_v25 = vshrl.u32 %v5652_v14, 7  ;;  %s3349_s22 = smov 115   ;;  %s3350_s24 = smov 51  }
  0x5b   : > { %v184_v6 = vsel %vm176_vm0, %v174_v1, 0.0  ;;  %v221_v7 = vsel %vm176_vm0, %v174_v1, -inf  ;;  %248 = vst.msk [vmem:[#allocation4] sm:$0xff] %vm247_vm1, %v3345_v19  ;;  %249 = vst.msk [vmem:[#allocation4 + $0x8] sm:$0xff] %vm247_vm1, %v3345_v19  ;;  %v196_v24 = vunpack.c.0.s8 %v195_v13  ;;  %vm211_vm2 = vcmp.lt.s32.totalorder %v5652_v14, 256  ;;  %s3351_s25 = smov 67  }
  0x5c   : > { %v179_v8 = vadd.f32 %v178_v4, %v177_v2  ;;  %v185_v9 = vrot.slane %v184_v6, 4  ;;  %v216_v10 = vmax.f32 %v214_v3, %v215_v5  ;;  %v222_v11 = vrot.slane %v221_v7, 4  ;;  %252 = vst.msk [vmem:[#allocation5] sm:$0xff] %vm247_vm1, %v3345_v19  ;;  %253 = vst.msk [vmem:[#allocation5 + $0x8] sm:$0xff] %vm247_vm1, %v3345_v19  ;;  %s3352_s27 = smov 19   ;;  %s3353_s28 = smov 35  }
  0x5d   : > { %5692 = vst [vmem:[#allocation18_spill] sm:$0xff] %v3554_v25  ;;  %v3557_v35 = vsub.s32 %v196_v24, %v3554_v25  ;;  %vm250_vm3 = vcmask 177152   ;;  %vm264_vm4 = vcmask 147480   ;;  %s3592_s29 = sld [smem:[#allocation10 + $0x1]]  ;;  %s3354_s30 = smov 127   ;;  %vm697_vm5 = vcmask 1046528  }
  0x5e   : > { %v180_v15 = vrot.slane %v179_v8, 2  ;;  %v186_v16 = vadd.f32 %v185_v9, %v184_v6  ;;  %v217_v17 = vrot.slane %v216_v10, 2  ;;  %v223_v18 = vmax.f32 %v221_v7, %v222_v11  ;;  %251 = vst.msk [vmem:[#allocation4 + $0x10] sm:$0x3f] %vm250_vm3, %v3345_v19  ;;  %254 = vst.msk [vmem:[#allocation5 + $0x10] sm:$0x3f] %vm250_vm3, %v3345_v19 }
  0x5f   : > { %5693 = vst [vmem:[#allocation19_spill] sm:$0xff] %v3557_v35  ;;  %s3619_s3 = sld [smem:[#allocation10 + $0x32]]  ;;  %s3010_s7 = sld [smem:[#allocation10 + $0x8]]  ;;  %vm730_vm6 = vcmask 1045504   ;;  %vm763_vm7 = vcmask 1044480   ;;  %vm828_vm8 = vcmask 1042432  }
  0x60   : > { %v181_v20 = vadd.f32 %v180_v15, %v179_v8  ;;  %v187_v21 = vrot.slane %v186_v16, 2  ;;  %v218_v22 = vmax.f32 %v216_v10, %v217_v17  ;;  %v224_v23 = vrot.slane %v223_v18, 2  ;;  %s3623_s4 = sld [smem:[#allocation10 + $0x2]]  ;;  %s3628_s8 = sld [smem:[#allocation10 + $0x33]] }
  0x61   : > { %s3059_s14 = sld [smem:[#allocation10 + $0x39]]  ;;  %s3355_s20 = smov 126   ;;  %vm861_vm9 = vcmask 1041408   ;;  %vm2503_vm10 = vcmask 154648  }
  0x62   : > { %v182_v26 = vrot.slane %v181_v20, 1  ;;  %v188_v27 = vadd.f32 %v187_v21, %v186_v16  ;;  %v219_v28 = vrot.slane %v218_v22, 1  ;;  %v225_v29 = vmax.f32 %v223_v18, %v224_v23  ;;  %s3966_s21 = sld [smem:[#allocation10 + $0x4d]]  ;;  %s3976_s0 = sld [smem:[#allocation10 + $0x1f]] }
  0x63   : > { %v887_v55 = vstv %s3592_s29  ;;  %s3087_s29 = sld [smem:[#allocation10 + $0x55]]  ;;  %s3978_s1 = sld [smem:[#allocation10 + $0x5b]] }
  0x64   : > { %v183_v30 = vadd.f32 %v182_v26, %v181_v20  ;;  %v189_v31 = vrot.slane %v188_v27, 1  ;;  %v220_v32 = vmax.f32 %v218_v22, %v219_v28  ;;  %v226_v33 = vrot.slane %v225_v29, 1  ;;  %s4000_s5 = sld [smem:[#allocation10 + $0x4]]  ;;  %s4011_s11 = sld [smem:[#allocation10 + $0xb]] }
  0x65   : > { %v900_v12 = vstv %s3619_s3  ;;  %v913_v22 = vstv %s3010_s7  ;;  %s3045_s3 = sld [smem:[#allocation10 + $0x2b]]  ;;  %s3011_s7 = sld [smem:[#allocation10 + $0x9]] }
  0x66   : > { %v190_v34 = vadd.f32 %v189_v31, %v188_v27  ;;  %v227_v36 = vmax.f32 %v225_v29, %v226_v33  ;;  %v1153_v18 = vstv %s3623_s4  ;;  %v1166_v23 = vstv %s3628_s8  ;;  %s3094_s4 = sld [smem:[#allocation10 + $0x5c]]  ;;  %s3060_s8 = sld [smem:[#allocation10 + $0x3a]] }
  0x67   : > { %s4013_s10 = sld [smem:[#allocation10 + $0x12]]  ;;  %p5807_p11 = scmp.ne.s32.totalorder %s5686_s6, 0 }
  0x68   : > { %v193_v37 = vcombine.low %v183_v30, %v190_v34  ;;  %v230_v38 = vcombine.low %v220_v32, %v227_v36  ;;  %v933_v34 = vstv %s3059_s14  ;;  %s3018_s14 = sld [smem:[#allocation10 + $0x10]] }
  0x6a   : > { %v200_v39 = vrot.slane %v193_v37, %v3557_v35  ;;  %v237_v40 = vrot.slane %v230_v38, %v3557_v35 }
  0x6c   : > { %v207_v41 = vrot.slane %v200_v39, %v3557_v35  ;;  %v244_v42 = vrot.slane %v237_v40, %v3557_v35 }
  0x6e   : > { %213 = vst.msk [vmem:[#allocation2] sm:$0x3] %vm211_vm2, %v207_v41  ;;  %246 = vst.msk [vmem:[#allocation3] sm:$0x3] %vm211_vm2, %v244_v42 }
  0x75   : > { %v2975_v43 = vld [vmem:[#allocation2] ss:$0 sm:$0xff]  ;;  %v2989_v44 = vld [vmem:[#allocation2 + $0x1] ss:$0 sm:$0xff]  ;;  %v2974_v45 = vld [vmem:[#allocation3] ss:$0 sm:$0xff] }
  0x76   : > { %302 = vrot.lane.b32.xlu1 %v2975_v43, %s3346_s15  ;;  %261 = vrot.lane.b32.xlu0 %v2975_v43, %s5648_s17  ;;  %v2990_v46 = vld [vmem:[#allocation3 + $0x1] ss:$0 sm:$0xff] }
  0x7a   : > { %322 = vrot.lane.b32.xlu1 %v2975_v43, %s3348_s23  ;;  %282 = vrot.lane.b32.xlu0 %v2975_v43, %s3349_s22 }
  0x7e   : > { %362 = vrot.lane.b32.xlu1 %v2975_v43, %s3350_s24  ;;  %342 = vrot.lane.b32.xlu0 %v2975_v43, %s3351_s25 }
  0x82   : > { %402 = vrot.lane.b32.xlu1 %v2975_v43, %s3352_s27  ;;  %382 = vrot.lane.b32.xlu0 %v2975_v43, %s3353_s28 }
  0x86   : > { %442 = vrot.lane.b32.xlu1 %v2989_v44, %s3349_s22  ;;  %422 = vrot.lane.b32.xlu0 %v2989_v44, %s5648_s17 }
  0x8a   : > { %482 = vrot.lane.b32.xlu1 %v2989_v44, %s3348_s23  ;;  %462 = vrot.lane.b32.xlu0 %v2989_v44, %s3346_s15 }
  0x8e   : > { %522 = vrot.lane.b32.xlu1 %v2989_v44, %s3350_s24  ;;  %502 = vrot.lane.b32.xlu0 %v2989_v44, %s3351_s25 }
  0x92   : > { %562 = vrot.lane.b32.xlu1 %v2989_v44, %s3352_s27  ;;  %542 = vrot.lane.b32.xlu0 %v2989_v44, %s3353_s28 }
  0x96   : > { %292 = vrot.lane.b32.xlu1 %v2974_v45, %s3349_s22  ;;  %272 = vrot.lane.b32.xlu0 %v2974_v45, %s5648_s17 }
  0x9a   : > { %332 = vrot.lane.b32.xlu1 %v2974_v45, %s3348_s23  ;;  %312 = vrot.lane.b32.xlu0 %v2974_v45, %s3346_s15 }
  0x9e   : > { %372 = vrot.lane.b32.xlu1 %v2974_v45, %s3350_s24  ;;  %352 = vrot.lane.b32.xlu0 %v2974_v45, %s3351_s25 }
  0xa2   : > { %412 = vrot.lane.b32.xlu1 %v2974_v45, %s3352_s27  ;;  %392 = vrot.lane.b32.xlu0 %v2974_v45, %s3353_s28 }
  0xa6   : > { %452 = vrot.lane.b32.xlu1 %v2990_v46, %s3349_s22  ;;  %432 = vrot.lane.b32.xlu0 %v2990_v46, %s5648_s17  ;;  %s3024_s22 = sld [smem:[#allocation10 + $0x16]]  ;;  %s3971_s17 = sld [smem:[#allocation10 + $0x54]] }
  0xaa   : > { %492 = vrot.lane.b32.xlu1 %v2990_v46, %s3348_s23  ;;  %472 = vrot.lane.b32.xlu0 %v2990_v46, %s3346_s15  ;;  %s3017_s15 = sld [smem:[#allocation10 + $0xf]]  ;;  %s3066_s23 = sld [smem:[#allocation10 + $0x40]] }
  0xae   : > { %532 = vrot.lane.b32.xlu1 %v2990_v46, %s3350_s24  ;;  %512 = vrot.lane.b32.xlu0 %v2990_v46, %s3351_s25  ;;  %s3073_s24 = sld [smem:[#allocation10 + $0x47]]  ;;  %s3031_s25 = sld [smem:[#allocation10 + $0x1d]] }
  0xb0   : > { %v953_v39 = vstv %s3017_s15  ;;  %s3067_s15 = sld [smem:[#allocation10 + $0x41]] }
  0xb2   : > { %572 = vrot.lane.b32.xlu1 %v2990_v46, %s3352_s27  ;;  %552 = vrot.lane.b32.xlu0 %v2990_v46, %s3353_s28  ;;  %s3080_s27 = sld [smem:[#allocation10 + $0x4e]]  ;;  %s3038_s28 = sld [smem:[#allocation10 + $0x24]] }
  0xe8   : > { %v303_v47 = vpop.permute.xlu1 %302  ;;  %v262_v48 = vpop.permute.xlu0 %261 }
  0xe9   : > { %305 = vst.msk [vmem:[#allocation4 + $0x5] sm:$0x1] %vm264_vm4, %v303_v47  ;;  %265 = vst.msk [vmem:[#allocation4 + $0x3] sm:$0x1] %vm264_vm4, %v262_v48  ;;  %v973_v47 = vstv %s3066_s23  ;;  %s3025_s23 = sld [smem:[#allocation10 + $0x17]] }
  0xec   : > { %v323_v49 = vpop.permute.xlu1 %322  ;;  %v283_v50 = vpop.permute.xlu0 %282 }
  0xed   : > { %325 = vst.msk [vmem:[#allocation4 + $0x6] sm:$0x1] %vm264_vm4, %v323_v49  ;;  %285 = vst.msk [vmem:[#allocation4 + $0x4] sm:$0x1] %vm264_vm4, %v283_v50 }
  0xf0   : > { %v363_v51 = vpop.permute.xlu1 %362  ;;  %v343_v52 = vpop.permute.xlu0 %342 }
  0xf1   : > { %365 = vst.msk [vmem:[#allocation4 + $0x8] sm:$0x1] %vm264_vm4, %v363_v51  ;;  %345 = vst.msk [vmem:[#allocation4 + $0x7] sm:$0x1] %vm264_vm4, %v343_v52 }
  0xf4   : > { %v403_v53 = vpop.permute.xlu1 %402  ;;  %v383_v54 = vpop.permute.xlu0 %382 }
  0xf5   : > { %405 = vst.msk [vmem:[#allocation4 + $0xa] sm:$0x1] %vm264_vm4, %v403_v53  ;;  %385 = vst.msk [vmem:[#allocation4 + $0x9] sm:$0x1] %vm264_vm4, %v383_v54 }
  0xf8   : > { %v3599_v56 = vld [vmem:[#allocation4] sm:$0xff]  ;;  %v443_v57 = vpop.permute.xlu1 %442  ;;  %v423_v58 = vpop.permute.xlu0 %422 }
  0xf9   : > { %445 = vst.msk [vmem:[#allocation4 + $0xc] sm:$0x1] %vm264_vm4, %v443_v57  ;;  %425 = vst.msk [vmem:[#allocation4 + $0xb] sm:$0x1] %vm264_vm4, %v423_v58  ;;  %v888_v59 = vmul.f32 %v887_v55, %v3599_v56  ;;  %v1154_v21 = vmul.f32 %v1153_v18, %v3599_v56  ;;  %v914_v28 = vmul.f32 %v913_v22, %v3599_v56  ;;  %v993_v57 = vstv %s3024_s22  ;;  %s3074_s22 = sld [smem:[#allocation10 + $0x48]] }
  0xfa   : > { %v954_v46 = vmul.f32 %v953_v39, %v3599_v56 }
  0xfb   : > { %892 = vrot.lane.b32.xlu0 %v888_v59, %s3354_s30  ;;  %v920_v33 = vrot.slane %v914_v28, 1 }
  0xfc   : > { %v483_v60 = vpop.permute.xlu1 %482  ;;  %v463_v61 = vpop.permute.xlu0 %462  ;;  %v960_v54 = vrot.slane %v954_v46, 2 }
  0xfd   : > { %485 = vst.msk [vmem:[#allocation4 + $0xe] sm:$0x1] %vm264_vm4, %v483_v60  ;;  %465 = vst.msk [vmem:[#allocation4 + $0xd] sm:$0x1] %vm264_vm4, %v463_v61 }
 0x100   : > { %v523_v62 = vpop.permute.xlu1 %522  ;;  %v503_v63 = vpop.permute.xlu0 %502 }
 0x101   : > { %525 = vst.msk [vmem:[#allocation4 + $0x10] sm:$0x1] %vm264_vm4, %v523_v62  ;;  %505 = vst.msk [vmem:[#allocation4 + $0xf] sm:$0x1] %vm264_vm4, %v503_v63 }
 0x104   : > { %v563_v0 = vpop.permute.xlu1 %562  ;;  %v543_v1 = vpop.permute.xlu0 %542 }
 0x105   : > { %565 = vst.msk [vmem:[#allocation4 + $0x12] sm:$0x1] %vm264_vm4, %v563_v0  ;;  %545 = vst.msk [vmem:[#allocation4 + $0x11] sm:$0x1] %vm264_vm4, %v543_v1  ;;  %v994_v1 = vmul.f32 %v993_v57, %v3599_v56 }
 0x108   : > { %v3611_v2 = vld [vmem:[#allocation4 + $0x8] sm:$0xff]  ;;  %v293_v3 = vpop.permute.xlu1 %292  ;;  %v273_v4 = vpop.permute.xlu0 %272 }
 0x109   : > { %295 = vst.msk [vmem:[#allocation5 + $0x4] sm:$0x1] %vm264_vm4, %v293_v3  ;;  %275 = vst.msk [vmem:[#allocation5 + $0x3] sm:$0x1] %vm264_vm4, %v273_v4  ;;  %v889_v5 = vmul.f32 %v887_v55, %v3611_v2  ;;  %v3642_v24 = vmul.f32 %v913_v22, %v3611_v2  ;;  %v3661_v42 = vmul.f32 %v953_v39, %v3611_v2  ;;  %v1013_v3 = vstv %s3073_s24  ;;  %s3032_s24 = sld [smem:[#allocation10 + $0x1e]] }
 0x10a   : > { %v1155_v49 = vmul.f32 %v1153_v18, %v3611_v2  ;;  %v3683_v61 = vmul.f32 %v993_v57, %v3611_v2 }
 0x10b   : > { %894 = vrot.lane.b32.xlu1 %v889_v5, %s3354_s30  ;;  %v921_v30 = vrot.slane %v3642_v24, 1  ;;  %v961_v50 = vrot.slane %v3661_v42, 2 }
 0x10c   : > { %v333_v6 = vpop.permute.xlu1 %332  ;;  %v313_v7 = vpop.permute.xlu0 %312  ;;  %v3663_v43 = vld [vmem:[#allocation4 + $0x10] sm:$0x3f]  ;;  %v1001_v5 = vrot.slane %v3683_v61, 3 }
 0x10d   : > { %335 = vst.msk [vmem:[#allocation5 + $0x6] sm:$0x1] %vm264_vm4, %v333_v6  ;;  %315 = vst.msk [vmem:[#allocation5 + $0x5] sm:$0x1] %vm264_vm4, %v313_v7  ;;  %v922_v36 = vsel %vm697_vm5, %v920_v33, %v921_v30  ;;  %v916_v52 = vmul.f32 %v913_v22, %v3663_v43  ;;  %v962_v58 = vsel %vm730_vm6, %v960_v54, %v961_v50  ;;  %v1073_v33 = vstv %s3038_s28  ;;  %s3046_s28 = sld [smem:[#allocation10 + $0x2c]] }
 0x10f   : > { %v923_v62 = vrot.slane %v916_v52, 1 }
 0x110   : > { %v373_v8 = vpop.permute.xlu1 %372  ;;  %v353_v9 = vpop.permute.xlu0 %352 }
 0x111   : > { %375 = vst.msk [vmem:[#allocation5 + $0x8] sm:$0x1] %vm264_vm4, %v373_v8  ;;  %355 = vst.msk [vmem:[#allocation5 + $0x7] sm:$0x1] %vm264_vm4, %v353_v9  ;;  %v924_v7 = vsel %vm697_vm5, %v921_v30, %v923_v62  ;;  %v956_v9 = vmul.f32 %v953_v39, %v3663_v43  ;;  %v996_v30 = vmul.f32 %v993_v57, %v3663_v43 }
 0x114   : > { %v413_v10 = vpop.permute.xlu1 %412  ;;  %v393_v11 = vpop.permute.xlu0 %392 }
 0x115   : > { %415 = vst.msk [vmem:[#allocation5 + $0xa] sm:$0x1] %vm264_vm4, %v413_v10  ;;  %395 = vst.msk [vmem:[#allocation5 + $0x9] sm:$0x1] %vm264_vm4, %v393_v11  ;;  %v1000_v10 = vrot.slane %v994_v1, 3  ;;  %v1133_v1 = vstv %s3094_s4  ;;  %s3012_s4 = sld [smem:[#allocation10 + $0xa]] }
 0x118   : > { %v3630_v13 = vld [vmem:[#allocation5] sm:$0xff]  ;;  %v453_v15 = vpop.permute.xlu1 %452  ;;  %v433_v16 = vpop.permute.xlu0 %432 }
 0x119   : > { %455 = vst.msk [vmem:[#allocation5 + $0xc] sm:$0x1] %vm264_vm4, %v453_v15  ;;  %435 = vst.msk [vmem:[#allocation5 + $0xb] sm:$0x1] %vm264_vm4, %v433_v16  ;;  %v901_v17 = vmul.f32 %v900_v12, %v3630_v13  ;;  %v1167_v29 = vmul.f32 %v1166_v23, %v3630_v13  ;;  %v934_v37 = vmul.f32 %v933_v34, %v3630_v13 }
 0x11a   : > { %v974_v55 = vmul.f32 %v973_v47, %v3630_v13  ;;  %v1014_v11 = vmul.f32 %v1013_v3, %v3630_v13  ;;  %v1002_v15 = vsel %vm763_vm7, %v1000_v10, %v1001_v5  ;;  %v1134_v10 = vmul.f32 %v1133_v1, %v3630_v13 }
 0x11b   : > { %905 = vrot.lane.b32.xlu0 %v901_v17, %s3354_s30  ;;  %v940_v44 = vrot.slane %v934_v37, 1  ;;  %v3722_v37 = vmul.f32 %v1073_v33, %v3611_v2 }
 0x11c   : > { %v493_v19 = vpop.permute.xlu1 %492  ;;  %v473_v20 = vpop.permute.xlu0 %472  ;;  %v980_v0 = vrot.slane %v974_v55, 2  ;;  %v1113_v55 = vstv %s3045_s3  ;;  %s3862_s3 = sld [smem:[#allocation10 + $0x3]] }
 0x11d   : > { %495 = vst.msk [vmem:[#allocation5 + $0xe] sm:$0x1] %vm264_vm4, %v493_v19  ;;  %475 = vst.msk [vmem:[#allocation5 + $0xd] sm:$0x1] %vm264_vm4, %v473_v20  ;;  %v963_v19 = vrot.slane %v956_v9, 2 }
 0x11f   : > { %1158 = vrot.lane.b32.xlu0 %v1154_v21, %s3355_s20  ;;  %v1020_v21 = vrot.slane %v1014_v11, 3  ;;  %v964_v28 = vsel %vm730_vm6, %v961_v50, %v963_v19  ;;  %v1179_v11 = vstv %s3011_s7  ;;  %s3871_s7 = sld [smem:[#allocation10 + $0x34]] }
 0x120   : > { %v533_v26 = vpop.permute.xlu1 %532  ;;  %v513_v27 = vpop.permute.xlu0 %512 }
 0x121   : > { %535 = vst.msk [vmem:[#allocation5 + $0x10] sm:$0x1] %vm264_vm4, %v533_v26  ;;  %515 = vst.msk [vmem:[#allocation5 + $0xf] sm:$0x1] %vm264_vm4, %v513_v27 }
 0x123   : > { %1171 = vrot.lane.b32.xlu0 %v1167_v29, %s3355_s20 }
 0x124   : > { %v573_v31 = vpop.permute.xlu1 %572  ;;  %v553_v32 = vpop.permute.xlu0 %552 }
 0x125   : > { %575 = vst.msk [vmem:[#allocation5 + $0x12] sm:$0x1] %vm264_vm4, %v573_v31  ;;  %555 = vst.msk [vmem:[#allocation5 + $0x11] sm:$0x1] %vm264_vm4, %v553_v32 }
 0x127   : > { %925 = vrot.lane.b32.xlu0 %v922_v36, %s3354_s30 }
 0x128   : > { %v3656_v38 = vld [vmem:[#allocation5 + $0x8] sm:$0xff] }
 0x129   : > { %v902_v40 = vmul.f32 %v900_v12, %v3656_v38  ;;  %v935_v41 = vmul.f32 %v933_v34, %v3656_v38  ;;  %v3671_v51 = vmul.f32 %v973_v47, %v3656_v38  ;;  %v1168_v59 = vmul.f32 %v1166_v23, %v3656_v38 }
 0x12a   : > { %v3692_v6 = vmul.f32 %v1013_v3, %v3656_v38  ;;  %v1033_v12 = vstv %s3031_s25  ;;  %v1053_v23 = vstv %s3080_s27  ;;  %s3081_s25 = sld [smem:[#allocation10 + $0x4f]]  ;;  %s3088_s27 = sld [smem:[#allocation10 + $0x56]] }
 0x12b   : > { %907 = vrot.lane.b32.xlu1 %v902_v40, %s3354_s30  ;;  %v941_v45 = vrot.slane %v935_v41, 1  ;;  %v981_v60 = vrot.slane %v3671_v51, 2  ;;  %v3702_v17 = vmul.f32 %v1033_v12, %v3611_v2  ;;  %v1034_v22 = vmul.f32 %v1033_v12, %v3599_v56 }
 0x12c   : > { %v3675_v53 = vld [vmem:[#allocation5 + $0x10] sm:$0x3f]  ;;  %v1021_v16 = vrot.slane %v3692_v6, 3  ;;  %v3712_v27 = vmul.f32 %v1053_v23, %v3656_v38  ;;  %v1054_v32 = vmul.f32 %v1053_v23, %v3630_v13  ;;  %v1003_v40 = vrot.slane %v996_v30, 3 }
 0x12d   : > { %v942_v48 = vsel %vm697_vm5, %v940_v44, %v941_v45  ;;  %v936_v63 = vmul.f32 %v933_v34, %v3675_v53  ;;  %v982_v4 = vsel %vm730_vm6, %v980_v0, %v981_v60  ;;  %v976_v20 = vmul.f32 %v973_v47, %v3675_v53 }
 0x12e   : > { %945 = vrot.lane.b32.xlu0 %v942_v48, %s3354_s30  ;;  %v1022_v24 = vsel %vm763_vm7, %v1020_v21, %v1021_v16  ;;  %v1041_v26 = vrot.slane %v3702_v17, 4  ;;  %v1040_v31 = vrot.slane %v1034_v22, 4  ;;  %v1061_v36 = vrot.slane %v3712_v27, 4 }
 0x12f   : > { %1160 = vrot.lane.b32.xlu1 %v1155_v49, %s3355_s20  ;;  %v943_v8 = vrot.slane %v936_v63, 1  ;;  %v983_v29 = vrot.slane %v976_v20, 2  ;;  %v1016_v41 = vmul.f32 %v1013_v3, %v3675_v53  ;;  %v1060_v42 = vrot.slane %v1054_v32, 4 }
 0x130   : > { %v1042_v34 = vsel %vm176_vm0, %v1040_v31, %v1041_v26  ;;  %v1074_v44 = vmul.f32 %v1073_v33, %v3599_v56  ;;  %v1081_v47 = vrot.slane %v3722_v37, 5  ;;  %v1004_v49 = vsel %vm763_vm7, %v1001_v5, %v1003_v40 }
 0x131   : > { %v944_v18 = vsel %vm697_vm5, %v941_v45, %v943_v8  ;;  %v984_v39 = vsel %vm730_vm6, %v981_v60, %v983_v29  ;;  %v1093_v45 = vstv %s3087_s29  ;;  %v1062_v46 = vsel %vm176_vm0, %v1060_v42, %v1061_v36  ;;  %s3095_s29 = sld [smem:[#allocation10 + $0x5d]] }
 0x132   : > { %965 = vrot.lane.b32.xlu0 %v962_v58, %s3354_s30  ;;  %v3732_v48 = vmul.f32 %v1093_v45, %v3656_v38  ;;  %v1023_v50 = vrot.slane %v1016_v41, 3  ;;  %v1036_v51 = vmul.f32 %v1033_v12, %v3663_v43  ;;  %v1080_v52 = vrot.slane %v1074_v44, 5 }
 0x133   : > { %1173 = vrot.lane.b32.xlu1 %v1168_v59, %s3355_s20  ;;  %v1094_v54 = vmul.f32 %v1093_v45, %v3630_v13  ;;  %v3742_v59 = vmul.f32 %v1113_v55, %v3611_v2  ;;  %v1056_v62 = vmul.f32 %v1053_v23, %v3675_v53  ;;  %v1114_v0 = vmul.f32 %v1113_v55, %v3599_v56 }
 0x134   : > { %v1082_v57 = vsel %vm828_vm8, %v1080_v52, %v1081_v47  ;;  %v1101_v58 = vrot.slane %v3732_v48, 5  ;;  %v1024_v60 = vsel %vm763_vm7, %v1021_v16, %v1023_v50  ;;  %v1043_v61 = vrot.slane %v1036_v51, 4 }
 0x135   : > { %v1100_v63 = vrot.slane %v1094_v54, 5  ;;  %v3752_v5 = vmul.f32 %v1133_v1, %v3656_v38  ;;  %v1076_v8 = vmul.f32 %v1073_v33, %v3663_v43  ;;  %v1120_v9 = vrot.slane %v1114_v0, 6 }
 0x136   : > { %985 = vrot.lane.b32.xlu0 %v982_v4, %s3354_s30  ;;  %v1121_v4 = vrot.slane %v3742_v59, 6  ;;  %v1044_v6 = vsel %vm176_vm0, %v1041_v26, %v1043_v61  ;;  %v3762_v16 = vmul.f32 %v1179_v11, %v3611_v2  ;;  %v1096_v19 = vmul.f32 %v1093_v45, %v3675_v53 }
 0x137   : > { %927 = vrot.lane.b32.xlu1 %v924_v7, %s3354_s30  ;;  %v1102_v3 = vsel %vm828_vm8, %v1100_v63, %v1101_v58  ;;  %v1063_v7 = vrot.slane %v1056_v62, 4  ;;  %v1140_v20 = vrot.slane %v1134_v10, 6  ;;  %v1180_v21 = vmul.f32 %v1179_v11, %v3599_v56 }
 0x138   : > { %v1122_v12 = vsel %vm861_vm9, %v1120_v9, %v1121_v4  ;;  %v1199_v22 = vstv %s3060_s8  ;;  %v1116_v29 = vmul.f32 %v1113_v55, %v3663_v43  ;;  %v1219_v32 = vstv %s3018_s14  ;;  %s3061_s8 = sld [smem:[#allocation10 + $0x3b]]  ;;  %s3019_s14 = sld [smem:[#allocation10 + $0x11]] }
 0x139   : > { %v1064_v17 = vsel %vm176_vm0, %v1061_v36, %v1063_v7  ;;  %v3772_v26 = vmul.f32 %v1199_v22, %v3656_v38  ;;  %v1186_v30 = vrot.slane %v1180_v21, 1  ;;  %v1200_v31 = vmul.f32 %v1199_v22, %v3630_v13 }
 0x13a   : > { %1005 = vrot.lane.b32.xlu0 %v1002_v15, %s3354_s30  ;;  %v1141_v15 = vrot.slane %v3752_v5, 6  ;;  %v3782_v36 = vmul.f32 %v1219_v32, %v3611_v2  ;;  %v1136_v40 = vmul.f32 %v1133_v1, %v3675_v53  ;;  %v1220_v42 = vmul.f32 %v1219_v32, %v3599_v56 }
 0x13b   : > { %947 = vrot.lane.b32.xlu1 %v944_v18, %s3354_s30  ;;  %v1083_v18 = vrot.slane %v1076_v8, 5  ;;  %v1206_v41 = vrot.slane %v1200_v31, 1  ;;  %v1239_v44 = vstv %s3067_s15  ;;  %v1182_v50 = vmul.f32 %v1179_v11, %v3663_v43  ;;  %s3356_s15 = smov 125  }
 0x13c   : > { %v1142_v23 = vsel %vm861_vm9, %v1140_v20, %v1141_v15  ;;  %v1226_v51 = vrot.slane %v1220_v42, 2  ;;  %v1240_v52 = vmul.f32 %v1239_v44, %v3630_v13  ;;  %v1259_v54 = vstv %s3025_s23  ;;  %s3068_s23 = sld [smem:[#allocation10 + $0x42]] }
 0x13d   : > { %v1084_v27 = vsel %vm828_vm8, %v1081_v47, %v1083_v18  ;;  %v3792_v47 = vmul.f32 %v1239_v44, %v3656_v38  ;;  %v1202_v61 = vmul.f32 %v1199_v22, %v3675_v53  ;;  %v1260_v63 = vmul.f32 %v1259_v54, %v3599_v56 }
 0x13e   : > { %1025 = vrot.lane.b32.xlu0 %v1022_v24, %s3354_s30  ;;  %v1187_v24 = vrot.slane %v3762_v16, 1  ;;  %v1246_v62 = vrot.slane %v1240_v52, 2  ;;  %v1279_v0 = vstv %s3074_s22  ;;  %v1222_v7 = vmul.f32 %v1219_v32, %v3663_v43  ;;  %s3910_s22 = sld [smem:[#allocation10 + $0x18]] }
 0x13f   : > { %967 = vrot.lane.b32.xlu1 %v964_v28, %s3354_s30  ;;  %v1103_v28 = vrot.slane %v1096_v19, 5  ;;  %v1266_v8 = vrot.slane %v1260_v63, 3  ;;  %v1280_v9 = vmul.f32 %v1279_v0, %v3630_v13  ;;  %v1299_v10 = vstv %s3032_s24  ;;  %s3912_s24 = sld [smem:[#allocation10]] }
 0x140   : > { %v1188_v33 = vsel %vm697_vm5, %v1186_v30, %v1187_v24  ;;  %v1242_v18 = vmul.f32 %v1239_v44, %v3675_v53  ;;  %v1300_v20 = vmul.f32 %v1299_v10, %v3599_v56  ;;  %v1319_v21 = vstv %s3081_s25  ;;  %s3924_s25 = sld [smem:[#allocation10 + $0x7]] }
 0x141   : > { %v1104_v37 = vsel %vm828_vm8, %v1101_v58, %v1103_v28  ;;  %v3802_v58 = vmul.f32 %v1259_v54, %v3611_v2  ;;  %v1286_v19 = vrot.slane %v1280_v9, 3  ;;  %v1262_v28 = vmul.f32 %v1259_v54, %v3663_v43 }
 0x142   : > { %1045 = vrot.lane.b32.xlu0 %v1042_v34, %s3354_s30  ;;  %v1207_v34 = vrot.slane %v3772_v26, 1  ;;  %v1320_v30 = vmul.f32 %v1319_v21, %v3630_v13  ;;  %v1359_v42 = vstv %s3088_s27  ;;  %v1379_v52 = vstv %s3046_s28  ;;  %s3930_s27 = sld [smem:[#allocation10 + $0x15]]  ;;  %s3932_s28 = sld [smem:[#allocation10 + $0x1c]] }
 0x143   : > { %987 = vrot.lane.b32.xlu1 %v984_v39, %s3354_s30  ;;  %v1123_v39 = vrot.slane %v1116_v29, 6  ;;  %v1306_v29 = vrot.slane %v1300_v20, 4  ;;  %v1399_v63 = vstv %s3095_s29  ;;  %s3937_s29 = sld [smem:[#allocation10 + $0x23]] }
 0x144   : > { %v1208_v45 = vsel %vm697_vm5, %v1206_v41, %v1207_v34 }
 0x145   : > { %v1124_v48 = vsel %vm861_vm9, %v1121_v4, %v1123_v39  ;;  %v3812_v4 = vmul.f32 %v1279_v0, %v3656_v38  ;;  %v1282_v39 = vmul.f32 %v1279_v0, %v3675_v53 }
 0x146   : > { %1065 = vrot.lane.b32.xlu0 %v1062_v46, %s3354_s30  ;;  %v1227_v46 = vrot.slane %v3782_v36, 2 }
 0x147   : > { %1007 = vrot.lane.b32.xlu1 %v1004_v49, %s3354_s30  ;;  %v1143_v49 = vrot.slane %v1136_v40, 6  ;;  %v1326_v40 = vrot.slane %v1320_v30, 4  ;;  %v1402_v30 = vmul.f32 %v1399_v63, %v3675_v53 }
 0x148   : > { %v1228_v55 = vsel %vm730_vm6, %v1226_v51, %v1227_v46  ;;  %v1360_v51 = vmul.f32 %v1359_v42, %v3630_v13 }
 0x149   : > { %v1144_v59 = vsel %vm861_vm9, %v1141_v15, %v1143_v49  ;;  %v3822_v15 = vmul.f32 %v1299_v10, %v3611_v2  ;;  %v1302_v49 = vmul.f32 %v1299_v10, %v3663_v43 }
 0x14a   : > { %1085 = vrot.lane.b32.xlu0 %v1082_v57, %s3354_s30  ;;  %v1247_v57 = vrot.slane %v3792_v47, 2 }
 0x14b   : > { %1027 = vrot.lane.b32.xlu1 %v1024_v60, %s3354_s30  ;;  %v1189_v60 = vrot.slane %v1182_v50, 1 }
 0x14c   : > { %v1248_v1 = vsel %vm730_vm6, %v1246_v62, %v1247_v57  ;;  %v1380_v62 = vmul.f32 %v1379_v52, %v3599_v56 }
 0x14d   : > { %v1190_v5 = vsel %vm697_vm5, %v1187_v24, %v1189_v60  ;;  %v1321_v24 = vmul.f32 %v1319_v21, %v3656_v38  ;;  %v1322_v60 = vmul.f32 %v1319_v21, %v3675_v53  ;;  %v1382_v21 = vmul.f32 %v1379_v52, %v3663_v43 }
 0x14e   : > { %1105 = vrot.lane.b32.xlu0 %v1102_v3, %s3354_s30  ;;  %v1267_v3 = vrot.slane %v3802_v58, 3 }
 0x14f   : > { %1047 = vrot.lane.b32.xlu1 %v1044_v6, %s3354_s30  ;;  %v1209_v6 = vrot.slane %v1202_v61, 1  ;;  %v1366_v61 = vrot.slane %v1360_v51, 5 }
 0x150   : > { %v1268_v11 = vsel %vm763_vm7, %v1266_v8, %v1267_v3  ;;  %v1400_v8 = vmul.f32 %v1399_v63, %v3630_v13 }
 0x151   : > { %v1210_v16 = vsel %vm697_vm5, %v1207_v34, %v1209_v6 }
 0x152   : > { %1125 = vrot.lane.b32.xlu0 %v1122_v12, %s3354_s30  ;;  %v1287_v12 = vrot.slane %v3812_v4, 3 }
 0x153   : > { %1067 = vrot.lane.b32.xlu1 %v1064_v17, %s3354_s30  ;;  %v1229_v17 = vrot.slane %v1222_v7, 2  ;;  %v1386_v7 = vrot.slane %v1380_v62, 6 }
 0x154   : > { %v1288_v22 = vsel %vm763_vm7, %v1286_v19, %v1287_v12 }
 0x155   : > { %v1230_v26 = vsel %vm730_vm6, %v1227_v46, %v1229_v17  ;;  %v1361_v46 = vmul.f32 %v1359_v42, %v3656_v38 }
 0x156   : > { %1145 = vrot.lane.b32.xlu0 %v1142_v23, %s3354_s30  ;;  %v1307_v23 = vrot.slane %v3822_v15, 4  ;;  %v1362_v15 = vmul.f32 %v1359_v42, %v3675_v53 }
 0x157   : > { %1087 = vrot.lane.b32.xlu1 %v1084_v27, %s3354_s30  ;;  %v1249_v27 = vrot.slane %v1242_v18, 2  ;;  %v1419_v18 = vstv %s3862_s3  ;;  %s3941_s3 = sld [smem:[#allocation10 + $0x49]] }
 0x158   : > { %v1308_v32 = vsel %vm176_vm0, %v1306_v29, %v1307_v23  ;;  %v1369_v20 = vrot.slane %v1362_v15, 5  ;;  %v1389_v29 = vrot.slane %v1382_v21, 6  ;;  %v4016_v15 = vstv %s3930_s27  ;;  %s4046_s27 = sld [smem:[#allocation10 + $0x20]] }
 0x159   : > { %v1250_v36 = vsel %vm730_vm6, %v1247_v57, %v1249_v27  ;;  %v1381_v57 = vmul.f32 %v1379_v52, %v3611_v2  ;;  %v3939_v52 = vstv %s3068_s23  ;;  %s3964_s23 = sld [smem:[#allocation10 + $0x46]] }
 0x15a   : > { %1191 = vrot.lane.b32.xlu0 %v1188_v33, %s3355_s20  ;;  %v1327_v33 = vrot.slane %v1321_v24, 4  ;;  %v1506_v62 = vmul.f32 %v3939_v52, %v3630_v13 }
 0x15b   : > { %1107 = vrot.lane.b32.xlu1 %v1104_v37, %s3354_s30  ;;  %v1269_v37 = vrot.slane %v1262_v28, 3 }
 0x15c   : > { %v1328_v44 = vsel %vm176_vm0, %v1326_v40, %v1327_v33  ;;  %v1409_v40 = vrot.slane %v1402_v30, 6 }
 0x15d   : > { %v1270_v47 = vsel %vm763_vm7, %v1267_v3, %v1269_v37  ;;  %v3860_v3 = vmul.f32 %v1399_v63, %v3656_v38  ;;  %v3974_v63 = vstv %s3910_s22  ;;  %s3993_s22 = sld [smem:[#allocation10 + $0x26]] }
 0x15e   : > { %1211 = vrot.lane.b32.xlu0 %v1208_v45, %s3355_s20 }
 0x15f   : > { %1127 = vrot.lane.b32.xlu1 %v1124_v48, %s3354_s30  ;;  %v1289_v48 = vrot.slane %v1282_v39, 3  ;;  %v1407_v10 = vrot.slane %v3860_v3, 6 }
 0x161   : > { %v1290_v58 = vsel %vm763_vm7, %v1287_v12, %v1289_v48 }
 0x162   : > { %1231 = vrot.lane.b32.xlu0 %v1228_v55, %s3355_s20  ;;  %v1367_v55 = vrot.slane %v1361_v46, 5 }
 0x163   : > { %1147 = vrot.lane.b32.xlu1 %v1144_v59, %s3354_s30  ;;  %s3039_s30 = sld [smem:[#allocation10 + $0x25]]  ;;  %v1309_v59 = vrot.slane %v1302_v49, 4  ;;  %v1410_v49 = vsel %vm861_vm9, %v1407_v10, %v1409_v40  ;;  %v4074_v40 = vstv %s3966_s21  ;;  %s4682_s21 = sld [smem:[#allocation10 + $0x2e]] }
 0x164   : > { %v1368_v0 = vsel %vm828_vm8, %v1366_v61, %v1367_v55  ;;  %v1370_v28 = vsel %vm828_vm8, %v1367_v55, %v1369_v20  ;;  %v1421_v55 = vmul.f32 %v1419_v18, %v3611_v2 }
 0x165   : > { %v1310_v4 = vsel %vm176_vm0, %v1307_v23, %v1309_v59  ;;  %v1445_v23 = vstv %s3012_s4  ;;  %s3943_s4 = sld [smem:[#allocation10 + $0x2a]] }
 0x166   : > { %1251 = vrot.lane.b32.xlu0 %v1248_v1, %s3355_s20  ;;  %v1387_v1 = vrot.slane %v1381_v57, 6  ;;  %v3888_v27 = vmul.f32 %v1445_v23, %v3611_v2 }
 0x167   : > { %1193 = vrot.lane.b32.xlu1 %v1190_v5, %s3355_s20  ;;  %v1329_v5 = vrot.slane %v1322_v60, 4  ;;  %v1448_v60 = vmul.f32 %v1445_v23, %v3663_v43 }
 0x168   : > { %v1388_v9 = vsel %vm861_vm9, %v1386_v7, %v1387_v1  ;;  %v1390_v39 = vsel %vm861_vm9, %v1387_v1, %v1389_v29 }
 0x169   : > { %v1339_v31 = vstv %s3039_s30  ;;  %s3926_s30 = sld [smem:[#allocation10 + $0xe]]  ;;  %v1455_v7 = vrot.slane %v1448_v60, 1 }
 0x16a   : > { %1271 = vrot.lane.b32.xlu0 %v1268_v11, %s3355_s20  ;;  %v1341_v34 = vmul.f32 %v1339_v31, %v3611_v2  ;;  %v1340_v41 = vmul.f32 %v1339_v31, %v3599_v56  ;;  %v1342_v6 = vmul.f32 %v1339_v31, %v3663_v43  ;;  %v1330_v11 = vsel %vm176_vm0, %v1327_v33, %v1329_v5 }
 0x16b   : > { %1213 = vrot.lane.b32.xlu1 %v1210_v16, %s3355_s20  ;;  %v1406_v16 = vrot.slane %v1400_v8, 6  ;;  %v1446_v31 = vmul.f32 %v1445_v23, %v3599_v56  ;;  %v1465_v33 = vstv %s3061_s8  ;;  %s3945_s8 = sld [smem:[#allocation10 + $0x31]]  ;;  %v3991_v5 = vmul.f32 %v3974_v63, %v3611_v2 }
 0x16c   : > { %v1347_v45 = vrot.slane %v1341_v34, 5  ;;  %v1346_v50 = vrot.slane %v1340_v41, 5  ;;  %v1349_v12 = vrot.slane %v1342_v6, 5  ;;  %v3902_v37 = vmul.f32 %v1465_v33, %v3656_v38 }
 0x16d   : > { %v1408_v17 = vsel %vm861_vm9, %v1406_v16, %v1407_v10  ;;  %v3884_v24 = vpop.permute.xlu0 %892  ;;  %v1452_v41 = vrot.slane %v1446_v31, 1  ;;  %v1466_v42 = vmul.f32 %v1465_v33, %v3630_v13  ;;  %v1468_v8 = vmul.f32 %v1465_v33, %v3675_v53 }
 0x16e   : > { %1291 = vrot.lane.b32.xlu0 %v1288_v22, %s3355_s20  ;;  %v1348_v54 = vsel %vm828_vm8, %v1346_v50, %v1347_v45  ;;  %v1350_v19 = vsel %vm828_vm8, %v1347_v45, %v1349_v12  ;;  %v1420_v22 = vmul.f32 %v1419_v18, %v3599_v56  ;;  %v1526_v12 = vmul.f32 %v3974_v63, %v3599_v56 }
 0x16f   : > { %1233 = vrot.lane.b32.xlu1 %v1230_v26, %s3355_s20  ;;  %v1432_v26 = vstv %s3871_s7  ;;  %v1472_v50 = vrot.slane %v1466_v42, 1  ;;  %s3998_s7 = sld [smem:[#allocation10 + $0x2d]]  ;;  %v4006_v10 = vstv %s3926_s30  ;;  %v4019_v16 = vstv %s3932_s28  ;;  %s4031_s30 = sld [smem:[#allocation10 + $0x19]] }
 0x170   : > { %v1434_v3 = vmul.f32 %v1432_v26, %v3656_v38  ;;  %v4034_v20 = vstv %s3943_s4  ;;  %v5655_v23 = vrot.slane %v3991_v5, 3  ;;  %v1475_v30 = vrot.slane %v1468_v8, 1  ;;  %s4055_s28 = sld [smem:[#allocation10 + $0x57]]  ;;  %s4084_s4 = sld [smem:[#allocation10 + $0x3c]] }
 0x172   : > { %1311 = vrot.lane.b32.xlu0 %v1308_v32, %s3355_s20  ;;  %v1433_v32 = vmul.f32 %v1432_v26, %v3630_v13 }
 0x173   : > { %1253 = vrot.lane.b32.xlu1 %v1250_v36, %s3355_s20  ;;  %v1453_v36 = vrot.slane %v3888_v27, 1 }
 0x175   : > { %v1454_v46 = vsel %vm697_vm5, %v1452_v41, %v1453_v36  ;;  %v1456_v29 = vsel %vm697_vm5, %v1453_v36, %v1455_v7  ;;  %v4071_v36 = vstv %s3964_s23  ;;  %v4077_v41 = vstv %s3971_s17  ;;  %s4713_s17 = sld [smem:[#allocation10 + $0x5f]]  ;;  %s4813_s23 = sld [smem:[#allocation10 + $0x3d]] }
 0x176   : > { %1331 = vrot.lane.b32.xlu0 %v1328_v44, %s3355_s20  ;;  %v3908_v44 = vstv %s3019_s14  ;;  %s3958_s14 = sld [smem:[#allocation10 + $0x3f]]  ;;  %v4114_v7 = vstv %s3998_s7  ;;  %s3358_s7 = smov 123  }
 0x177   : > { %1273 = vrot.lane.b32.xlu1 %v1270_v47, %s3355_s20  ;;  %v1473_v47 = vrot.slane %v3902_v37, 1  ;;  %v3922_v48 = vmul.f32 %v3908_v44, %v3611_v2  ;;  %v1486_v51 = vmul.f32 %v3908_v44, %v3599_v56  ;;  %v1488_v31 = vmul.f32 %v3908_v44, %v3663_v43 }
 0x178   : > { %v4082_v44 = vstv %s3976_s0  ;;  %s3357_s0 = smov 124  }
 0x179   : > { %v1493_v57 = vrot.slane %v3922_v48, 2  ;;  %v1492_v61 = vrot.slane %v1486_v51, 2  ;;  %v1495_v60 = vrot.slane %v1488_v31, 2  ;;  %v4142_v31 = vstv %s4046_s27  ;;  %s3077_s27 = sld [smem:[#allocation10 + $0x4b]] }
 0x17a   : > { %1351 = vrot.lane.b32.xlu0 %v1348_v54, %s3355_s20  ;;  %v1474_v54 = vsel %vm697_vm5, %v1472_v50, %v1473_v47 }
 0x17b   : > { %1293 = vrot.lane.b32.xlu1 %v1290_v58, %s3355_s20  ;;  %v3954_v58 = vmul.f32 %v3939_v52, %v3656_v38  ;;  %v1494_v1 = vsel %vm730_vm6, %v1492_v61, %v1493_v57  ;;  %v1508_v61 = vmul.f32 %v3939_v52, %v3675_v53  ;;  %v4126_v52 = vstv %s4013_s10  ;;  %s4581_s10 = sld [smem:[#allocation10 + $0x51]] }
 0x17c   : > { %v4061_v33 = vstv %s3958_s14  ;;  %s4799_s14 = sld [smem:[#allocation10 + $0x36]] }
 0x17d   : > { %v5702_v25 = vrot.slane %v3954_v58, 2 }
 0x17e   : > { %1371 = vrot.lane.b32.xlu0 %v1368_v0, %s3355_s20  ;;  %v3980_v0 = vpop.permute.xlu1 %894 }
 0x17f   : > { %1313 = vrot.lane.b32.xlu1 %v1310_v4, %s3355_s20  ;;  %5696 = vst [vmem:[#allocation22_spill] sm:$0xff] %v3980_v0  ;;  %v5656_v4 = vrot.slane %v3954_v58, 2 }
 0x182   : > { %1391 = vrot.lane.b32.xlu0 %v1388_v9, %s3355_s20  ;;  %v4003_v9 = vstv %s3924_s25  ;;  %s4029_s25 = sld [smem:[#allocation10 + $0x50]] }
 0x183   : > { %1333 = vrot.lane.b32.xlu1 %v1330_v11, %s3355_s20  ;;  %v1512_v11 = vrot.slane %v1506_v62, 2  ;;  %v4108_v62 = vstv %s3993_s22  ;;  %s4835_s22 = sld [smem:[#allocation10 + $0x13]] }
 0x184   : > { %v4188_v6 = vmul.f32 %v4108_v62, %v3611_v2 }
 0x186   : > { %1411 = vrot.lane.b32.xlu0 %v1408_v17, %s3355_s20  ;;  %v4022_v17 = vstv %s3937_s29  ;;  %s4066_s29 = sld [smem:[#allocation10 + $0x5e]] }
 0x187   : > { %1353 = vrot.lane.b32.xlu1 %v1350_v19, %s3355_s20  ;;  %v4027_v19 = vstv %s3941_s3  ;;  %s4068_s3 = sld [smem:[#allocation10 + $0x35]] }
 0x188   : > { %v4044_v26 = vmul.f32 %v4027_v19, %v3656_v38  ;;  %v1546_v27 = vmul.f32 %v4027_v19, %v3630_v13 }
 0x18a   : > { %1424 = vrot.lane.b32.xlu0 %v1420_v22, %s3356_s15  ;;  %v1514_v22 = vsel %vm730_vm6, %v1512_v11, %v5656_v4  ;;  %v5654_v51 = vrot.slane %v4044_v26, 3  ;;  %v4123_v11 = vstv %s4011_s11  ;;  %s4616_s11 = sld [smem:[#allocation10 + $0x27]] }
 0x18b   : > { %1373 = vrot.lane.b32.xlu1 %v1370_v28, %s3355_s20  ;;  %v5662_v28 = vstv %s3945_s8 }
 0x18c   : > { %v4157_v8 = vstv %s4066_s29  ;;  %v686_v4 = vmul.f32 %v5662_v28, %v3630_v13  ;;  %s4936_s29 = sld [smem:[#allocation10 + $0x52]] }
 0x18d   : > { %v3898_v34 = vpop.permute.xlu0 %905 }
 0x18e   : > { %1437 = vrot.lane.b32.xlu0 %v1433_v32, %s3356_s15 }
 0x18f   : > { %1393 = vrot.lane.b32.xlu1 %v1390_v39, %s3355_s20  ;;  %v1532_v39 = vrot.slane %v1526_v12, 3  ;;  %v4129_v12 = vstv %s4031_s30  ;;  %s3028_s30 = sld [smem:[#allocation10 + $0x1a]] }
 0x191   : > { %v3914_v45 = vpop.permute.xlu0 %1158  ;;  %v1534_v50 = vsel %vm763_vm7, %v1532_v39, %v5655_v23  ;;  %v1496_v39 = vsel %vm730_vm6, %v1493_v57, %v1495_v60  ;;  %v4166_v57 = vmul.f32 %v4003_v9, %v3611_v2  ;;  %v4171_v60 = vstv %s4084_s4  ;;  %s4992_s4 = sld [smem:[#allocation10 + $0x59]] }
 0x192   : > { %5694 = vst [vmem:[#allocation20_spill] sm:$0xff] %v3914_v45  ;;  %1457 = vrot.lane.b32.xlu0 %v1454_v46, %s3356_s15  ;;  %v4089_v46 = vstv %s3978_s1  ;;  %s4415_s1 = sld [smem:[#allocation10 + $0x4a]] }
 0x193   : > { %1413 = vrot.lane.b32.xlu1 %v1410_v49, %s3355_s20  ;;  %s3956_s20 = sld [smem:[#allocation10 + $0x38]] }
 0x195   : > { %v3960_v59 = vpop.permute.xlu0 %1171 }
 0x196   : > { %5695 = vst [vmem:[#allocation21_spill] sm:$0xff] %v3960_v59  ;;  %1477 = vrot.lane.b32.xlu0 %v1474_v54, %s3356_s15  ;;  %v4099_v54 = vmul.f32 %v4082_v44, %v3611_v2  ;;  %v5707_v59 = vrot.slane %v3991_v5, 3 }
 0x197   : > { %1426 = vrot.lane.b32.xlu1 %v1421_v55, %s3356_s15  ;;  %v1476_v55 = vsel %vm697_vm5, %v1473_v47, %v1475_v30  ;;  %v4120_v47 = vstv %s4029_s25  ;;  %s3070_s25 = sld [smem:[#allocation10 + $0x44]] }
 0x198   : > { %v4139_v30 = vmul.f32 %v4120_v47, %v3656_v38  ;;  %v1586_v14 = vmul.f32 %v4120_v47, %v3630_v13 }
 0x199   : > { %v4024_v18 = vpop.permute.xlu0 %925  ;;  %v4058_v32 = vstv %s3956_s20  ;;  %s4086_s20 = sld [smem:[#allocation10 + $0x43]] }
 0x19a   : > { %1497 = vrot.lane.b32.xlu0 %v1494_v1, %s3356_s15  ;;  %v1552_v1 = vrot.slane %v1546_v27, 3  ;;  %v1515_v27 = vrot.slane %v1508_v61, 2  ;;  %v708_v2 = vmul.f32 %v4058_v32, %v3630_v13  ;;  %v1592_v23 = vrot.slane %v1586_v14, 4 }
 0x19b   : > { %1439 = vrot.lane.b32.xlu1 %v1434_v3, %s3356_s15  ;;  %v1566_v3 = vmul.f32 %v4082_v44, %v3599_v56  ;;  %v5706_v14 = vrot.slane %v4139_v30, 4 }
 0x19c   : > { %v1554_v56 = vsel %vm763_vm7, %v1552_v1, %v5654_v51  ;;  %v4160_v51 = vld [vmem:[#allocation4] sm:$0xff]  ;;  %v1516_v35 = vsel %vm730_vm6, %v5702_v25, %v1515_v27 }
 0x19d   : > { %v4036_v21 = vpop.permute.xlu1 %907  ;;  %v1572_v1 = vrot.slane %v1566_v3, 4  ;;  %v691_v48 = vmul.f32 %v4160_v51, %v4003_v9  ;;  %v4178_v3 = vmul.f32 %v4058_v32, %v3656_v38  ;;  %v724_v25 = vmul.f32 %v4160_v51, %v4006_v10 }
 0x19e   : > { %5697 = vst [vmem:[#allocation23_spill] sm:$0xff] %v4036_v21  ;;  %1517 = vrot.lane.b32.xlu0 %v1514_v22, %s3356_s15  ;;  %v4233_v21 = vld [vmem:[#allocation4 + $0x8] sm:$0xff] }
 0x19f   : > { %1459 = vrot.lane.b32.xlu1 %v1456_v29, %s3356_s15  ;;  %v5661_v29 = vrot.slane %v4099_v54, 4  ;;  %v4174_v61 = vstv %s4086_s20  ;;  %v698_v28 = vrot.slane %v691_v48, 1  ;;  %v5663_v48 = vrot.slane %v4188_v6, 5  ;;  %s5021_s20 = sld [smem:[#allocation10 + $0x2f]] }
 0x1a0   : > { %v4079_v42 = vpop.permute.xlu0 %945  ;;  %v4270_v0 = vmul.f32 %v4233_v21, %v4114_v7 }
 0x1a1   : > { %v4091_v49 = vpop.permute.xlu1 %1160 }
 0x1a2   : > { %5698 = vst [vmem:[#allocation24_spill] sm:$0xff] %v4091_v49  ;;  %1537 = vrot.lane.b32.xlu0 %v1534_v50, %s3356_s15  ;;  %v1528_v50 = vmul.f32 %v3974_v63, %v3663_v43  ;;  %v1548_v49 = vmul.f32 %v4027_v19, %v3675_v53  ;;  %v4212_v19 = vmul.f32 %v4160_v51, %v4016_v15 }
 0x1a3   : > { %1479 = vrot.lane.b32.xlu1 %v1476_v55, %s3356_s15  ;;  %v4151_v55 = vstv %s4055_s28  ;;  %s4914_s28 = sld [smem:[#allocation10 + $0x21]] }
 0x1a4   : > { %v4117_v37 = vpop.permute.xlu0 %965  ;;  %v1555_v13 = vrot.slane %v1548_v49, 3 }
 0x1a5   : > { %v4131_v22 = vpop.permute.xlu1 %1173 }
 0x1a6   : > { %5699 = vst [vmem:[#allocation25_spill] sm:$0xff] %v4131_v22  ;;  %1557 = vrot.lane.b32.xlu0 %v1554_v56, %s3356_s15  ;;  %v1574_v56 = vsel %vm176_vm0, %v1572_v1, %v5661_v29  ;;  %v1535_v22 = vrot.slane %v1528_v50, 3  ;;  %v5703_v1 = vstv %s3912_s24 }
 0x1a7   : > { %1499 = vrot.lane.b32.xlu1 %v1496_v39, %s3356_s15  ;;  %v681_v29 = vmul.f32 %v4160_v51, %v5703_v1  ;;  %v4225_v1 = vmul.f32 %v4151_v55, %v3656_v38 }
 0x1a8   : > { %v4168_v63 = vpop.permute.xlu0 %985  ;;  %v1536_v45 = vsel %vm763_vm7, %v5707_v59, %v1535_v22  ;;  %v5708_v59 = vrot.slane %v4166_v57, 1  ;;  %v4253_v22 = vmul.f32 %v4160_v51, %v4022_v17 }
 0x1a9   : > { %5700 = vst [vmem:[#allocation26_spill] sm:$0xff] %v4168_v63  ;;  %v4180_v39 = vpop.permute.xlu1 %927  ;;  %v688_v58 = vadd.f32 %v686_v4, %v681_v29  ;;  %v4240_v29 = vld [vmem:[#allocation5] sm:$0xff] }
 0x1aa   : > { %5701 = vst [vmem:[#allocation27_spill] sm:$0xff] %v4180_v39  ;;  %1577 = vrot.lane.b32.xlu0 %v1574_v56, %s3356_s15  ;;  %v1606_v56 = vmul.f32 %v4160_v51, %v4108_v62  ;;  %v714_v39 = vrot.slane %v708_v2, 1  ;;  %v1626_v5 = vmul.f32 %v4240_v29, %v4151_v55  ;;  %v700_v49 = vsel %vm697_vm5, %v698_v28, %v5708_v59 }
 0x1ab   : > { %1519 = vrot.lane.b32.xlu1 %v1516_v35, %s3356_s15  ;;  %v1594_v35 = vsel %vm176_vm0, %v1592_v23, %v5706_v14  ;;  %v4237_v23 = vmul.f32 %v4233_v21, %v4006_v10  ;;  %v5664_v59 = vrot.slane %v4225_v1, 5 }
 0x1ac   : > { %v4214_v27 = vpop.permute.xlu0 %1005  ;;  %v1612_v4 = vrot.slane %v1606_v56, 5  ;;  %v5710_v56 = vrot.slane %v4178_v3, 1 }
 0x1ad   : > { %5704 = vst [vmem:[#allocation28_spill] sm:$0xff] %v4214_v27  ;;  %v4217_v50 = vpop.permute.xlu1 %947  ;;  %v5712_v27 = vrot.slane %v4044_v26, 3 }
 0x1ae   : > { %5705 = vst [vmem:[#allocation29_spill] sm:$0xff] %v4217_v50  ;;  %1597 = vrot.lane.b32.xlu0 %v1594_v35, %s3356_s15  ;;  %v1568_v50 = vmul.f32 %v4082_v44, %v3663_v43  ;;  %v4249_v44 = vmul.f32 %v4160_v51, %v4019_v16  ;;  %v716_v14 = vsel %vm697_vm5, %v714_v39, %v5710_v56 }
 0x1af   : > { %1539 = vrot.lane.b32.xlu1 %v1536_v45, %s3356_s15  ;;  %v1646_v45 = vmul.f32 %v4160_v51, %v4114_v7  ;;  %v1614_v28 = vsel %vm828_vm8, %v1612_v4, %v5663_v48  ;;  %v1556_v63 = vsel %vm763_vm7, %v5712_v27, %v1555_v13  ;;  %v1588_v56 = vmul.f32 %v4120_v47, %v3675_v53 }
 0x1b0   : > { %v4255_v2 = vpop.permute.xlu0 %1025  ;;  %v1575_v39 = vrot.slane %v1568_v50, 4  ;;  %v4281_v4 = vmul.f32 %v4061_v33, %v3656_v38  ;;  %v4285_v48 = vmul.f32 %v4160_v51, %v4034_v20  ;;  %v4290_v27 = vmul.f32 %v4233_v21, %v4016_v15 }
 0x1b1   : > { %5709 = vst [vmem:[#allocation30_spill] sm:$0xff] %v4255_v2  ;;  %v4262_v35 = vpop.permute.xlu1 %967  ;;  %v705_v2 = vadd.f32 %v700_v49, %v688_v58  ;;  %v1632_v58 = vrot.slane %v1626_v5, 5  ;;  %v731_v49 = vrot.slane %v724_v25, 2  ;;  %v1652_v13 = vrot.slane %v1646_v45, 6 }
 0x1b2   : > { %5711 = vst [vmem:[#allocation31_spill] sm:$0xff] %v4262_v35  ;;  %1617 = vrot.lane.b32.xlu0 %v1614_v28, %s3356_s15  ;;  %v741_v50 = vmul.f32 %v4240_v29, %v4061_v33  ;;  %v4304_v25 = vmul.f32 %v4157_v8, %v3656_v38  ;;  %v693_v5 = vmul.f32 %v4003_v9, %v3663_v43  ;;  %v5718_v38 = vstv %s3912_s24  ;;  %s4775_s24 = sld [smem:[#allocation10 + $0x5]] }
 0x1b3   : > { %1559 = vrot.lane.b32.xlu1 %v1556_v63, %s3356_s15  ;;  %v721_v26 = vadd.f32 %v716_v14, %v705_v2  ;;  %v1634_v35 = vsel %vm828_vm8, %v1632_v58, %v5664_v59  ;;  %v5714_v2 = vrot.slane %v4099_v54, 4  ;;  %v1595_v14 = vrot.slane %v1588_v56, 4 }
 0x1b4   : > { %v4292_v47 = vpop.permute.xlu0 %1045  ;;  %v1608_v58 = vmul.f32 %v4108_v62, %v3663_v43  ;;  %v5715_v59 = vrot.slane %v4237_v23, 2  ;;  %v710_v9 = vmul.f32 %v4058_v32, %v3675_v53  ;;  %v1666_v54 = vmul.f32 %v4240_v29, %v4157_v8  ;;  %v4325_v43 = vld [vmem:[#allocation5 + $0x8] sm:$0xff] }
 0x1b5   : > { %v4296_v28 = vpop.permute.xlu1 %987  ;;  %v1576_v45 = vsel %vm176_vm0, %v5714_v2, %v1575_v39  ;;  %v764_v39 = vrot.slane %v4212_v19, 3  ;;  %v5716_v62 = vstv %s3945_s8  ;;  %v747_v2 = vrot.slane %v741_v50, 2  ;;  %s4790_s8 = sld [smem:[#allocation10 + $0xc]] }
 0x1b6   : > { %5713 = vst [vmem:[#allocation32_spill] sm:$0xff] %v4296_v28  ;;  %1637 = vrot.lane.b32.xlu0 %v1634_v35, %s3356_s15  ;;  %v733_v63 = vsel %vm730_vm6, %v731_v49, %v5715_v59  ;;  %v687_v59 = vmul.f32 %v4325_v43, %v5716_v62  ;;  %v682_v32 = vmul.f32 %v4233_v21, %v5718_v38  ;;  %v5720_v28 = vrot.slane %v4270_v0, 6 }
 0x1b7   : > { %1579 = vrot.lane.b32.xlu1 %v1576_v45, %s3356_s15  ;;  %v738_v35 = vadd.f32 %v733_v63, %v721_v26  ;;  %v5665_v19 = vrot.slane %v4304_v25, 6  ;;  %v701_v63 = vrot.slane %v693_v5, 1  ;;  %v5721_v56 = vrot.slane %v4139_v30, 4 }
 0x1b8   : > { %v4330_v49 = vpop.permute.xlu0 %1065  ;;  %v1654_v26 = vsel %vm861_vm9, %v1652_v13, %v5720_v28  ;;  %v1628_v50 = vmul.f32 %v4151_v55, %v3675_v53  ;;  %v5722_v38 = vrot.slane %v4281_v4, 2  ;;  %v4352_v13 = vmul.f32 %v4325_v43, %v4071_v36 }
 0x1b9   : > { %5717 = vst [vmem:[#allocation33_spill] sm:$0xff] %v4330_v49  ;;  %v4335_v45 = vpop.permute.xlu1 %1007  ;;  %v1596_v62 = vsel %vm176_vm0, %v5721_v56, %v1595_v14  ;;  %v1615_v49 = vrot.slane %v1608_v58, 5  ;;  %v717_v28 = vrot.slane %v710_v9, 1  ;;  %v1672_v5 = vrot.slane %v1666_v54, 6 }
 0x1ba   : > { %5719 = vst [vmem:[#allocation34_spill] sm:$0xff] %v4335_v45  ;;  %1657 = vrot.lane.b32.xlu0 %v1654_v26, %s3356_s15  ;;  %v749_v45 = vsel %vm730_vm6, %v747_v2, %v5722_v38  ;;  %v796_v30 = vrot.slane %v4249_v44, 4  ;;  %v689_v58 = vadd.f32 %v687_v59, %v682_v32  ;;  %v774_v53 = vmul.f32 %v4240_v29, %v4071_v36  ;;  %v4362_v2 = vld [vmem:[#allocation4 + $0x10] sm:$0x3f] }
 0x1bb   : > { %1599 = vrot.lane.b32.xlu1 %v1596_v62, %s3356_s15  ;;  %v754_v26 = vadd.f32 %v749_v45, %v738_v35  ;;  %v726_v9 = vmul.f32 %v4362_v2, %v4006_v10  ;;  %v1674_v44 = vsel %vm861_vm9, %v1672_v5, %v5665_v19  ;;  %v4373_v35 = vmul.f32 %v4233_v21, %v4019_v16  ;;  %v4399_v5 = vld [vmem:[#allocation5 + $0x10] sm:$0x3f] }
 0x1bc   : > { %v4357_v56 = vpop.permute.xlu0 %1085  ;;  %v5723_v59 = vrot.slane %v4188_v6, 5  ;;  %v1635_v45 = vrot.slane %v1628_v50, 5  ;;  %v1648_v10 = vmul.f32 %v4362_v2, %v4114_v7  ;;  %v5724_v62 = vrot.slane %v4290_v27, 3 }
 0x1bd   : > { %v4366_v54 = vpop.permute.xlu1 %1027  ;;  %v5725_v55 = vrot.slane %v4166_v57, 1  ;;  %v5727_v7 = vstv %s4000_s5  ;;  %v734_v57 = vrot.slane %v726_v9, 2 }
 0x1be   : > { %1677 = vrot.lane.b32.xlu0 %v1674_v44, %s3356_s15  ;;  %v1616_v32 = vsel %vm828_vm8, %v5723_v59, %v1615_v49  ;;  %v766_v38 = vsel %vm763_vm7, %v764_v39, %v5724_v62  ;;  %v5726_v44 = vrot.slane %v4178_v3, 1  ;;  %v1686_v19 = vmul.f32 %v4160_v51, %v5727_v7 }
 0x1bf   : > { %v702_v14 = vsel %vm697_vm5, %v5725_v55, %v701_v63  ;;  %1619 = vrot.lane.b32.xlu1 %v1616_v32, %s3356_s15  ;;  %v771_v49 = vadd.f32 %v766_v38, %v754_v26  ;;  %v1712_v39 = vmul.f32 %v4160_v51, %v4123_v11  ;;  %v780_v62 = vrot.slane %v774_v53, 3 }
 0x1c0   : > { %v718_v6 = vsel %vm697_vm5, %v5726_v44, %v717_v28  ;;  %v706_v50 = vadd.f32 %v702_v14, %v689_v58  ;;  %v4392_v59 = vpop.permute.xlu0 %1105  ;;  %v743_v3 = vmul.f32 %v4399_v5, %v4061_v33  ;;  %v4407_v28 = vmul.f32 %v4233_v21, %v4123_v11 }
 0x1c1   : > { %v4403_v63 = vpop.permute.xlu1 %1047  ;;  %v5728_v14 = vrot.slane %v4225_v1, 5  ;;  %v1655_v53 = vrot.slane %v1648_v10, 6  ;;  %v1668_v55 = vmul.f32 %v4399_v5, %v4157_v8  ;;  %v5729_v33 = vrot.slane %v4352_v13, 3 }
 0x1c2   : > { %v722_v26 = vadd.f32 %v718_v6, %v706_v50  ;;  %1690 = vrot.lane.b32.xlu0 %v1686_v19, %s3357_s0  ;;  %v5666_v32 = vrot.slane %v4373_v35, 4  ;;  %v4423_v38 = vmul.f32 %v4325_v43, %v4074_v40  ;;  %v4428_v1 = vmul.f32 %v4160_v51, %v4126_v52 }
 0x1c3   : > { %v1636_v58 = vsel %vm828_vm8, %v5728_v14, %v1635_v45  ;;  %v782_v9 = vsel %vm763_vm7, %v780_v62, %v5729_v33  ;;  %v806_v8 = vmul.f32 %v4240_v29, %v4074_v40  ;;  %v759_v45 = vmul.f32 %v4362_v2, %v4016_v15 }
 0x1c4   : > { %1639 = vrot.lane.b32.xlu1 %v1636_v58, %s3356_s15  ;;  %v787_v19 = vadd.f32 %v782_v9, %v771_v49  ;;  %v4434_v10 = vpop.permute.xlu0 %1125  ;;  %v5730_v44 = vstv %s4068_s3  ;;  %v5731_v50 = vrot.slane %v4237_v23, 2  ;;  %v750_v62 = vrot.slane %v743_v3, 2 }
 0x1c5   : > { %v1699_v6 = vmul.f32 %v4240_v29, %v5730_v44  ;;  %v4442_v14 = vpop.permute.xlu1 %1067  ;;  %v5667_v49 = vrot.slane %v4407_v28, 1  ;;  %v4447_v58 = vmul.f32 %v4325_v43, %v4171_v60  ;;  %v5732_v15 = vrot.slane %v4270_v0, 6 }
 0x1c6   : > { %v735_v7 = vsel %vm730_vm6, %v5731_v50, %v734_v57  ;;  %v1718_v44 = vrot.slane %v1712_v39, 1  ;;  %v1675_v23 = vrot.slane %v1668_v55, 6  ;;  %v798_v57 = vsel %vm176_vm0, %v796_v30, %v5666_v32 }
 0x1c7   : > { %v739_v33 = vadd.f32 %v735_v7, %v722_v26  ;;  %1703 = vrot.lane.b32.xlu0 %v1699_v6, %s3357_s0  ;;  %v1656_v9 = vsel %vm861_vm9, %v5732_v15, %v1655_v53  ;;  %v5669_v3 = vrot.slane %v4423_v38, 4  ;;  %v4459_v50 = vmul.f32 %v4233_v21, %v4022_v17 }
 0x1c8   : > { %1659 = vrot.lane.b32.xlu1 %v1656_v9, %s3356_s15  ;;  %v1732_v0 = vmul.f32 %v4240_v29, %v4171_v60  ;;  %v803_v26 = vadd.f32 %v798_v57, %v787_v19  ;;  %v812_v53 = vrot.slane %v806_v8, 4  ;;  %v767_v39 = vrot.slane %v759_v45, 3  ;;  %v4466_v6 = vpop.permute.xlu0 %1145 }
 0x1c9   : > { %v776_v55 = vmul.f32 %v4399_v5, %v4071_v36  ;;  %v5733_v30 = vrot.slane %v4281_v4, 2  ;;  %v4471_v15 = vpop.permute.xlu1 %1087  ;;  %v1720_v9 = vsel %vm697_vm5, %v1718_v44, %v5667_v49  ;;  %v5668_v32 = vrot.slane %v4447_v58, 1 }
 0x1ca   : > { %v4479_v19 = vmul.f32 %v4233_v21, %v4126_v52  ;;  %v5734_v36 = vrot.slane %v4304_v25, 6  ;;  %v4487_v45 = vmul.f32 %v4160_v51, %v4129_v12  ;;  %v814_v44 = vsel %vm176_vm0, %v812_v53, %v5669_v3 }
 0x1cb   : > { %v751_v7 = vsel %vm730_vm6, %v5733_v30, %v750_v62  ;;  %1723 = vrot.lane.b32.xlu0 %v1720_v9, %s3357_s0  ;;  %v4490_v62 = vstv %s4415_s1  ;;  %v5670_v57 = vrot.slane %v4459_v50, 5  ;;  %v1738_v25 = vrot.slane %v1732_v0, 1  ;;  %s5117_s1 = sld [smem:[#allocation10 + $0x6]] }
 0x1cc   : > { %v755_v8 = vadd.f32 %v751_v7, %v739_v33  ;;  %v1676_v4 = vsel %vm861_vm9, %v5734_v36, %v1675_v23  ;;  %v792_v33 = vmul.f32 %v4362_v2, %v4019_v16  ;;  %v819_v30 = vadd.f32 %v814_v44, %v803_v26  ;;  %v4506_v49 = vpop.permute.xlu0 %1191 }
 0x1cd   : > { %1679 = vrot.lane.b32.xlu1 %v1676_v4, %s3356_s15  ;;  %v4501_v23 = vmul.f32 %v4325_v43, %v4077_v41  ;;  %v5735_v7 = vrot.slane %v4290_v27, 3  ;;  %v783_v36 = vrot.slane %v776_v55, 3  ;;  %v4508_v53 = vpop.permute.xlu1 %1107  ;;  %v1740_v16 = vsel %vm697_vm5, %v1738_v25, %v5668_v32 }
 0x1ce   : > { %v5736_v4 = vstv %s4000_s5  ;;  %v5671_v26 = vrot.slane %v4479_v19, 2  ;;  %v4519_v44 = vmul.f32 %v4325_v43, %v4174_v61  ;;  %v839_v27 = vmul.f32 %v4240_v29, %v4077_v41  ;;  %s4650_s5 = sld [smem:[#allocation10 + $0x58]] }
 0x1cf   : > { %v768_v9 = vsel %vm763_vm7, %v5735_v7, %v767_v39  ;;  %v1687_v0 = vmul.f32 %v4233_v21, %v5736_v4  ;;  %1743 = vrot.lane.b32.xlu0 %v1740_v16, %s3357_s0  ;;  %v1758_v55 = vrot.slane %v4428_v1, 2  ;;  %v1714_v25 = vmul.f32 %v4362_v2, %v4123_v11 }
 0x1d0   : > { %v772_v39 = vadd.f32 %v768_v9, %v755_v8  ;;  %v5737_v7 = vrot.slane %v4253_v22, 5  ;;  %v4534_v32 = vmul.f32 %v4233_v21, %v4034_v20  ;;  %v799_v3 = vrot.slane %v792_v33, 4 }
 0x1d1   : > { %1692 = vrot.lane.b32.xlu1 %v1687_v0, %s3357_s0  ;;  %v1772_v8 = vmul.f32 %v4240_v29, %v4174_v61  ;;  %v5738_v11 = vrot.slane %v4352_v13, 3  ;;  %v808_v22 = vmul.f32 %v4399_v5, %v4074_v40  ;;  %v1760_v33 = vsel %vm730_vm6, %v1758_v55, %v5671_v26 }
 0x1d2   : > { %v831_v4 = vsel %vm828_vm8, %v5737_v7, %v5670_v57  ;;  %v4545_v7 = vpop.permute.xlu0 %1211  ;;  %v4547_v57 = vpop.permute.xlu1 %1127  ;;  %v5740_v0 = vstv %s4068_s3  ;;  %v4558_v13 = vmul.f32 %v4233_v21, %v4129_v12  ;;  %v1721_v40 = vrot.slane %v1714_v25, 1  ;;  %s4964_s3 = sld [smem:[#allocation10 + $0x28]] }
 0x1d3   : > { %v836_v1 = vadd.f32 %v831_v4, %v819_v30  ;;  %v784_v16 = vsel %vm763_vm7, %v5738_v11, %v783_v36  ;;  %5739 = vst [vmem:[#allocation35_spill] sm:$0xff] %v4545_v7  ;;  %v1700_v30 = vmul.f32 %v4325_v43, %v5740_v0  ;;  %v5672_v4 = vrot.slane %v4519_v44, 2  ;;  %1763 = vrot.lane.b32.xlu0 %v1760_v33, %s3357_s0 }
 0x1d4   : > { %v845_v36 = vrot.slane %v839_v27, 5  ;;  %v788_v11 = vadd.f32 %v784_v16, %v772_v39  ;;  %v1734_v9 = vmul.f32 %v4399_v5, %v4171_v60  ;;  %v872_v55 = vmul.f32 %v4240_v29, %v4089_v46 }
 0x1d5   : > { %v824_v0 = vmul.f32 %v4362_v2, %v4022_v17  ;;  %1705 = vrot.lane.b32.xlu1 %v1700_v30, %s3357_s0  ;;  %v1778_v26 = vrot.slane %v1772_v8, 2  ;;  %v5741_v27 = vrot.slane %v4501_v23, 5  ;;  %v4574_v25 = vmul.f32 %v4325_v43, %v4089_v46 }
 0x1d6   : > { %v5742_v60 = vrot.slane %v4373_v35, 4  ;;  %v815_v33 = vrot.slane %v808_v22, 4  ;;  %v4579_v7 = vpop.permute.xlu0 %1231  ;;  %v4583_v30 = vpop.permute.xlu1 %1147 }
 0x1d7   : > { %v847_v39 = vsel %vm828_vm8, %v845_v36, %v5741_v27  ;;  %v1780_v8 = vsel %vm730_vm6, %v1778_v26, %v5672_v4  ;;  %v4591_v27 = vmul.f32 %v4325_v43, %v4490_v62  ;;  %v5745_v26 = vrot.slane %v4285_v48, 6 }
 0x1d8   : > { %v800_v16 = vsel %vm176_vm0, %v5742_v60, %v799_v3  ;;  %v852_v17 = vadd.f32 %v847_v39, %v836_v1  ;;  %1783 = vrot.lane.b32.xlu0 %v1780_v8, %s3357_s0  ;;  %v5743_v3 = vrot.slane %v4407_v28, 1  ;;  %v1741_v1 = vrot.slane %v1734_v9, 1 }
 0x1d9   : > { %v804_v35 = vadd.f32 %v800_v16, %v788_v11  ;;  %v1754_v39 = vmul.f32 %v4362_v2, %v4126_v52  ;;  %v5744_v60 = vrot.slane %v4534_v32, 6  ;;  %v878_v36 = vrot.slane %v872_v55, 6 }
 0x1da   : > { %v1722_v22 = vsel %vm697_vm5, %v5743_v3, %v1721_v40  ;;  %v1798_v11 = vrot.slane %v4487_v45, 3  ;;  %v1812_v28 = vmul.f32 %v4240_v29, %v4490_v62  ;;  %v879_v40 = vrot.slane %v4574_v25, 6  ;;  %v4614_v8 = vpop.permute.xlu0 %1251  ;;  %v4618_v3 = vpop.permute.xlu1 %1193 }
 0x1db   : > { %v864_v4 = vsel %vm861_vm9, %v5745_v26, %v5744_v60  ;;  %1725 = vrot.lane.b32.xlu1 %v1722_v22, %s3357_s0  ;;  %v5746_v9 = vrot.slane %v4423_v38, 4  ;;  %v832_v16 = vrot.slane %v824_v0, 5  ;;  %v841_v48 = vmul.f32 %v4399_v5, %v4077_v41 }
 0x1dc   : > { %v869_v55 = vadd.f32 %v864_v4, %v852_v17  ;;  %v5747_v45 = vrot.slane %v4558_v13, 3  ;;  %v1819_v38 = vrot.slane %v4591_v27, 3  ;;  %v4626_v0 = vmul.f32 %v4233_v21, %v4142_v31 }
 0x1dd   : > { %v816_v52 = vsel %vm176_vm0, %v5746_v9, %v815_v33  ;;  %v5748_v41 = vrot.slane %v4447_v58, 1  ;;  %v1761_v17 = vrot.slane %v1754_v39, 2  ;;  %v1774_v60 = vmul.f32 %v4399_v5, %v4174_v61 }
 0x1de   : > { %v1800_v22 = vsel %vm763_vm7, %v1798_v11, %v5747_v45  ;;  %v820_v33 = vadd.f32 %v816_v52, %v804_v35  ;;  %v857_v26 = vmul.f32 %v4362_v2, %v4034_v20  ;;  %v1818_v11 = vrot.slane %v1812_v28, 3  ;;  %v4645_v52 = vpop.permute.xlu0 %1271  ;;  %v4652_v28 = vpop.permute.xlu1 %1213 }
 0x1df   : > { %1803 = vrot.lane.b32.xlu0 %v1800_v22, %s3357_s0  ;;  %v1742_v4 = vsel %vm697_vm5, %v5748_v41, %v1741_v1  ;;  %v1832_v9 = vmul.f32 %v4160_v51, %v4142_v31  ;;  %v880_v35 = vsel %vm861_vm9, %v878_v36, %v879_v40  ;;  %v5749_v58 = vrot.slane %v4459_v50, 5 }
 0x1e0   : > { %1745 = vrot.lane.b32.xlu1 %v1742_v4, %s3357_s0  ;;  %v848_v39 = vrot.slane %v841_v48, 5  ;;  %v4648_v61 = vstv %s4581_s10  ;;  %v885_v20 = vadd.f32 %v880_v35, %v869_v55  ;;  %v1820_v45 = vsel %vm763_vm7, %v1818_v11, %v1819_v38  ;;  %s5130_s10 = sld [smem:[#allocation10 + $0xd]] }
 0x1e1   : > { %v833_v1 = vsel %vm828_vm8, %v5749_v58, %v832_v16  ;;  %v1839_v36 = vrot.slane %v4626_v0, 4  ;;  %v4660_v50 = vmul.f32 %v4325_v43, %v4648_v61  ;;  %v5750_v48 = vrot.slane %v4479_v19, 2  ;;  %v5761_v0 = vld [vmem:[#allocation33_spill] sm:$0xff] }
 0x1e2   : > { %v837_v16 = vadd.f32 %v833_v1, %v820_v33  ;;  %v1781_v22 = vrot.slane %v1774_v60, 2  ;;  %v1794_v41 = vmul.f32 %v4362_v2, %v4129_v12  ;;  %v898_v4 = vadd.f32 %v3884_v24, %v885_v20  ;;  %v4685_v12 = vpop.permute.xlu1 %1233 }
 0x1e3   : > { %1823 = vrot.lane.b32.xlu0 %v1820_v45, %s3357_s0  ;;  %v1762_v55 = vsel %vm730_vm6, %v5750_v48, %v1761_v17  ;;  %v1838_v11 = vrot.slane %v1832_v9, 4  ;;  %v1852_v35 = vmul.f32 %v4240_v29, %v4648_v61  ;;  %v5751_v33 = vrot.slane %v4501_v23, 5  ;;  %v4677_v17 = vpop.permute.xlu0 %1291 }
 0x1e4   : > { %1765 = vrot.lane.b32.xlu1 %v1762_v55, %s3357_s0  ;;  %v865_v1 = vrot.slane %v857_v26, 6  ;;  %v874_v19 = vmul.f32 %v4399_v5, %v4089_v46  ;;  %v4680_v60 = vstv %s4616_s11  ;;  %v911_v24 = vadd.f32 %v3898_v34, %v898_v4  ;;  %s5139_s11 = sld [smem:[#allocation10 + $0x37]] }
 0x1e5   : > { %v849_v58 = vsel %vm828_vm8, %v5751_v33, %v848_v39  ;;  %v1840_v23 = vsel %vm176_vm0, %v1838_v11, %v1839_v36  ;;  %v1859_v26 = vrot.slane %v4660_v50, 4  ;;  %v4693_v46 = vmul.f32 %v4233_v21, %v4680_v60 }
 0x1e6   : > { %v853_v9 = vadd.f32 %v849_v58, %v837_v16  ;;  %v5752_v39 = vrot.slane %v4519_v44, 2  ;;  %v1801_v20 = vrot.slane %v1794_v41, 3  ;;  %v1814_v45 = vmul.f32 %v4399_v5, %v4490_v62 }
 0x1e7   : > { %1843 = vrot.lane.b32.xlu0 %v1840_v23, %s3357_s0  ;;  %v931_v48 = vadd.f32 %v4024_v18, %v911_v24  ;;  %v1858_v55 = vrot.slane %v1852_v35, 4  ;;  %v1872_v4 = vmul.f32 %v4160_v51, %v4680_v60  ;;  %v5753_v16 = vrot.slane %v4534_v32, 6  ;;  %v4708_v44 = vpop.permute.xlu0 %1311  ;;  %v4716_v18 = vpop.permute.xlu1 %1253 }
 0x1e8   : > { %v1782_v34 = vsel %vm730_vm6, %v5752_v39, %v1781_v22  ;;  %v881_v33 = vrot.slane %v874_v19, 6  ;;  %v4711_v22 = vstv %s4650_s5  ;;  %v1879_v32 = vrot.slane %v4693_v46, 5  ;;  %s5151_s5 = sld [smem:[#allocation10 + $0x3e]] }
 0x1e9   : > { %1785 = vrot.lane.b32.xlu1 %v1782_v34, %s3357_s0  ;;  %v866_v11 = vsel %vm861_vm9, %v5753_v16, %v865_v1  ;;  %v951_v62 = vadd.f32 %v4079_v42, %v931_v48  ;;  %v1860_v41 = vsel %vm176_vm0, %v1858_v55, %v1859_v26  ;;  %v4724_v35 = vmul.f32 %v4325_v43, %v4711_v22 }
 0x1ea   : > { %v870_v58 = vadd.f32 %v866_v11, %v853_v9  ;;  %v5754_v1 = vrot.slane %v4558_v13, 3  ;;  %v1821_v19 = vrot.slane %v1814_v45, 3  ;;  %v1834_v24 = vmul.f32 %v4362_v2, %v4142_v31 }
 0x1eb   : > { %1863 = vrot.lane.b32.xlu0 %v1860_v41, %s3357_s0  ;;  %v971_v23 = vadd.f32 %v4117_v37, %v951_v62  ;;  %v1878_v39 = vrot.slane %v1872_v4, 5  ;;  %v1892_v34 = vmul.f32 %v4240_v29, %v4711_v22  ;;  %v882_v9 = vsel %vm861_vm9, %v879_v40, %v881_v33  ;;  %v4739_v48 = vpop.permute.xlu0 %1331  ;;  %v4743_v55 = vpop.permute.xlu1 %1273  ;;  %v5756_v33 = vld [vmem:[#allocation28_spill] sm:$0xff] }
 0x1ec   : > { %v1802_v42 = vsel %vm763_vm7, %v5754_v1, %v1801_v20  ;;  %v1911_v13 = vstv %s4682_s21  ;;  %v5755_v20 = vld [vmem:[#allocation26_spill] sm:$0xff]  ;;  %v1899_v31 = vrot.slane %v4724_v35, 5  ;;  %v886_v25 = vadd.f32 %v882_v9, %v870_v58  ;;  %s5171_s21 = sld [smem:[#allocation10 + $0x14]] }
 0x1ed   : > { %1805 = vrot.lane.b32.xlu1 %v1802_v42, %s3357_s0  ;;  %v991_v45 = vadd.f32 %v5755_v20, %v971_v23  ;;  %v1880_v37 = vsel %vm828_vm8, %v1878_v39, %v1879_v32  ;;  %v4750_v4 = vmul.f32 %v4233_v21, %v1911_v13  ;;  %v1822_v40 = vsel %vm763_vm7, %v1819_v38, %v1821_v19  ;;  %v5757_v42 = vld [vmem:[#allocation22_spill] sm:$0xff] }
 0x1ee   : > { %v1841_v16 = vrot.slane %v1834_v24, 4  ;;  %v1854_v11 = vmul.f32 %v4399_v5, %v4648_v61  ;;  %v1898_v41 = vrot.slane %v1892_v34, 5  ;;  %v1912_v1 = vmul.f32 %v4160_v51, %v1911_v13  ;;  %v5758_v9 = vld [vmem:[#allocation30_spill] sm:$0xff]  ;;  %v5759_v24 = vld [vmem:[#allocation23_spill] sm:$0xff] }
 0x1ef   : > { %1883 = vrot.lane.b32.xlu0 %v1880_v37, %s3357_s0  ;;  %v1011_v62 = vadd.f32 %v5756_v33, %v991_v45  ;;  %v899_v23 = vadd.f32 %v5757_v42, %v886_v25  ;;  %v4762_v58 = vpop.permute.xlu0 %1351  ;;  %v1931_v39 = vstv %s4713_s17  ;;  %v4766_v20 = vpop.permute.xlu1 %1293  ;;  %v1919_v61 = vrot.slane %v4750_v4, 6  ;;  %s3359_s17 = smov 122  }
 0x1f0   : > { %v1900_v38 = vsel %vm828_vm8, %v1898_v41, %v1899_v31  ;;  %v4773_v19 = vmul.f32 %v4325_v43, %v1931_v39  ;;  %v1842_v45 = vsel %vm176_vm0, %v1839_v36, %v1841_v16  ;;  %v1861_v37 = vrot.slane %v1854_v11, 4  ;;  %v5760_v41 = vld [vmem:[#allocation27_spill] sm:$0xff]  ;;  %v5762_v16 = vld [vmem:[#allocation29_spill] sm:$0xff] }
 0x1f1   : > { %1825 = vrot.lane.b32.xlu1 %v1822_v40, %s3357_s0  ;;  %v1031_v27 = vadd.f32 %v5758_v9, %v1011_v62  ;;  %v912_v34 = vadd.f32 %v5759_v24, %v899_v23  ;;  %v1874_v25 = vmul.f32 %v4362_v2, %v4680_v60  ;;  %v1918_v33 = vrot.slane %v1912_v1, 6 }
 0x1f2   : > { %v1932_v62 = vmul.f32 %v4240_v29, %v1931_v39  ;;  %v1862_v1 = vsel %vm176_vm0, %v1859_v26, %v1861_v37 }
 0x1f3   : > { %1903 = vrot.lane.b32.xlu0 %v1900_v38, %s3357_s0  ;;  %v1051_v40 = vadd.f32 %v4292_v47, %v1031_v27  ;;  %v932_v42 = vadd.f32 %v5760_v41, %v912_v34  ;;  %v4788_v23 = vpop.permute.xlu0 %1371  ;;  %v4793_v36 = vpop.permute.xlu1 %1313  ;;  %v1920_v60 = vsel %vm861_vm9, %v1918_v33, %v1919_v61  ;;  %v1939_v47 = vrot.slane %v4773_v19, 6 }
 0x1f4   : > { %v1881_v27 = vrot.slane %v1874_v25, 5  ;;  %v1894_v38 = vmul.f32 %v4399_v5, %v4711_v22  ;;  %v1938_v34 = vrot.slane %v1932_v62, 6  ;;  %v5764_v22 = vld [vmem:[#allocation32_spill] sm:$0xff] }
 0x1f5   : > { %1845 = vrot.lane.b32.xlu1 %v1842_v45, %s3357_s0  ;;  %v1071_v9 = vadd.f32 %v5761_v0, %v1051_v40  ;;  %v952_v11 = vadd.f32 %v5762_v16, %v932_v42  ;;  %v5763_v45 = vld [vmem:[#allocation31_spill] sm:$0xff]  ;;  %v1914_v42 = vmul.f32 %v4362_v2, %v1911_v13  ;;  %v5765_v0 = vld [vmem:[#allocation34_spill] sm:$0xff] }
 0x1f6   : > { %v1940_v26 = vsel %vm861_vm9, %v1938_v34, %v1939_v47  ;;  %v1882_v25 = vsel %vm828_vm8, %v1879_v32, %v1881_v27  ;;  %v1901_v62 = vrot.slane %v1894_v38, 5 }
 0x1f7   : > { %1923 = vrot.lane.b32.xlu0 %v1920_v60, %s3357_s0  ;;  %v1091_v24 = vadd.f32 %v4357_v56, %v1071_v9  ;;  %v972_v40 = vadd.f32 %v5763_v45, %v952_v11  ;;  %v4811_v33 = vpop.permute.xlu0 %1391  ;;  %v4816_v41 = vpop.permute.xlu1 %1333  ;;  %v1951_v56 = vstv %s4775_s24  ;;  %v1977_v11 = vstv %s4790_s8  ;;  %s5195_s24 = sld [smem:[#allocation10 + $0x45]]  ;;  %s5216_s8 = sld [smem:[#allocation10 + $0x1b]] }
 0x1f8   : > { %v1952_v16 = vmul.f32 %v4160_v51, %v1951_v56  ;;  %v4842_v13 = vmul.f32 %v4233_v21, %v1977_v11  ;;  %v1902_v27 = vsel %vm828_vm8, %v1899_v31, %v1901_v62  ;;  %v1921_v38 = vrot.slane %v1914_v42, 6 }
 0x1f9   : > { %1865 = vrot.lane.b32.xlu1 %v1862_v1, %s3357_s0  ;;  %v1111_v50 = vadd.f32 %v4392_v59, %v1091_v24  ;;  %v992_v37 = vadd.f32 %v5764_v22, %v972_v40  ;;  %v1964_v1 = vstv %s4799_s14  ;;  %v1934_v24 = vmul.f32 %v4399_v5, %v1931_v39  ;;  %s5239_s14 = sld [smem:[#allocation10 + $0x4c]] }
 0x1fa   : > { %v1997_v40 = vstv %s4813_s23  ;;  %v1985_v31 = vrot.slane %v4842_v13, 1  ;;  %s5262_s23 = sld [smem:[#allocation10 + $0x22]] }
 0x1fb   : > { %1943 = vrot.lane.b32.xlu0 %v1940_v26, %s3357_s0  ;;  %v1131_v59 = vadd.f32 %v4434_v10, %v1111_v50  ;;  %v1012_v9 = vadd.f32 %v5765_v0, %v992_v37  ;;  %v4831_v60 = vpop.permute.xlu0 %1411  ;;  %v4838_v32 = vpop.permute.xlu1 %1353  ;;  %v5766_v50 = vld [vmem:[#allocation20_spill] sm:$0xff]  ;;  %v4862_v39 = vmul.f32 %v4325_v43, %v1997_v40  ;;  %v1941_v37 = vrot.slane %v1934_v24, 6 }
 0x1fc   : > { %v1998_v62 = vmul.f32 %v4240_v29, %v1997_v40  ;;  %v2017_v0 = vstv %s4835_s22  ;;  %s5279_s22 = sld [smem:[#allocation10 + $0x53]] }
 0x1fd   : > { %1885 = vrot.lane.b32.xlu1 %v1882_v25, %s3357_s0  ;;  %v1151_v46 = vadd.f32 %v4466_v6, %v1131_v59  ;;  %v1032_v10 = vadd.f32 %v4366_v54, %v1012_v9  ;;  %v1978_v6 = vmul.f32 %v4160_v51, %v1977_v11  ;;  %v1965_v54 = vmul.f32 %v4240_v29, %v1964_v1  ;;  %v5767_v9 = vld [vmem:[#allocation21_spill] sm:$0xff] }
 0x1ff   : > { %1956 = vrot.lane.b32.xlu0 %v1952_v16, %s3358_s7  ;;  %v1052_v34 = vadd.f32 %v4403_v63, %v1032_v10  ;;  %v4853_v45 = vpop.permute.xlu0 %1424  ;;  %v1164_v35 = vadd.f32 %v5766_v50, %v1151_v46  ;;  %v4858_v26 = vpop.permute.xlu1 %1373  ;;  %v1922_v63 = vsel %vm861_vm9, %v1919_v61, %v1921_v38  ;;  %v1984_v25 = vrot.slane %v1978_v6, 1 }
 0x200   : > { %v2005_v61 = vrot.slane %v4862_v39, 1  ;;  %v4883_v46 = vmul.f32 %v4233_v21, %v2017_v0  ;;  %v2018_v38 = vmul.f32 %v4160_v51, %v2017_v0 }
 0x201   : > { %1905 = vrot.lane.b32.xlu1 %v1902_v27, %s3357_s0  ;;  %v1072_v22 = vadd.f32 %v4442_v14, %v1052_v34  ;;  %v1177_v14 = vadd.f32 %v5767_v9, %v1164_v35  ;;  %v1986_v4 = vsel %vm697_vm5, %v1984_v25, %v1985_v31  ;;  %v2004_v27 = vrot.slane %v1998_v62, 1  ;;  %v5768_v62 = vld [vmem:[#allocation35_spill] sm:$0xff] }
 0x202   : > { %v1953_v34 = vmul.f32 %v4233_v21, %v1951_v56  ;;  %v1980_v56 = vmul.f32 %v4362_v2, %v1977_v11  ;;  %v2057_v25 = vstv %s3028_s30  ;;  %s5332_s30 = sld [smem:[#allocation10 + $0x30]] }
 0x203   : > { %1969 = vrot.lane.b32.xlu0 %v1965_v54, %s3358_s7  ;;  %v1092_v42 = vadd.f32 %v4471_v15, %v1072_v22  ;;  %v4872_v59 = vpop.permute.xlu0 %1437  ;;  %v4876_v16 = vpop.permute.xlu1 %1393  ;;  %v1942_v15 = vsel %vm861_vm9, %v1939_v47, %v1941_v37  ;;  %v2037_v54 = vstv %s3070_s25  ;;  %v2006_v19 = vsel %vm697_vm5, %v2004_v27, %v2005_v61  ;;  %s5315_s25 = sld [smem:[#allocation10 + $0x5a]] }
 0x204   : > { %v2025_v47 = vrot.slane %v4883_v46, 2  ;;  %v4904_v35 = vmul.f32 %v4325_v43, %v2037_v54  ;;  %v2038_v22 = vmul.f32 %v4240_v29, %v2037_v54  ;;  %v1966_v37 = vmul.f32 %v4325_v43, %v1964_v1 }
 0x205   : > { %1925 = vrot.lane.b32.xlu1 %v1922_v63, %s3357_s0  ;;  %v1112_v10 = vadd.f32 %v4508_v53, %v1092_v42  ;;  %v1197_v53 = vadd.f32 %v4506_v49, %v1177_v14  ;;  %v2024_v49 = vrot.slane %v2018_v38, 2  ;;  %v4924_v14 = vmul.f32 %v4233_v21, %v2057_v25 }
 0x206   : > { %v2045_v11 = vrot.slane %v4904_v35, 2  ;;  %v1987_v1 = vrot.slane %v1980_v56, 1  ;;  %v2044_v38 = vrot.slane %v2038_v22, 2  ;;  %v5051_v35 = vstv %s4992_s4  ;;  %s3362_s4 = smov 45  }
 0x207   : > { %1989 = vrot.lane.b32.xlu0 %v1986_v4, %s3358_s7  ;;  %v1132_v24 = vadd.f32 %v4547_v57, %v1112_v10  ;;  %v4893_v6 = vpop.permute.xlu0 %1457  ;;  %v4897_v50 = vpop.permute.xlu1 %1413  ;;  %v1217_v42 = vadd.f32 %v5768_v62, %v1197_v53  ;;  %v5769_v4 = vld [vmem:[#allocation24_spill] sm:$0xff]  ;;  %v4934_v53 = vstv %s3077_s27  ;;  %v2020_v62 = vmul.f32 %v4362_v2, %v2017_v0  ;;  %s3099_s27 = sld [smem:[#allocation10 + $0x61]] }
 0x208   : > { %v4947_v56 = vmul.f32 %v4325_v43, %v4934_v53 }
 0x209   : > { %1945 = vrot.lane.b32.xlu1 %v1942_v15, %s3357_s0  ;;  %v1152_v57 = vadd.f32 %v4583_v30, %v1132_v24  ;;  %v2026_v30 = vsel %vm730_vm6, %v2024_v49, %v2025_v47  ;;  %v2000_v15 = vmul.f32 %v4399_v5, %v1997_v40  ;;  %v1237_v27 = vadd.f32 %v4579_v7, %v1217_v42  ;;  %v5770_v49 = vld [vmem:[#allocation25_spill] sm:$0xff]  ;;  %s5053_s0 = sld [smem:[#allocation10 + $0x60]] }
 0x20a   : > { %v2058_v24 = vmul.f32 %v4160_v51, %v2057_v25  ;;  %v2046_v7 = vsel %vm730_vm6, %v2044_v38, %v2045_v11  ;;  %v2065_v40 = vrot.slane %v4924_v14, 3  ;;  %v2085_v0 = vrot.slane %v4947_v56, 3 }
 0x20b   : > { %2009 = vrot.lane.b32.xlu0 %v2006_v19, %s3358_s7  ;;  %v4911_v63 = vpop.permute.xlu0 %1477  ;;  %v4917_v9 = vpop.permute.xlu1 %1426  ;;  %v1165_v10 = vadd.f32 %v5769_v4, %v1152_v57  ;;  %v1257_v19 = vadd.f32 %v4614_v8, %v1237_v27  ;;  %v1988_v8 = vsel %vm697_vm5, %v1985_v31, %v1987_v1  ;;  %v2078_v4 = vmul.f32 %v4240_v29, %v4934_v53 }
 0x20c   : > { %v2027_v38 = vrot.slane %v2020_v62, 2  ;;  %v2060_v62 = vmul.f32 %v4362_v2, %v2057_v25  ;;  %v2177_v14 = vstv %s5021_s20  ;;  %s3363_s20 = smov 61  }
 0x20d   : > { %1958 = vrot.lane.b32.xlu1 %v1953_v34, %s3358_s7  ;;  %v1178_v22 = vadd.f32 %v5770_v49, %v1165_v10  ;;  %v1277_v42 = vadd.f32 %v4645_v52, %v1257_v19  ;;  %v4962_v10 = vstv %s4914_s28  ;;  %s5771_s28 = smov 3  }
 0x20e   : > { %v4975_v1 = vmul.f32 %v4233_v21, %v4962_v10  ;;  %v2098_v49 = vmul.f32 %v4160_v51, %v4962_v10 }
 0x20f   : > { %2029 = vrot.lane.b32.xlu0 %v2026_v30, %s3358_s7  ;;  %v4932_v34 = vpop.permute.xlu0 %1497  ;;  %v4939_v57 = vpop.permute.xlu1 %1439  ;;  %v2064_v30 = vrot.slane %v2058_v24, 3  ;;  %v1297_v13 = vadd.f32 %v4677_v17, %v1277_v42  ;;  %v2040_v24 = vmul.f32 %v4399_v5, %v2037_v54 }
 0x210   : > { %v2105_v54 = vrot.slane %v4975_v1, 4 }
 0x211   : > { %1971 = vrot.lane.b32.xlu1 %v1966_v37, %s3358_s7  ;;  %v2007_v37 = vrot.slane %v2000_v15, 1  ;;  %v2066_v52 = vsel %vm763_vm7, %v2064_v30, %v2065_v40  ;;  %v1198_v15 = vadd.f32 %v4618_v3, %v1178_v22  ;;  %v1317_v19 = vadd.f32 %v4708_v44, %v1297_v13 }
 0x212   : > { %v4990_v3 = vstv %s4936_s29  ;;  %v2104_v30 = vrot.slane %v2098_v49, 4  ;;  %s3360_s29 = smov 13  }
 0x213   : > { %2049 = vrot.lane.b32.xlu0 %v2046_v7, %s3358_s7  ;;  %v4959_v27 = vpop.permute.xlu0 %1517  ;;  %v4967_v31 = vpop.permute.xlu1 %1459  ;;  %v2008_v17 = vsel %vm697_vm5, %v2005_v61, %v2007_v37  ;;  %v2084_v7 = vrot.slane %v2078_v4, 3  ;;  %v1337_v39 = vadd.f32 %v4739_v48, %v1317_v19  ;;  %v5003_v51 = vmul.f32 %v4325_v43, %v4990_v3  ;;  %v5043_v19 = vld [vmem:[#allocation4] sm:$0xff] }
 0x214   : > { %v1218_v22 = vadd.f32 %v4652_v28, %v1198_v15  ;;  %v2028_v48 = vsel %vm730_vm6, %v2025_v47, %v2027_v38  ;;  %v2047_v37 = vrot.slane %v2040_v24, 2  ;;  %v2118_v4 = vmul.f32 %v4240_v29, %v4990_v3 }
 0x215   : > { %1991 = vrot.lane.b32.xlu1 %v1988_v8, %s3358_s7  ;;  %v2086_v44 = vsel %vm763_vm7, %v2084_v7, %v2085_v0  ;;  %v1357_v42 = vadd.f32 %v4762_v58, %v1337_v39  ;;  %v2106_v58 = vsel %vm176_vm0, %v2104_v30, %v2105_v54  ;;  %v2125_v25 = vrot.slane %v5003_v51, 4 }
 0x216   : > { %v1238_v13 = vadd.f32 %v4685_v12, %v1218_v22  ;;  %v2067_v15 = vrot.slane %v2060_v62, 3  ;;  %v2124_v24 = vrot.slane %v2118_v4, 4  ;;  %v2100_v22 = vmul.f32 %v4362_v2, %v4962_v10  ;;  %v5075_v62 = vld [vmem:[#allocation5] sm:$0xff] }
 0x217   : > { %2069 = vrot.lane.b32.xlu0 %v2066_v52, %s3358_s7  ;;  %v4987_v8 = vpop.permute.xlu0 %1537  ;;  %v4995_v61 = vpop.permute.xlu1 %1479  ;;  %v5019_v52 = vstv %s4964_s3  ;;  %v1377_v46 = vadd.f32 %v4788_v23, %v1357_v42  ;;  %v2048_v23 = vsel %vm730_vm6, %v2045_v11, %v2047_v37  ;;  %s3361_s3 = smov 29  }
 0x218   : > { %v5032_v29 = vmul.f32 %v4233_v21, %v5019_v52  ;;  %v1258_v12 = vadd.f32 %v4716_v18, %v1238_v13  ;;  %v2138_v21 = vmul.f32 %v5043_v19, %v5019_v52  ;;  %v5090_v13 = vld [vmem:[#allocation4 + $0x8] sm:$0xff] }
 0x219   : > { %2011 = vrot.lane.b32.xlu1 %v2008_v17, %s3358_s7  ;;  %v2080_v17 = vmul.f32 %v4399_v5, %v4934_v53  ;;  %v1397_v38 = vadd.f32 %v4811_v33, %v1377_v46  ;;  %v2126_v33 = vsel %vm176_vm0, %v2124_v24, %v2125_v25  ;;  %v5093_v46 = vmul.f32 %v5090_v13, %v2177_v14 }
 0x21a   : > { %v1278_v18 = vadd.f32 %v4743_v55, %v1258_v12  ;;  %v2145_v49 = vrot.slane %v5032_v29, 5  ;;  %v5064_v55 = vmul.f32 %v4325_v43, %v5051_v35  ;;  %v2144_v37 = vrot.slane %v2138_v21, 5 }
 0x21b   : > { %2089 = vrot.lane.b32.xlu0 %v2086_v44, %s3358_s7  ;;  %v5016_v28 = vpop.permute.xlu0 %1557  ;;  %v5024_v47 = vpop.permute.xlu1 %1499  ;;  %v1417_v11 = vadd.f32 %v4831_v60, %v1397_v38  ;;  %v2068_v60 = vsel %vm763_vm7, %v2065_v40, %v2067_v15  ;;  %v2087_v44 = vrot.slane %v2080_v17, 3  ;;  %v2120_v12 = vmul.f32 %v4399_v5, %v4990_v3 }
 0x21c   : > { %v1298_v39 = vadd.f32 %v4766_v20, %v1278_v18  ;;  %v2158_v20 = vmul.f32 %v5075_v62, %v5051_v35  ;;  %v2165_v10 = vrot.slane %v5064_v55, 5  ;;  %v2178_v17 = vmul.f32 %v5043_v19, %v2177_v14 }
 0x21d   : > { %2031 = vrot.lane.b32.xlu1 %v2028_v48, %s3358_s7  ;;  %v1430_v48 = vadd.f32 %v4853_v45, %v1417_v11  ;;  %v2146_v45 = vsel %vm828_vm8, %v2144_v37, %v2145_v49  ;;  %v2197_v24 = vstv %s5053_s0  ;;  %v2185_v3 = vrot.slane %v5093_v46, 6  ;;  %s3364_s0 = smov 77  }
 0x21e   : > { %v1318_v42 = vadd.f32 %v4793_v36, %v1298_v39  ;;  %v2164_v15 = vrot.slane %v2158_v20, 5  ;;  %v2140_v11 = vmul.f32 %v4362_v2, %v5019_v52  ;;  %v2198_v39 = vmul.f32 %v5075_v62, %v2197_v24 }
 0x21f   : > { %2109 = vrot.lane.b32.xlu0 %v2106_v58, %s3358_s7  ;;  %v5048_v7 = vpop.permute.xlu0 %1577  ;;  %v5056_v53 = vpop.permute.xlu1 %1519  ;;  %v1443_v40 = vadd.f32 %v4872_v59, %v1430_v48  ;;  %v2088_v59 = vsel %vm763_vm7, %v2085_v0, %v2087_v44  ;;  %v2107_v58 = vrot.slane %v2100_v22, 4  ;;  %v2160_v22 = vmul.f32 %v4399_v5, %v5051_v35 }
 0x220   : > { %v1338_v36 = vadd.f32 %v4816_v41, %v1318_v42  ;;  %v2166_v0 = vsel %vm828_vm8, %v2164_v15, %v2165_v10  ;;  %v2204_v37 = vrot.slane %v2198_v39, 6  ;;  %v2217_v35 = vstv %s5117_s1  ;;  %s3366_s1 = smov 109  }
 0x221   : > { %2051 = vrot.lane.b32.xlu1 %v2048_v23, %s3358_s7  ;;  %v1463_v23 = vadd.f32 %v4893_v6, %v1443_v40  ;;  %v5115_v6 = vmul.f32 %v4325_v43, %v2197_v24  ;;  %v2184_v43 = vrot.slane %v2178_v17, 6  ;;  %v2167_v40 = vrot.slane %v2160_v22, 5 }
 0x222   : > { %v1358_v38 = vadd.f32 %v4838_v32, %v1338_v36  ;;  %v2108_v32 = vsel %vm176_vm0, %v2105_v54, %v2107_v58  ;;  %v2218_v58 = vmul.f32 %v5043_v19, %v2217_v35  ;;  %v5214_v39 = vstv %s5171_s21 }
 0x223   : > { %2129 = vrot.lane.b32.xlu0 %v2126_v33, %s3358_s7  ;;  %v5080_v30 = vpop.permute.xlu0 %1597  ;;  %v5084_v4 = vpop.permute.xlu1 %1539  ;;  %v1483_v21 = vadd.f32 %v4911_v63, %v1463_v23  ;;  %v2127_v63 = vrot.slane %v2120_v12, 4  ;;  %v2186_v54 = vsel %vm861_vm9, %v2184_v43, %v2185_v3  ;;  %v2243_v12 = vstv %s5130_s10  ;;  %s3124_s10 = sshll.u32 %s3404_s13, 7  ;;  %s3367_s13 = smov [#allocation11]  }
 0x224   : > { %v1378_v18 = vadd.f32 %v4858_v26, %v1358_v38  ;;  %v2200_v23 = vmul.f32 %v4399_v5, %v2197_v24  ;;  %v2244_v15 = vmul.f32 %v5043_v19, %v2243_v12 }
 0x225   : > { %2071 = vrot.lane.b32.xlu1 %v2068_v60, %s3358_s7  ;;  %v1503_v33 = vadd.f32 %v4932_v34, %v1483_v21  ;;  %v2205_v34 = vrot.slane %v5115_v6, 6  ;;  %v5193_v21 = vstv %s5151_s5 }
 0x226   : > { %v1398_v60 = vadd.f32 %v4876_v16, %v1378_v18  ;;  %v2128_v16 = vsel %vm176_vm0, %v2125_v25, %v2127_v63  ;;  %v2207_v18 = vrot.slane %v2200_v23, 6  ;;  %v2250_v63 = vrot.slane %v2244_v15, 1 }
 0x227   : > { %2149 = vrot.lane.b32.xlu0 %v2146_v45, %s3358_s7  ;;  %v1618_v41 = vpop.permute.xlu0 %1617  ;;  %v5108_v56 = vpop.permute.xlu1 %1559  ;;  %v1523_v1 = vadd.f32 %v4959_v27, %v1503_v33  ;;  %v2147_v27 = vrot.slane %v2140_v11, 5  ;;  %v2206_v25 = vsel %vm861_vm9, %v2204_v37, %v2205_v34  ;;  %v2180_v45 = vmul.f32 %v4362_v2, %v2177_v14 }
 0x228   : > { %v1418_v52 = vadd.f32 %v4897_v50, %v1398_v60  ;;  %v5178_v2 = vmul.f32 %v5090_v13, %v2243_v12  ;;  %v2264_v11 = vmul.f32 %v5075_v62, %v5193_v21  ;;  %v5237_v37 = vstv %s5195_s24 }
 0x229   : > { %2091 = vrot.lane.b32.xlu1 %v2088_v59, %s3358_s7  ;;  %v1543_v48 = vadd.f32 %v4987_v8, %v1523_v1  ;;  %v2187_v14 = vrot.slane %v2180_v45, 6  ;;  %v2208_v1 = vsel %vm861_vm9, %v2205_v34, %v2207_v18 }
 0x22a   : > { %v1431_v20 = vadd.f32 %v4917_v9, %v1418_v52  ;;  %v2148_v9 = vsel %vm828_vm8, %v2145_v49, %v2147_v27  ;;  %v2230_v49 = vstv %s5139_s11  ;;  %v2251_v5 = vrot.slane %v5178_v2, 1  ;;  %s5806_s11 = sshll.u32 %s3528_s19, 3 }
 0x22b   : > { %2169 = vrot.lane.b32.xlu0 %v2166_v0, %s3358_s7  ;;  %v1638_v26 = vpop.permute.xlu0 %1637  ;;  %v5133_v44 = vpop.permute.xlu1 %1579  ;;  %v1563_v50 = vadd.f32 %v5016_v28, %v1543_v48  ;;  %v2188_v0 = vsel %vm861_vm9, %v2185_v3, %v2187_v14  ;;  %v2270_v52 = vrot.slane %v2264_v11, 1  ;;  %v2219_v48 = vmul.f32 %v5090_v13, %v2217_v35  ;;  %s171_s5 = scalar_lea.vmem [#allocation11], %s5806_s11 }
 0x22c   : > { %v1444_v8 = vadd.f32 %v4939_v57, %v1431_v20  ;;  %v2252_v3 = vsel %vm697_vm5, %v2250_v63, %v2251_v5  ;;  %s2878_s21 = sshll.u32 %s171_s5, 4  ;;  %s5599_s21 = int_to_ptr.vmem [resolvable:$true] %s2878_s21 }
 0x22d   : > { %2111 = vrot.lane.b32.xlu1 %v2108_v32, %s3358_s7  ;;  %v1583_v28 = vadd.f32 %v5048_v7, %v1563_v50  ;;  %v5251_v50 = vld [vmem:[#allocation4 + $0x10] sm:$0x3f] }
 0x22e   : > { %v1464_v36 = vadd.f32 %v4967_v31, %v1444_v8  ;;  %v2168_v31 = vsel %vm828_vm8, %v2165_v10, %v2167_v40 }
 0x22f   : > { %2189 = vrot.lane.b32.xlu0 %v2186_v54, %s3358_s7  ;;  %v1658_v42 = vpop.permute.xlu0 %1657  ;;  %v5154_v51 = vpop.permute.xlu1 %1599  ;;  %v1603_v57 = vadd.f32 %v5080_v30, %v1583_v28 }
 0x230   : > { %v1484_v7 = vadd.f32 %v4995_v61, %v1464_v36  ;;  %v2231_v61 = vmul.f32 %v5075_v62, %v2230_v49 }
 0x231   : > { %2131 = vrot.lane.b32.xlu1 %v2128_v16, %s3358_s7  ;;  %v1623_v30 = vadd.f32 %v1618_v41, %v1603_v57  ;;  %v5198_v41 = vld [vmem:[#allocation5 + $0x8] sm:$0xff]  ;;  %v2284_v16 = vmul.f32 %v5043_v19, %v5214_v39 }
 0x232   : > { %v1504_v17 = vadd.f32 %v5024_v47, %v1484_v7  ;;  %v5202_v24 = vmul.f32 %v5198_v41, %v5193_v21  ;;  %v2232_v28 = vmul.f32 %v5198_v41, %v2230_v49  ;;  %v5272_v49 = vld [vmem:[#allocation5 + $0x10] sm:$0x3f] }
 0x233   : > { %2209 = vrot.lane.b32.xlu0 %v2206_v25, %s3358_s7  ;;  %v1678_v59 = vpop.permute.xlu0 %1677  ;;  %v5174_v29 = vpop.permute.xlu1 %1619  ;;  %v1643_v55 = vadd.f32 %v1638_v26, %v1623_v30  ;;  %v5224_v26 = vmul.f32 %v5090_v13, %v5214_v39  ;;  %v2246_v25 = vmul.f32 %v5251_v50, %v2243_v12  ;;  %v2290_v8 = vrot.slane %v2284_v16, 2 }
 0x234   : > { %v1524_v47 = vadd.f32 %v5056_v53, %v1504_v17  ;;  %v2271_v60 = vrot.slane %v5202_v24, 1  ;;  %v2343_v17 = vstv %s5239_s14  ;;  %s2864_s14 = scalar_lea.sflag [#allocation8], %s3528_s19 }
 0x235   : > { %2151 = vrot.lane.b32.xlu1 %v2148_v9, %s3358_s7  ;;  %v1663_v32 = vadd.f32 %v1658_v42, %v1643_v55  ;;  %v2291_v20 = vrot.slane %v5224_v26, 2  ;;  %v2304_v9 = vmul.f32 %v5075_v62, %v5237_v37  ;;  %v2253_v7 = vrot.slane %v2246_v25, 1 }
 0x236   : > { %v1544_v33 = vadd.f32 %v5084_v4, %v1524_v47  ;;  %v2272_v34 = vsel %vm697_vm5, %v2270_v52, %v2271_v60  ;;  %v2344_v11 = vmul.f32 %v5075_v62, %v2343_v17  ;;  %v2306_v52 = vmul.f32 %v5272_v49, %v5237_v37 }
 0x237   : > { %2222 = vrot.lane.b32.xlu0 %v2218_v58, %s3359_s17  ;;  %v1691_v38 = vpop.permute.xlu0 %1690  ;;  %v1640_v10 = vpop.permute.xlu1 %1639  ;;  %v1683_v53 = vadd.f32 %v1678_v59, %v1663_v32  ;;  %v2292_v58 = vsel %vm730_vm6, %v2290_v8, %v2291_v20  ;;  %v2310_v14 = vrot.slane %v2304_v9, 2  ;;  %v2286_v32 = vmul.f32 %v5251_v50, %v5214_v39 }
 0x238   : > { %v1564_v4 = vadd.f32 %v5108_v56, %v1544_v33  ;;  %v2350_v16 = vrot.slane %v2344_v11, 3 }
 0x239   : > { %2171 = vrot.lane.b32.xlu1 %v2168_v31, %s3358_s7  ;;  %v1696_v54 = vadd.f32 %v1691_v38, %v1683_v53  ;;  %v2266_v31 = vmul.f32 %v5272_v49, %v5193_v21  ;;  %v5286_v21 = vmul.f32 %v5198_v41, %v2343_v17  ;;  %v2363_v53 = vstv %s5262_s23  ;;  %s3270_s23 = scalar_lea.vmem %s5599_s21, 128 }
 0x23a   : > { %v1584_v27 = vadd.f32 %v5133_v44, %v1564_v4  ;;  %v5247_v44 = vmul.f32 %v5198_v41, %v5237_v37  ;;  %v5304_v39 = vmul.f32 %v5090_v13, %v2363_v53  ;;  %p3271_p9 = scmp.ne.s32.totalorder %s5599_s21, %s3270_s23 }
 0x23b   : > { %2235 = vrot.lane.b32.xlu0 %v2231_v61, %s3359_s17  ;;  %v1704_v43 = vpop.permute.xlu0 %1703  ;;  %v1660_v46 = vpop.permute.xlu1 %1659  ;;  %v2273_v18 = vrot.slane %v2266_v31, 1  ;;  %v2346_v31 = vmul.f32 %v5272_v49, %v2343_v17 }
 0x23c   : > { %v1709_v56 = vadd.f32 %v1704_v43, %v1696_v54  ;;  %v1604_v42 = vadd.f32 %v5154_v51, %v1584_v27  ;;  %v2323_v51 = vstv %s5216_s8  ;;  %v2311_v12 = vrot.slane %v5247_v44, 2  ;;  %s5597_s8 = scalar_lea.hbm %s5643_s2, %s3124_s10  ;;  %p3272_p13 = pnand %p3271_p9, %p5807_p11 }
 0x23d   : > { %2191 = vrot.lane.b32.xlu1 %v2188_v0, %s3358_s7  ;;  %v5269_v57 = vmul.f32 %v5090_v13, %v2323_v51  ;;  %v2324_v23 = vmul.f32 %v5043_v19, %v2323_v51  ;;  %v2254_v0 = vsel %vm697_vm5, %v2251_v5, %v2253_v7  ;;  %v2351_v5 = vrot.slane %v5286_v21, 3 }
 0x23e   : > { %v1624_v40 = vadd.f32 %v5174_v29, %v1604_v42  ;;  %v2312_v55 = vsel %vm730_vm6, %v2310_v14, %v2311_v12  ;;  %v2293_v54 = vrot.slane %v2286_v32, 2  ;;  %v2364_v27 = vmul.f32 %v5043_v19, %v2363_v53  ;;  %p3273_p5 = pneg %p3272_p13 }
 0x23f   : > { %2255 = vrot.lane.b32.xlu0 %v2252_v3, %s3359_s17  ;;  %v1724_v22 = vpop.permute.xlu0 %1723  ;;  %v1680_v6 = vpop.permute.xlu1 %1679  ;;  %v2330_v63 = vrot.slane %v2324_v23, 3  ;;  %v2352_v24 = vsel %vm763_vm7, %v2350_v16, %v2351_v5  ;;  %v2326_v8 = vmul.f32 %v5251_v50, %v2323_v51 }
 0x240   : > { %v1729_v35 = vadd.f32 %v1724_v22, %v1709_v56  ;;  %v1644_v29 = vadd.f32 %v1640_v10, %v1624_v40  ;;  %v2331_v10 = vrot.slane %v5269_v57, 3  ;;  %v2383_v56 = vstv %s5279_s22 }
 0x241   : > { %2211 = vrot.lane.b32.xlu1 %v2208_v1, %s3358_s7  ;;  %s5297_s7 = sld [smem:[#allocation10 + $0x29]]  ;;  %v2274_v1 = vsel %vm697_vm5, %v2271_v60, %v2273_v18  ;;  %v2371_v60 = vrot.slane %v5304_v39, 4  ;;  %v5322_v37 = vmul.f32 %v5198_v41, %v2383_v56  ;;  %v2294_v25 = vsel %vm730_vm6, %v2291_v20, %v2293_v54 }
 0x242   : > { %v1664_v30 = vadd.f32 %v1660_v46, %v1644_v29  ;;  %v2332_v2 = vsel %vm763_vm7, %v2330_v63, %v2331_v10  ;;  %v2370_v9 = vrot.slane %v2364_v27, 4  ;;  %v2384_v40 = vmul.f32 %v5075_v62, %v2383_v56 }
 0x243   : > { %2275 = vrot.lane.b32.xlu0 %v2272_v34, %s3359_s17  ;;  %v1744_v45 = vpop.permute.xlu0 %1743  ;;  %v1693_v59 = vpop.permute.xlu1 %1692  ;;  %v2391_v20 = vrot.slane %v5322_v37, 4  ;;  %v2333_v7 = vrot.slane %v2326_v8, 3  ;;  %v2366_v18 = vmul.f32 %v5251_v50, %v2363_v53  ;;  %v2463_v27 = vstv %s3099_s27 }
 0x244   : > { %v1749_v36 = vadd.f32 %v1744_v45, %v1729_v35  ;;  %v1684_v47 = vadd.f32 %v1680_v6, %v1664_v30  ;;  %v2313_v35 = vrot.slane %v2306_v52, 2  ;;  %v2372_v26 = vsel %vm176_vm0, %v2370_v9, %v2371_v60 }
 0x245   : > { %2224 = vrot.lane.b32.xlu1 %v2219_v48, %s3359_s17  ;;  %v2390_v14 = vrot.slane %v2384_v40, 4  ;;  %v2334_v17 = vsel %vm763_vm7, %v2331_v10, %v2333_v7  ;;  %v2373_v53 = vrot.slane %v2366_v18, 4  ;;  %v2466_v7 = vmul.f32 %v5272_v49, %v2463_v27 }
 0x246   : > { %v1697_v33 = vadd.f32 %v1693_v59, %v1684_v47  ;;  %v2314_v29 = vsel %vm730_vm6, %v2311_v12, %v2313_v35 }
 0x247   : > { %2295 = vrot.lane.b32.xlu0 %v2292_v58, %s3359_s17  ;;  %v1764_v15 = vpop.permute.xlu0 %1763  ;;  %v1706_v61 = vpop.permute.xlu1 %1705 }
 0x248   : > { %v1769_v38 = vadd.f32 %v1764_v15, %v1749_v36  ;;  %v1710_v4 = vadd.f32 %v1706_v61, %v1697_v33  ;;  %v2423_v15 = vstv %s5315_s25  ;;  %v2443_v33 = vstv %s5332_s30 }
 0x249   : > { %2237 = vrot.lane.b32.xlu1 %v2232_v28, %s3359_s17  ;;  %v2403_v28 = vstv %s5297_s7  ;;  %v2425_v12 = vmul.f32 %v5198_v41, %v2423_v15  ;;  %v2424_v63 = vmul.f32 %v5075_v62, %v2423_v15  ;;  %v2445_v57 = vmul.f32 %v5090_v13, %v2443_v33 }
 0x24a   : > { %v5339_v51 = vmul.f32 %v5090_v13, %v2403_v28  ;;  %v2404_v23 = vmul.f32 %v5043_v19, %v2403_v28  ;;  %v2444_v52 = vmul.f32 %v5043_v19, %v2443_v33 }
 0x24b   : > { %2315 = vrot.lane.b32.xlu0 %v2312_v55, %s3359_s17  ;;  %v1784_v43 = vpop.permute.xlu0 %1783  ;;  %v2392_v55 = vsel %vm176_vm0, %v2390_v14, %v2391_v20  ;;  %v2430_v54 = vrot.slane %v2424_v63, 5 }
 0x24c   : > { %v1789_v46 = vadd.f32 %v1784_v43, %v1769_v38  ;;  %v2411_v44 = vrot.slane %v5339_v51, 5  ;;  %v2410_v32 = vrot.slane %v2404_v23, 5  ;;  %v2450_v19 = vrot.slane %v2444_v52, 6 }
 0x24d   : > { %2257 = vrot.lane.b32.xlu1 %v2254_v0, %s3359_s17  ;;  %v1726_v3 = vpop.permute.xlu1 %1725  ;;  %v2353_v0 = vrot.slane %v2346_v31, 3 }
 0x24e   : > { %v1730_v22 = vadd.f32 %v1726_v3, %v1710_v4  ;;  %v2412_v3 = vsel %vm828_vm8, %v2410_v32, %v2411_v44 }
 0x24f   : > { %2335 = vrot.lane.b32.xlu0 %v2332_v2, %s3359_s17  ;;  %v2431_v2 = vrot.slane %v2425_v12, 5  ;;  %v2354_v10 = vsel %vm763_vm7, %v2351_v5, %v2353_v0  ;;  %v2374_v5 = vsel %vm176_vm0, %v2371_v60, %v2373_v53  ;;  %v2426_v60 = vmul.f32 %v5272_v49, %v2423_v15 }
 0x251   : > { %2277 = vrot.lane.b32.xlu1 %v2274_v1, %s3359_s17  ;;  %v1804_v48 = vpop.permute.xlu0 %1803  ;;  %v2386_v1 = vmul.f32 %v5272_v49, %v2383_v56  ;;  %v2432_v13 = vsel %vm828_vm8, %v2430_v54, %v2431_v2 }
 0x252   : > { %v1809_v6 = vadd.f32 %v1804_v48, %v1789_v46  ;;  %v1746_v34 = vpop.permute.xlu1 %1745  ;;  %v2451_v48 = vrot.slane %v2445_v57, 6 }
 0x253   : > { %v1750_v42 = vadd.f32 %v1746_v34, %v1730_v22  ;;  %2355 = vrot.lane.b32.xlu0 %v2352_v24, %s3359_s17  ;;  %v2393_v56 = vrot.slane %v2386_v1, 4  ;;  %v2406_v34 = vmul.f32 %v5251_v50, %v2403_v28  ;;  %v2464_v24 = vmul.f32 %v5075_v62, %v2463_v27 }
 0x255   : > { %2297 = vrot.lane.b32.xlu1 %v2294_v25, %s3359_s17  ;;  %v1824_v45 = vpop.permute.xlu0 %1823  ;;  %v2452_v25 = vsel %vm861_vm9, %v2450_v19, %v2451_v48  ;;  %v2394_v39 = vsel %vm176_vm0, %v2391_v20, %v2393_v56  ;;  %v2413_v8 = vrot.slane %v2406_v34, 5  ;;  %v2470_v9 = vrot.slane %v2464_v24, 6 }
 0x256   : > { %v1829_v36 = vadd.f32 %v1824_v45, %v1809_v6  ;;  %v1766_v59 = vpop.permute.xlu1 %1765  ;;  %v2465_v6 = vmul.f32 %v5198_v41, %v2463_v27 }
 0x257   : > { %v1770_v58 = vadd.f32 %v1766_v59, %v1750_v42  ;;  %2375 = vrot.lane.b32.xlu0 %v2372_v26, %s3359_s17  ;;  %v2433_v59 = vrot.slane %v2426_v60, 5  ;;  %v2446_v26 = vmul.f32 %v5251_v50, %v2443_v33 }
 0x258   : > { %v2471_v41 = vrot.slane %v2465_v6, 6 }
 0x259   : > { %2317 = vrot.lane.b32.xlu1 %v2314_v29, %s3359_s17  ;;  %v1844_v30 = vpop.permute.xlu0 %1843  ;;  %v2453_v29 = vrot.slane %v2446_v26, 6 }
 0x25a   : > { %v1849_v38 = vadd.f32 %v1844_v30, %v1829_v36  ;;  %v2472_v62 = vsel %vm861_vm9, %v2470_v9, %v2471_v41  ;;  %v2414_v36 = vsel %vm828_vm8, %v2411_v44, %v2413_v8  ;;  %v2473_v30 = vrot.slane %v2466_v7, 6 }
 0x25b   : > { %v1786_v61 = vpop.permute.xlu1 %1785  ;;  %2395 = vrot.lane.b32.xlu0 %v2392_v55, %s3359_s17  ;;  %v2454_v23 = vsel %vm861_vm9, %v2451_v48, %v2453_v29 }
 0x25c   : > { %v1790_v47 = vadd.f32 %v1786_v61, %v1770_v58  ;;  %v2434_v58 = vsel %vm828_vm8, %v2431_v2, %v2433_v59 }
 0x25d   : > { %2337 = vrot.lane.b32.xlu1 %v2334_v17, %s3359_s17  ;;  %v1864_v11 = vpop.permute.xlu0 %1863 }
 0x25e   : > { %v5360_v43 = vadd.f32 %v1864_v11, %v1849_v38  ;;  %v2474_v38 = vsel %vm861_vm9, %v2471_v41, %v2473_v30 }
 0x25f   : > { %v1806_v46 = vpop.permute.xlu1 %1805  ;;  %2415 = vrot.lane.b32.xlu0 %v2412_v3, %s3359_s17 }
 0x260   : > { %v1810_v4 = vadd.f32 %v1806_v46, %v1790_v47 }
 0x261   : > { %2357 = vrot.lane.b32.xlu1 %v2354_v10, %s3359_s17  ;;  %v5371_v16 = vpop.permute.xlu0 %1883 }
 0x262   : > { %v1889_v1 = vadd.f32 %v5371_v16, %v5360_v43 }
 0x263   : > { %v1826_v22 = vpop.permute.xlu1 %1825  ;;  %2435 = vrot.lane.b32.xlu0 %v2432_v13, %s3359_s17 }
 0x264   : > { %v1830_v21 = vadd.f32 %v1826_v22, %v1810_v4 }
 0x265   : > { %2377 = vrot.lane.b32.xlu1 %v2374_v5, %s3359_s17  ;;  %v1904_v37 = vpop.permute.xlu0 %1903 }
 0x266   : > { %v1909_v52 = vadd.f32 %v1904_v37, %v1889_v1 }
 0x267   : > { %v1846_v42 = vpop.permute.xlu1 %1845  ;;  %2455 = vrot.lane.b32.xlu0 %v2452_v25, %s3359_s17 }
 0x268   : > { %v1850_v35 = vadd.f32 %v1846_v42, %v1830_v21 }
 0x269   : > { %2397 = vrot.lane.b32.xlu1 %v2394_v39, %s3359_s17  ;;  %v1924_v40 = vpop.permute.xlu0 %1923 }
 0x26a   : > { %v1929_v22 = vadd.f32 %v1924_v40, %v1909_v52 }
 0x26b   : > { %v1866_v45 = vpop.permute.xlu1 %1865  ;;  %2475 = vrot.lane.b32.xlu0 %v2472_v62, %s3359_s17 }
 0x26c   : > { %v1870_v28 = vadd.f32 %v1866_v45, %v1850_v35 }
 0x26d   : > { %2417 = vrot.lane.b32.xlu1 %v2414_v36, %s3359_s17  ;;  %v1944_v20 = vpop.permute.xlu0 %1943 }
 0x26e   : > { %v1949_v48 = vadd.f32 %v1944_v20, %v1929_v22 }
 0x26f   : > { %v1886_v51 = vpop.permute.xlu1 %1885 }
 0x270   : > { %v1890_v24 = vadd.f32 %v1886_v51, %v1870_v28 }
 0x271   : > { %2437 = vrot.lane.b32.xlu1 %v2434_v58, %s3359_s17  ;;  %v1957_v31 = vpop.permute.xlu0 %1956 }
 0x272   : > { %v1962_v21 = vadd.f32 %v1957_v31, %v1949_v48 }
 0x273   : > { %v1906_v14 = vpop.permute.xlu1 %1905 }
 0x274   : > { %v1910_v35 = vadd.f32 %v1906_v14, %v1890_v24 }
 0x275   : > { %2457 = vrot.lane.b32.xlu1 %v2454_v23, %s3359_s17  ;;  %v1970_v15 = vpop.permute.xlu0 %1969 }
 0x276   : > { %v1975_v56 = vadd.f32 %v1970_v15, %v1962_v21 }
 0x277   : > { %v1926_v50 = vpop.permute.xlu1 %1925 }
 0x278   : > { %v1930_v8 = vadd.f32 %v1926_v50, %v1910_v35 }
 0x279   : > { %2477 = vrot.lane.b32.xlu1 %v2474_v38, %s3359_s17  ;;  %v1990_v61 = vpop.permute.xlu0 %1989 }
 0x27a   : > { %v1995_v19 = vadd.f32 %v1990_v61, %v1975_v56 }
 0x27b   : > { %v1946_v55 = vpop.permute.xlu1 %1945 }
 0x27c   : > { %v1950_v60 = vadd.f32 %v1946_v55, %v1930_v8 }
 0x27d   : > { %v2010_v44 = vpop.permute.xlu0 %2009 }
 0x27e   : > { %v2015_v25 = vadd.f32 %v2010_v44, %v1995_v19 }
 0x27f   : > { %v1959_v12 = vpop.permute.xlu1 %1958 }
 0x280   : > { %v1963_v40 = vadd.f32 %v1959_v12, %v1950_v60 }
 0x281   : > { %v2030_v49 = vpop.permute.xlu0 %2029 }
 0x282   : > { %v2035_v39 = vadd.f32 %v2030_v49, %v2015_v25 }
 0x283   : > { %v1972_v47 = vpop.permute.xlu1 %1971 }
 0x284   : > { %v1976_v59 = vadd.f32 %v1972_v47, %v1963_v40 }
 0x285   : > { %v2050_v17 = vpop.permute.xlu0 %2049 }
 0x286   : > { %v2055_v16 = vadd.f32 %v2050_v17, %v2035_v39 }
 0x287   : > { %v1992_v0 = vpop.permute.xlu1 %1991 }
 0x288   : > { %v1996_v20 = vadd.f32 %v1992_v0, %v1976_v59 }
 0x289   : > { %v2070_v18 = vpop.permute.xlu0 %2069 }
 0x28a   : > { %v2075_v9 = vadd.f32 %v2070_v18, %v2055_v16 }
 0x28b   : > { %v2012_v32 = vpop.permute.xlu1 %2011 }
 0x28c   : > { %v2016_v29 = vadd.f32 %v2012_v32, %v1996_v20 }
 0x28d   : > { %v2090_v63 = vpop.permute.xlu0 %2089 }
 0x28e   : > { %v2095_v62 = vadd.f32 %v2090_v63, %v2075_v9 }
 0x28f   : > { %v2032_v11 = vpop.permute.xlu1 %2031 }
 0x290   : > { %v2036_v31 = vadd.f32 %v2032_v11, %v2016_v29 }
 0x291   : > { %v2110_v33 = vpop.permute.xlu0 %2109 }
 0x292   : > { %v2115_v26 = vadd.f32 %v2110_v33, %v2095_v62 }
 0x293   : > { %v2052_v46 = vpop.permute.xlu1 %2051 }
 0x294   : > { %v2056_v15 = vadd.f32 %v2052_v46, %v2036_v31 }
 0x295   : > { %v2130_v3 = vpop.permute.xlu0 %2129 }
 0x296   : > { %v2135_v28 = vadd.f32 %v2130_v3, %v2115_v26 }
 0x297   : > { %v2072_v2 = vpop.permute.xlu1 %2071 }
 0x298   : > { %v2076_v38 = vadd.f32 %v2072_v2, %v2056_v15 }
 0x299   : > { %v2150_v57 = vpop.permute.xlu0 %2149 }
 0x29a   : > { %v2155_v7 = vadd.f32 %v2150_v57, %v2135_v28 }
 0x29b   : > { %v2092_v4 = vpop.permute.xlu1 %2091 }
 0x29c   : > { %v2096_v12 = vadd.f32 %v2092_v4, %v2076_v38 }
 0x29d   : > { %v2170_v10 = vpop.permute.xlu0 %2169 }
 0x29e   : > { %v2175_v23 = vadd.f32 %v2170_v10, %v2155_v7 }
 0x29f   : > { %v2112_v53 = vpop.permute.xlu1 %2111 }
 0x2a0   : > { %v2116_v47 = vadd.f32 %v2112_v53, %v2096_v12 }
 0x2a1   : > { %v2190_v54 = vpop.permute.xlu0 %2189 }
 0x2a2   : > { %v2195_v50 = vadd.f32 %v2190_v54, %v2175_v23 }
 0x2a3   : > { %v2132_v27 = vpop.permute.xlu1 %2131 }
 0x2a4   : > { %v2136_v63 = vadd.f32 %v2132_v27, %v2116_v47 }
 0x2a5   : > { %v2210_v13 = vpop.permute.xlu0 %2209 }
 0x2a6   : > { %v2215_v55 = vadd.f32 %v2210_v13, %v2195_v50 }
 0x2a7   : > { %v2152_v6 = vpop.permute.xlu1 %2151 }
 0x2a8   : > { %v2156_v32 = vadd.f32 %v2152_v6, %v2136_v63 }
 0x2a9   : > { %v2223_v5 = vpop.permute.xlu0 %2222 }
 0x2aa   : > { %v2228_v49 = vadd.f32 %v2223_v5, %v2215_v55  ;;  %v5772_v55 = vld [vmem:[#allocation19_spill] sm:$0xff] }
 0x2ab   : > { %v2172_v34 = vpop.permute.xlu1 %2171 }
 0x2ac   : > { %v2176_v10 = vadd.f32 %v2172_v34, %v2156_v32 }
 0x2ad   : > { %v2236_v42 = vpop.permute.xlu0 %2235 }
 0x2ae   : > { %v2241_v0 = vadd.f32 %v2236_v42, %v2228_v49 }
 0x2af   : > { %v2192_v41 = vpop.permute.xlu1 %2191 }
 0x2b0   : > { %v2196_v46 = vadd.f32 %v2192_v41, %v2176_v10 }
 0x2b1   : > { %v2256_v43 = vpop.permute.xlu0 %2255 }
 0x2b2   : > { %v2261_v33 = vadd.f32 %v2256_v43, %v2241_v0 }
 0x2b3   : > { %v2212_v37 = vpop.permute.xlu1 %2211 }
 0x2b4   : > { %v2216_v22 = vadd.f32 %v2212_v37, %v2196_v46 }
 0x2b5   : > { %v2276_v45 = vpop.permute.xlu0 %2275 }
 0x2b6   : > { %v2281_v11 = vadd.f32 %v2276_v45, %v2261_v33 }
 0x2b7   : > { %v2225_v36 = vpop.permute.xlu1 %2224 }
 0x2b8   : > { %v2229_v4 = vadd.f32 %v2225_v36, %v2216_v22 }
 0x2b9   : > { %v2296_v58 = vpop.permute.xlu0 %2295 }
 0x2ba   : > { %v2301_v1 = vadd.f32 %v2296_v58, %v2281_v11 }
 0x2bb   : > { %v2238_v51 = vpop.permute.xlu1 %2237 }
 0x2bc   : > { %v2242_v5 = vadd.f32 %v2238_v51, %v2229_v4 }
 0x2bd   : > { %v2316_v14 = vpop.permute.xlu0 %2315 }
 0x2be   : > { %v2321_v2 = vadd.f32 %v2316_v14, %v2301_v1 }
 0x2bf   : > { %v2258_v30 = vpop.permute.xlu1 %2257 }
 0x2c0   : > { %v2262_v27 = vadd.f32 %v2258_v30, %v2242_v5 }
 0x2c1   : > { %v2336_v61 = vpop.permute.xlu0 %2335 }
 0x2c2   : > { %v2341_v13 = vadd.f32 %v2336_v61, %v2321_v2 }
 0x2c3   : > { %v2278_v44 = vpop.permute.xlu1 %2277 }
 0x2c4   : > { %v2282_v42 = vadd.f32 %v2278_v44, %v2262_v27 }
 0x2c5   : > { %v2356_v17 = vpop.permute.xlu0 %2355 }
 0x2c6   : > { %v2361_v53 = vadd.f32 %v2356_v17, %v2341_v13 }
 0x2c7   : > { %v2298_v18 = vpop.permute.xlu1 %2297 }
 0x2c8   : > { %v2302_v34 = vadd.f32 %v2298_v18, %v2282_v42 }
 0x2c9   : > { %v2376_v3 = vpop.permute.xlu0 %2375 }
 0x2ca   : > { %v2381_v56 = vadd.f32 %v2376_v3, %v2361_v53 }
 0x2cb   : > { %v2318_v57 = vpop.permute.xlu1 %2317 }
 0x2cc   : > { %v2322_v8 = vadd.f32 %v2318_v57, %v2302_v34 }
 0x2cd   : > { %v2396_v54 = vpop.permute.xlu0 %2395 }
 0x2ce   : > { %v2401_v6 = vadd.f32 %v2396_v54, %v2381_v56 }
 0x2cf   : > { %v2338_v52 = vpop.permute.xlu1 %2337 }
 0x2d0   : > { %v2342_v16 = vadd.f32 %v2338_v52, %v2322_v8 }
 0x2d1   : > { %v2416_v48 = vpop.permute.xlu0 %2415 }
 0x2d2   : > { %v2421_v25 = vadd.f32 %v2416_v48, %v2401_v6 }
 0x2d3   : > { %v2358_v21 = vpop.permute.xlu1 %2357 }
 0x2d4   : > { %v2362_v40 = vadd.f32 %v2358_v21, %v2342_v16 }
 0x2d5   : > { %v2436_v19 = vpop.permute.xlu0 %2435 }
 0x2d6   : > { %v2441_v41 = vadd.f32 %v2436_v19, %v2421_v25  ;;  %v5773_v25 = vlaneseq }
 0x2d7   : > { %v2378_v24 = vpop.permute.xlu1 %2377 }
 0x2d8   : > { %v2382_v62 = vadd.f32 %v2378_v24, %v2362_v40  ;;  %vm5422_vm11 = vcmp.lt.s32.totalorder %v5773_v25, 16  ;;  %vm5427_vm12 = vcmp.ge.s32.totalorder %v5773_v25, 16  ;;  %vm5432_vm13 = vcmp.lt.s32.totalorder %v5773_v25, 32 }
 0x2d9   : > { %v2456_v35 = vpop.permute.xlu0 %2455  ;;  %vm2549_vm14 = vmand %vm5427_vm12, %vm5432_vm13  ;;  %vm5443_vm15 = vcmp.ge.s32.totalorder %v5773_v25, 32  ;;  %vm5448_vm0 = vcmp.lt.s32.totalorder %v5773_v25, 48  ;;  %vm5462_vm2 = vcmp.ge.s32.totalorder %v5773_v25, 48  ;;  %vm5467_vm3 = vcmp.lt.s32.totalorder %v5773_v25, 64 }
 0x2da   : > { %v2461_v43 = vadd.f32 %v2456_v35, %v2441_v41  ;;  %vm2572_vm1 = vmand %vm5443_vm15, %vm5448_vm0  ;;  %vm5481_vm5 = vcmp.ge.s32.totalorder %v5773_v25, 64  ;;  %vm5486_vm6 = vcmp.lt.s32.totalorder %v5773_v25, 80  ;;  %vm5502_vm8 = vcmp.ge.s32.totalorder %v5773_v25, 80 }
 0x2db   : > { %v2398_v39 = vpop.permute.xlu1 %2397  ;;  %vm5673_vm4 = vmand %vm5462_vm2, %vm5467_vm3  ;;  %vm5507_vm9 = vcmp.lt.s32.totalorder %v5773_v25, 96  ;;  %vm5550_vm13 = vcmp.ge.s32.totalorder %v5773_v25, 112 }
 0x2dc   : > { %v2402_v59 = vadd.f32 %v2398_v39, %v2382_v62  ;;  %vm2618_vm7 = vmand %vm5481_vm5, %vm5486_vm6 }
 0x2dd   : > { %v2476_v37 = vpop.permute.xlu0 %2475  ;;  %vm5804_vm0 = vmand %vm5462_vm2, %vm5467_vm3 }
 0x2de   : > { %v2481_v60 = vadd.f32 %v2476_v37, %v2461_v43 }
 0x2df   : > { %v2418_v9 = vpop.permute.xlu1 %2417 }
 0x2e0   : > { %v3100_v45 = vmul.f32 -1.442695, %v2481_v60  ;;  %v2422_v26 = vadd.f32 %v2418_v9, %v2402_v59 }
 0x2e2   : > { %3206 = vpow2.f32 %v3100_v45 }
 0x2e3   : > { %v2438_v36 = vpop.permute.xlu1 %2437 }
 0x2e4   : > { %v2442_v58 = vadd.f32 %v2438_v36, %v2422_v26 }
 0x2e7   : > { %v2458_v20 = vpop.permute.xlu1 %2457 }
 0x2e8   : > { %v2462_v28 = vadd.f32 %v2458_v20, %v2442_v58 }
 0x2eb   : > { %v2478_v51 = vpop.permute.xlu1 %2477 }
 0x2ec   : > { %v2482_v29 = vadd.f32 %v2478_v51, %v2462_v28  ;;  %v3207_v7 = vpop.eup %3206 }
 0x2ed   : > { %v2489_v31 = vadd.f32 1.0, %v3207_v7 }
 0x2ee   : > { %v3101_v14 = vmul.f32 -1.442695, %v2482_v29 }
 0x2ef   : > { %3208 = vrcp.f32 %v2489_v31 }
 0x2f0   : > { %3210 = vpow2.f32 %v3101_v14 }
 0x2f9   : > { %v3209_v23 = vpop.eup %3208 }
 0x2fa   : > { %v3211_v30 = vpop.eup %3210  ;;  %2497 = vrot.lane.b32.xlu0 %v3209_v23, %s5771_s28 }
 0x2fb   : > { %v2490_v15 = vadd.f32 1.0, %v3211_v30 }
 0x2fd   : > { %3212 = vrcp.f32 %v2490_v15 }
 0x307   : > { %v3213_v50 = vpop.eup %3212 }
 0x308   : > { %2499 = vrot.lane.b32.xlu1 %v3213_v50, %s5771_s28 }
 0x36c   : > { %v2498_v38 = vpop.permute.xlu0 %2497 }
 0x36d   : > { %2504 = vst.msk [vmem:[#allocation4 + $0x3] sm:$0xff] %vm2503_vm10, %v2498_v38 }
 0x374   : > { %v3102_v61 = vld.sshfl [vmem:[#allocation4 + $0x3] sm:$0x1 pattern:$0x75316420] }
 0x375   : > { %v2521_v44 = vrot.slane %v3102_v61, %v5772_v55  ;;  %v3103_v12 = vld.sshfl [vmem:[#allocation4 + $0x4] sm:$0x1 pattern:$0x75316420] }
 0x376   : > { %v2543_v49 = vrot.slane %v3103_v12, %v5772_v55  ;;  %v3104_v17 = vld.sshfl [vmem:[#allocation4 + $0x5] sm:$0x1 pattern:$0x75316420] }
 0x377   : > { %2522 = vrot.lane.b32.xlu0 %v2521_v44, %s3356_s15  ;;  %v2566_v0 = vrot.slane %v3104_v17, %v5772_v55  ;;  %v3105_v18 = vld.sshfl [vmem:[#allocation4 + $0x6] sm:$0x1 pattern:$0x75316420]  ;;  %v5805_v44 = vld [vmem:[#allocation18_spill] sm:$0xff] }
 0x378   : > { %v2589_v63 = vrot.slane %v3105_v18, %v5772_v55  ;;  %v3106_v33 = vld.sshfl [vmem:[#allocation4 + $0x7] sm:$0x1 pattern:$0x75316420]  ;;  %v2853_v12 = vsub.s32 0, %v5805_v44 }
 0x379   : > { %v2612_v57 = vrot.slane %v3106_v33, %v5772_v55  ;;  %v3107_v10 = vld.sshfl [vmem:[#allocation4 + $0x8] sm:$0x1 pattern:$0x75316420] }
 0x37a   : > { %v2500_v47 = vpop.permute.xlu1 %2499  ;;  %v2635_v54 = vrot.slane %v3107_v10, %v5772_v55  ;;  %v3108_v2 = vld.sshfl [vmem:[#allocation4 + $0x9] sm:$0x1 pattern:$0x75316420] }
 0x37b   : > { %2505 = vst.msk [vmem:[#allocation4 + $0xb] sm:$0xff] %vm2503_vm10, %v2500_v47  ;;  %2544 = vrot.lane.b32.xlu0 %v2543_v49, %s3360_s29  ;;  %v2658_v13 = vrot.slane %v3108_v2, %v5772_v55  ;;  %v3109_v4 = vld.sshfl [vmem:[#allocation4 + $0xa] sm:$0x1 pattern:$0x75316420]  ;;  %vm2641_vm10 = vmand %vm5502_vm8, %vm5507_vm9  ;;  %v2857_v49 = vsub.s32 1, %v5805_v44 }
 0x37c   : > { %v2681_v21 = vrot.slane %v3109_v4, %v5772_v55 }
 0x37f   : > { %2567 = vrot.lane.b32.xlu0 %v2566_v0, %s3361_s3 }
 0x382   : > { %v3110_v32 = vld.sshfl [vmem:[#allocation4 + $0xb] sm:$0x1 pattern:$0x75316420] }
 0x383   : > { %2590 = vrot.lane.b32.xlu0 %v2589_v63, %s3362_s4  ;;  %v2704_v3 = vrot.slane %v3110_v32, %v5772_v55  ;;  %v3111_v11 = vld.sshfl [vmem:[#allocation4 + $0xc] sm:$0x1 pattern:$0x75316420]  ;;  %v3226_v63 = vld [vmem:[%s3534_s26] sm:$0xff]  ;;  %s3274_s26 = sshll.u32 %s3367_s13, 4  ;;  %s3275_s26 = int_to_ptr.vmem [resolvable:$false] %s3274_s26 }
 0x384   : > { %v2724_v1 = vrot.slane %v3111_v11, %v5772_v55  ;;  %v3112_v46 = vld.sshfl [vmem:[#allocation4 + $0xd] sm:$0x1 pattern:$0x75316420]  ;;  %s3276_s22 = scalar_lea.vmem %s3275_s26, 256  ;;  %p3277_p1 = scmp.lt.s32.totalorder %s5599_s21, %s3275_s26 }
 0x385   : > { %2705 = vrot.lane.b32.xlu1 %v2704_v3, %s3356_s15  ;;  %v2744_v52 = vrot.slane %v3112_v46, %v5772_v55  ;;  %v3113_v22 = vld.sshfl [vmem:[#allocation4 + $0xe] sm:$0x1 pattern:$0x75316420]  ;;  %s3365_s15 = smov 93   ;;  %p3278_p2 = scmp.lt.s32.totalorder %s3276_s22, %s3270_s23 }
 0x386   : > { %v2764_v48 = vrot.slane %v3113_v22, %v5772_v55  ;;  %v3114_v53 = vld.sshfl [vmem:[#allocation4 + $0xf] sm:$0x1 pattern:$0x75316420] }
 0x387   : > { %2613 = vrot.lane.b32.xlu0 %v2612_v57, %s3363_s20  ;;  %v2784_v5 = vrot.slane %v3114_v53, %v5772_v55  ;;  %v3115_v56 = vld.sshfl [vmem:[#allocation4 + $0x10] sm:$0x1 pattern:$0x75316420]  ;;  %p3279_p12 = por %p3278_p2, %p3277_p1 }
 0x388   : > { %v2804_v27 = vrot.slane %v3115_v56, %v5772_v55  ;;  %v3116_v19 = vld.sshfl [vmem:[#allocation4 + $0x11] sm:$0x1 pattern:$0x75316420] }
 0x389   : > { %2725 = vrot.lane.b32.xlu1 %v2724_v1, %s3360_s29  ;;  %v2824_v6 = vrot.slane %v3116_v19, %v5772_v55  ;;  %v3117_v24 = vld.sshfl [vmem:[#allocation4 + $0x12] sm:$0x1 pattern:$0x75316420]  ;;  %p3280_p0 = pnand %p3279_p12, %p3273_p5 }
 0x38a   : > { %v2844_v42 = vrot.slane %v3117_v24, %v5772_v55 }
 0x38b   : > { %2636 = vrot.lane.b32.xlu0 %v2635_v54, %s3364_s0 }
 0x38d   : > { %2745 = vrot.lane.b32.xlu1 %v2744_v52, %s3361_s3 }
 0x38f   : > { %2659 = vrot.lane.b32.xlu0 %v2658_v13, %s3365_s15 }
 0x391   : > { %2765 = vrot.lane.b32.xlu1 %v2764_v48, %s3362_s4 }
 0x393   : > { %2682 = vrot.lane.b32.xlu0 %v2681_v21, %s3366_s1 }
 0x395   : > { %2785 = vrot.lane.b32.xlu1 %v2784_v5, %s3363_s20 }
 0x399   : > { %2805 = vrot.lane.b32.xlu1 %v2804_v27, %s3364_s0 }
 0x39d   : > { %2825 = vrot.lane.b32.xlu1 %v2824_v6, %s3365_s15 }
 0x3a1   : > { %2845 = vrot.lane.b32.xlu1 %v2844_v42, %s3366_s1 }
 0x3e9   : > { %v2523_v39 = vpop.permute.xlu0 %2522 }
 0x3ea   : > { %2527 = vst.msk [vmem:[#allocation2] sm:$0x1] %vm5422_vm11, %v2523_v39 }
 0x3ed   : > { %v2545_v16 = vpop.permute.xlu0 %2544 }
 0x3ee   : > { %2550 = vst.msk [vmem:[#allocation2] sm:$0x1] %vm2549_vm14, %v2545_v16 }
 0x3f1   : > { %v2568_v9 = vpop.permute.xlu0 %2567 }
 0x3f2   : > { %2573 = vst.msk [vmem:[#allocation2] sm:$0x1] %vm2572_vm1, %v2568_v9 }
 0x3f5   : > { %v2591_v62 = vpop.permute.xlu0 %2590 }
 0x3f6   : > { %2596 = vst.msk [vmem:[#allocation2] sm:$0x1] %vm5673_vm4, %v2591_v62  ;;  %vm5531_vm4 = vcmp.lt.s32.totalorder %v5773_v25, 112 }
 0x3f7   : > { %v2706_v36 = vpop.permute.xlu1 %2705 }
 0x3f8   : > { %2708 = vst.msk [vmem:[#allocation2 + $0x1] sm:$0x1] %vm5422_vm11, %v2706_v36  ;;  %vm5526_vm11 = vcmp.ge.s32.totalorder %v5773_v25, 96 }
 0x3f9   : > { %v2614_v20 = vpop.permute.xlu0 %2613  ;;  %vm2664_vm12 = vmand %vm5526_vm11, %vm5531_vm4 }
 0x3fa   : > { %2619 = vst.msk [vmem:[#allocation2] sm:$0x1] %vm2618_vm7, %v2614_v20 }
 0x3fb   : > { %v2726_v58 = vpop.permute.xlu1 %2725 }
 0x3fc   : > { %2728 = vst.msk [vmem:[#allocation2 + $0x1] sm:$0x1] %vm2549_vm14, %v2726_v58  ;;  %vm5555_vm14 = vcmp.lt.s32.totalorder %v5773_v25, 128 }
 0x3fd   : > { %v2637_v29 = vpop.permute.xlu0 %2636  ;;  %vm2687_vm15 = vmand %vm5550_vm13, %vm5555_vm14 }
 0x3fe   : > { %2642 = vst.msk [vmem:[#allocation2] sm:$0x1] %vm2641_vm10, %v2637_v29 }
 0x3ff   : > { %v2746_v7 = vpop.permute.xlu1 %2745 }
 0x400   : > { %2748 = vst.msk [vmem:[#allocation2 + $0x1] sm:$0x1] %vm2572_vm1, %v2746_v7 }
 0x401   : > { %v2660_v23 = vpop.permute.xlu0 %2659 }
 0x402   : > { %2665 = vst.msk [vmem:[#allocation2] sm:$0x1] %vm2664_vm12, %v2660_v23 }
 0x403   : > { %v2766_v30 = vpop.permute.xlu1 %2765 }
 0x404   : > { %2768 = vst.msk [vmem:[#allocation2 + $0x1] sm:$0x1] %vm5804_vm0, %v2766_v30 }
 0x405   : > { %v2683_v15 = vpop.permute.xlu0 %2682 }
 0x406   : > { %2688 = vst.msk [vmem:[#allocation2] sm:$0x1] %vm2687_vm15, %v2683_v15 }
 0x407   : > { %v2786_v50 = vpop.permute.xlu1 %2785 }
 0x408   : > { %2788 = vst.msk [vmem:[#allocation2 + $0x1] sm:$0x1] %vm2618_vm7, %v2786_v50 }
 0x40b   : > { %v2806_v38 = vpop.permute.xlu1 %2805 }
 0x40c   : > { %2808 = vst.msk [vmem:[#allocation2 + $0x1] sm:$0x1] %vm2641_vm10, %v2806_v38 }
 0x40f   : > { %v2826_v61 = vpop.permute.xlu1 %2825 }
 0x410   : > { %2828 = vst.msk [vmem:[#allocation2 + $0x1] sm:$0x1] %vm2664_vm12, %v2826_v61 }
 0x413   : > { %v2846_v55 = vpop.permute.xlu1 %2845 }
 0x414   : > { %2848 = vst.msk [vmem:[#allocation2 + $0x1] sm:$0x1] %vm2687_vm15, %v2846_v55 }
 0x41b   : > { %v2849_v47 = vld [vmem:[#allocation2] sm:$0x3] }
 0x41c   : > { %v2854_v17 = vrot.slane %v2849_v47, %v2853_v12  ;;  %v2858_v0 = vrot.slane %v2849_v47, %v2857_v49 }
 0x41e   : > { %v2859_v18 = vcombine.low %v2854_v17, %v2858_v0 }
 0x420   : > { %v2861_v33 = vmul.f32 %v3226_v63, %v2859_v18 }
 0x422   : > { %2862 = vst [vmem:[%s171_s5] sm:$0xff] %v2861_v33 }
 0x423   : > { %3283 = shalt.err (!%p3280_p0)
}
 0x424   : > { %s3284_s19 = scalar_lea.hbm %s5597_s8, 128  ;;  %s3288_s30 = scalar_lea.hbm %s5643_s2, 256 }
 0x425   : > { %p3285_p3 = scmp.ne.s32.totalorder %s5597_s8, %s3284_s19  ;;  %p3289_p4 = scmp.lt.u32.totalorder %s5597_s8, %s5643_s2 }
 0x426   : > { %p3290_p6 = scmp.lt.u32.totalorder %s3288_s30, %s3284_s19  ;;  %p3292_p9 = scmp.lt.u32.totalorder %s3284_s19, %s5597_s8 }
 0x427   : > { %p3286_p7 = pnand %p3285_p3, %p5807_p11 }
 0x428   : > { %p3291_p8 = por %p3290_p6, %p3289_p4 }
 0x429   : > { %p3287_p10 = pneg %p3286_p7 }
 0x42a   : > { %p3293_p13 = por %p3292_p9, %p3291_p8 }
 0x42c   : > { %p3294_p5 = pnand %p3293_p13, %p3287_p10 }
 0x42e   : > { %3297 = shalt.err (!%p3294_p5)
}
 0x42f   : > { %3131 = dma.vmem_to_hbm [thread:$0]  (%p5807_p11), %s5599_s21, 128, %s5597_s8, %s2864_s14  }
 0x430 PF: > { %s2890_s29 = sand.u32 1, %s3328_s9   ;;  %p5808_p1 = scmp.ne.s32.totalorder %s5679_s16, 0 }
 0x431   : > { %p5809_p2 = scmp.ge.s32.totalorder %s3340_s12, 2  ;;  %s2891_s3 = scalar_lea.sflag [#allocation8], %s2890_s29 }
 0x433   : > { %p3142_p12 = pnand %p5809_p2, %p5808_p1 }
 0x435   : > { %3323 = dma.done.wait (!%p3142_p12), %s2891_s3, 128  }
 0x436   : > { %3325 = vsyncadd (!%p3142_p12), %s2891_s3, 4294967168  ;;  %s5810_s9 = sld [smem:[#allocation15_spill]]  ;;  %s5811_s10 = sld [smem:[#allocation16_spill]] }
 0x437   : > { %s5812_s11 = sld [smem:[#allocation17_spill]]  ;;  %p16_p0 = scmp.ge.s32.totalorder %s3429_s18, 4  }
 0x438   : > { %s5813_s12 = smov %s3429_s18 }
 0x439   :  { %18 = sbr.rel (!%p16_p0) target bundleno = 9 (0x9), region = 78 }
 0x440   :  { %2896 = vsyncpa [#allocation7], 1 }
 0x441   :  { %2898 = vsyncpa [#allocation7 + $0x1], 1 }
 0x442   :  { %2899 = vsyncpa [#allocation8], 1 }
 0x443   :  { %2901 = vsyncpa [#allocation8 + $0x1], 1 }
 0x444   :  { %2902 = vsyncpa [#allocation9], 1 }
 0x445   :  { %2904 = vsyncpa [#allocation9 + $0x1], 1 }

</bundles_post_ra>
